<compile_context>
chip_gen: v5e
topology: v5e:2x2
jax: 0.10.0
libtpu: 0.0.40
codegen_flags: <defaults>
</compile_context>

<pallas_src>
import functools
import jax
import jax.numpy as jnp
from jax.experimental import pallas as pl
from jax.experimental.pallas import tpu as pltpu

# ----------------------------- config (small, synthetic) -----------------------------
BATCH      = 2
IN_CH      = 3
IMG_SIZE   = 16
PATCH      = 4
VIS_WIDTH  = 32
VIS_LAYERS = 2
VIS_HEADS  = 4
TXT_CTX    = 8
VOCAB      = 64
TXT_WIDTH  = 32
TXT_LAYERS = 2
TXT_HEADS  = 4
MLP_RATIO  = 4
EMBED_DIM  = 32


# ----------------------------- fused CLIP transformer encoder -----------------------------

def _layer_norm(x, g, b, eps=1e-5):
    xm = x - jnp.mean(x, axis=-1, keepdims=True)
    var = jnp.mean(xm * xm, axis=-1, keepdims=True)
    return xm * jax.lax.rsqrt(var + eps) * g + b


_LAYER_PARAM_NAMES = ("ln1_g", "ln1_b", "qkv_w", "qkv_b", "proj_w", "proj_b",
                      "ln2_g", "ln2_b", "fc1_w", "fc1_b", "fc2_w", "fc2_b")


def _encoder_kernel(*refs, n_heads, seq_len, batch, causal, fuse_embed):
    # ---- unpack refs (layout depends on whether the input embedding matmul is fused) ----
    idx = 0
    x_in_ref = refs[idx]; idx += 1
    if fuse_embed:
        embw_ref = refs[idx]; idx += 1
    else:
        embw_ref = None
    embadd_ref = refs[idx]; idx += 1
    (ln1g_ref, ln1b_ref, qkvw_ref, qkvb_ref, projw_ref, projb_ref,
     ln2g_ref, ln2b_ref, fc1w_ref, fc1b_ref, fc2w_ref, fc2b_ref,
     lnfg_ref, lnfb_ref, pool_ref, headw_ref, headb_ref,
     out_ref, x_sc, attn_sc, mask_sc) = refs[idx:]

    layer = pl.program_id(0)
    n_layers = pl.num_programs(0)
    BS, D = x_sc.shape
    S, B, H = seq_len, batch, n_heads
    Dh = D // H
    scale = 1.0 / (Dh ** 0.5)

    # ---- layer 0: build resident activations + cached additive attention-mask bias ----
    @pl.when(layer == 0)
    def _():
        if fuse_embed:
            # Patch embedding (the CLS row of x_in is zero; its content rides in embadd).
            x_sc[...] = (jnp.dot(x_in_ref[...], embw_ref[...],
                                 preferred_element_type=jnp.float32) + embadd_ref[...])
        else:
            # Token embeddings (gathered in XLA) + positional embedding.
            x_sc[...] = x_in_ref[...] + embadd_ref[...]

        # Additive mask bias: block-diagonal over batches (+ causal for text), built in-kernel
        # once with iota (no mask DMA), reused by every layer / head.
        row = jax.lax.broadcasted_iota(jnp.int32, (BS, BS), 0)
        col = jax.lax.broadcasted_iota(jnp.int32, (BS, BS), 1)
        keep = None
        for b in range(B):
            lo, hi = b * S, (b + 1) * S
            blk = (row >= lo) & (row < hi) & (col >= lo) & (col < hi)
            keep = blk if keep is None else (keep | blk)
        if causal:
            keep = keep & (col <= row)
        mask_sc[...] = jnp.where(keep, 0.0, -1e30).astype(jnp.float32)

    x = x_sc[...]
    bias = mask_sc[...]

    # ---- multi-head self-attention (pre-LN), all batches/heads in this grid step ----
    h = _layer_norm(x, ln1g_ref[0], ln1b_ref[0])
    qkv = jnp.dot(h, qkvw_ref[0], preferred_element_type=jnp.float32) + qkvb_ref[0]

    for hd in range(H):
        q = qkv[:, hd * Dh:(hd + 1) * Dh] * scale          # scale smaller operand
        k = qkv[:, D + hd * Dh:D + (hd + 1) * Dh]
        v = qkv[:, 2 * D + hd * Dh:2 * D + (hd + 1) * Dh]
        s = jax.lax.dot_general(q, k, (((1,), (1,)), ((), ())),
                                preferred_element_type=jnp.float32) + bias
        s = s - jnp.max(s, axis=-1, keepdims=True)
        p = jnp.exp(s)
        p = p * pl.reciprocal(jnp.sum(p, axis=-1, keepdims=True), approx=True)
        attn_sc[:, hd * Dh:(hd + 1) * Dh] = jnp.dot(p, v, preferred_element_type=jnp.float32)

    a = attn_sc[...]
    x = x + jnp.dot(a, projw_ref[0], preferred_element_type=jnp.float32) + projb_ref[0]

    # ---- MLP (pre-LN) ----
    h = _layer_norm(x, ln2g_ref[0], ln2b_ref[0])
    h = jnp.dot(h, fc1w_ref[0], preferred_element_type=jnp.float32) + fc1b_ref[0]
    h = jax.nn.gelu(h, approximate=True)  # TODO(synk): open_clip uses exact erf-GELU
    h = jnp.dot(h, fc2w_ref[0], preferred_element_type=jnp.float32) + fc2b_ref[0]
    x = x + h

    x_sc[...] = x

    # ---- final LN + pooling + output projection + L2 norm, fused into the last grid step ----
    @pl.when(layer == n_layers - 1)
    def _():
        xf = _layer_norm(x, lnfg_ref[...], lnfb_ref[...])
        pooled = jnp.dot(pool_ref[...], xf, preferred_element_type=jnp.float32)      # (B, D)
        feat = (jnp.dot(pooled, headw_ref[...], preferred_element_type=jnp.float32)
                + headb_ref[...])                                                    # (B, E)
        inv = jax.lax.rsqrt(jnp.sum(feat * feat, axis=-1, keepdims=True))
        out_ref[...] = (feat * inv).astype(out_ref.dtype)


def clip_encoder(x_in, emb_w, emb_add, pool, blocks, ln_f_g, ln_f_b, head_w, head_b,
                 *, n_heads, seq_len, causal):
    BS, D = emb_add.shape
    B = pool.shape[0]
    L = blocks["qkv_w"].shape[0]
    E = head_w.shape[1]
    fuse_embed = emb_w is not None

    layer_args = [blocks[n] for n in _LAYER_PARAM_NAMES]
    layer_specs = [pl.BlockSpec((1,) + a.shape[1:], lambda l: (l, 0, 0)) for a in layer_args]

    def full_spec(a):
        return pl.BlockSpec(a.shape, lambda l: (0,) * a.ndim)

    lead_args = [x_in] + ([emb_w] if fuse_embed else []) + [emb_add]
    tail_args = [ln_f_g, ln_f_b, pool, head_w, head_b]
    lead_specs = [full_spec(a) for a in lead_args]
    tail_specs = [full_spec(a) for a in tail_args]

    kernel = functools.partial(_encoder_kernel, n_heads=n_heads, seq_len=seq_len,
                               batch=B, causal=causal, fuse_embed=fuse_embed)
    return pl.pallas_call(
        kernel,
        out_shape=jax.ShapeDtypeStruct((B, E), jnp.float32),
        grid=(L,),
        in_specs=lead_specs + layer_specs + tail_specs,
        out_specs=pl.BlockSpec((B, E), lambda l: (0, 0)),
        scratch_shapes=[pltpu.VMEM((BS, D), jnp.float32),    # resident activations
                        pltpu.VMEM((BS, D), jnp.float32),    # attention head outputs
                        pltpu.VMEM((BS, BS), jnp.float32)],  # cached additive mask bias
        compiler_params=pltpu.CompilerParams(dimension_semantics=("arbitrary",)),
    )(*lead_args, *layer_args, *tail_args)


# ----------------------------- encoders -----------------------------

def encode_image(p, img):
    # layout: NCHW -> patchify -> (B*Np, C*P*P); patch-embed matmul happens inside the
    # fused encoder kernel at layer 0.
    B, C, H, W = img.shape
    P = PATCH
    nh, nw = H // P, W // P
    Np = nh * nw
    S = Np + 1
    patches = img.reshape(B, C, nh, P, nw, P).transpose(0, 2, 4, 1, 3, 5)
    patches = patches.reshape(B, Np, C * P * P)
    # CLS row of x_in is zero; its embedding (cls + pos[0]) rides in the additive term.
    x_in = jnp.concatenate([jnp.zeros((B, 1, C * P * P), jnp.float32), patches], axis=1)
    x_in = x_in.reshape(B * S, C * P * P)
    emb_add_one = jnp.concatenate([p["cls"] + p["pos"][0:1],
                                   p["patch_b"] + p["pos"][1:]], axis=0)     # (S, D)
    emb_add = jnp.tile(emb_add_one, (B, 1))                                  # (B*S, D)
    # CLS pooling expressed as a one-hot matmul, executed inside the fused encoder kernel.
    pool = jnp.zeros((B, B * S), jnp.float32).at[jnp.arange(B), jnp.arange(B) * S].set(1.0)
    return clip_encoder(x_in, p["patch_w"], emb_add, pool, p["blocks"],
                        p["ln_post_g"], p["ln_post_b"], p["proj_w"], p["proj_b"],
                        n_heads=VIS_HEADS, seq_len=S, causal=False)


def encode_text(p, tokens):
    B, S = tokens.shape
    # TODO(synk): token-embedding gather stays in XLA (no clean Pallas gather at this size).
    x_in = p["tok_emb"][tokens].reshape(B * S, TXT_WIDTH)
    emb_add = jnp.tile(p["pos"], (B, 1))                                     # (B*S, D)
    eot = jnp.argmax(tokens, axis=-1)            # EOT token = highest id (CLIP convention)
    pool = jnp.zeros((B, B * S), jnp.float32).at[jnp.arange(B), jnp.arange(B) * S + eot].set(1.0)
    return clip_encoder(x_in, None, emb_add, pool, p["blocks"],
                        p["ln_final_g"], p["ln_final_b"], p["proj_w"], p["proj_b"],
                        n_heads=TXT_HEADS, seq_len=S, causal=True)


def forward(params, tokens, img):
    image_features = encode_image(params["visual"], img)   # already L2-normalized in-kernel
    text_features = encode_text(params["text"], tokens)    # already L2-normalized in-kernel
    return text_features, image_features


# ----------------------------- deterministic parameter init -----------------------------

def _init_stacked_blocks(key, width, layers):
    mlp = width * MLP_RATIO
    per = []
    for k in jax.random.split(key, layers):
        k0, k1, k2, k3 = jax.random.split(k, 4)
        per.append(dict(
            ln1_g=jnp.ones((1, width), jnp.float32),
            ln1_b=jnp.zeros((1, width), jnp.float32),
            qkv_w=jax.random.normal(k0, (width, 3 * width), jnp.float32) * 0.02,
            qkv_b=jnp.zeros((1, 3 * width), jnp.float32),
            proj_w=jax.random.normal(k1, (width, width), jnp.float32) * 0.02,
            proj_b=jnp.zeros((1, width), jnp.float32),
            ln2_g=jnp.ones((1, width), jnp.float32),
            ln2_b=jnp.zeros((1, width), jnp.float32),
            fc1_w=jax.random.normal(k2, (width, mlp), jnp.float32) * 0.02,
            fc1_b=jnp.zeros((1, mlp), jnp.float32),
            fc2_w=jax.random.normal(k3, (mlp, width), jnp.float32) * 0.02,
            fc2_b=jnp.zeros((1, width), jnp.float32),
        ))
    # Stack with a leading layer axis so the layer grid axis can index weights per step.
    return {name: jnp.stack([blk[name] for blk in per], axis=0) for name in _LAYER_PARAM_NAMES}


def init_params(key):
    n_tokens = (IMG_SIZE // PATCH) ** 2 + 1
    kv, kt = jax.random.split(key)

    kv, kb, k_pw, k_cls, k_pos, k_proj = jax.random.split(kv, 6)
    visual = dict(
        patch_w=jax.random.normal(k_pw, (IN_CH * PATCH * PATCH, VIS_WIDTH), jnp.float32) * 0.02,
        patch_b=jnp.zeros((1, VIS_WIDTH), jnp.float32),
        cls=jax.random.normal(k_cls, (1, VIS_WIDTH), jnp.float32) * 0.02,
        pos=jax.random.normal(k_pos, (n_tokens, VIS_WIDTH), jnp.float32) * 0.02,
        blocks=_init_stacked_blocks(kb, VIS_WIDTH, VIS_LAYERS),
        ln_post_g=jnp.ones((1, VIS_WIDTH), jnp.float32),
        ln_post_b=jnp.zeros((1, VIS_WIDTH), jnp.float32),
        proj_w=jax.random.normal(k_proj, (VIS_WIDTH, EMBED_DIM), jnp.float32) * 0.02,
        proj_b=jnp.zeros((1, EMBED_DIM), jnp.float32))

    kt, ktb, k_emb, k_tpos, k_tproj = jax.random.split(kt, 5)
    text = dict(
        tok_emb=jax.random.normal(k_emb, (VOCAB, TXT_WIDTH), jnp.float32) * 0.02,
        pos=jax.random.normal(k_tpos, (TXT_CTX, TXT_WIDTH), jnp.float32) * 0.02,
        blocks=_init_stacked_blocks(ktb, TXT_WIDTH, TXT_LAYERS),
        ln_final_g=jnp.ones((1, TXT_WIDTH), jnp.float32),
        ln_final_b=jnp.zeros((1, TXT_WIDTH), jnp.float32),
        proj_w=jax.random.normal(k_tproj, (TXT_WIDTH, EMBED_DIM), jnp.float32) * 0.02,
        proj_b=jnp.zeros((1, EMBED_DIM), jnp.float32))

    return dict(visual=visual, text=text)


# ----------------------------- main -----------------------------

if __name__ == "__main__":
    key = jax.random.PRNGKey(0)
    k_img, k_tok, k_params = jax.random.split(key, 3)

    img = jax.random.normal(k_img, (BATCH, IN_CH, IMG_SIZE, IMG_SIZE), jnp.float32)  # NCHW
    tokens = jax.random.randint(k_tok, (BATCH, TXT_CTX), 1, VOCAB - 1)
    tokens = tokens.at[:, -1].set(VOCAB - 1)  # EOT token at the end

    params = init_params(k_params)

    text_features, image_features = jax.jit(forward)(params, tokens, img)
    jax.block_until_ready((text_features, image_features))

    assert text_features.shape == (BATCH, EMBED_DIM)
    assert image_features.shape == (BATCH, EMBED_DIM)
    tn = jnp.linalg.norm(text_features, axis=-1)
    im = jnp.linalg.norm(image_features, axis=-1)
    assert bool(jnp.all(jnp.isfinite(text_features))) and bool(jnp.all(jnp.isfinite(image_features)))
    assert bool(jnp.allclose(tn, 1.0, atol=1e-3)) and bool(jnp.allclose(im, 1.0, atol=1e-3))

    print("KERNEL_OK")
</pallas_src>

<mosaic_0001>
module attributes {stable_mosaic.version = 11 : i64} {
  func.func @_encoder_kernel(%arg0: i32, %arg1: memref<34x48xf32, #tpu.memory_space<vmem>>, %arg2: memref<48x32xf32, #tpu.memory_space<vmem>>, %arg3: memref<34x32xf32, #tpu.memory_space<vmem>>, %arg4: memref<1x1x32xf32, #tpu.memory_space<vmem>>, %arg5: memref<1x1x32xf32, #tpu.memory_space<vmem>>, %arg6: memref<1x32x96xf32, #tpu.memory_space<vmem>>, %arg7: memref<1x1x96xf32, #tpu.memory_space<vmem>>, %arg8: memref<1x32x32xf32, #tpu.memory_space<vmem>>, %arg9: memref<1x1x32xf32, #tpu.memory_space<vmem>>, %arg10: memref<1x1x32xf32, #tpu.memory_space<vmem>>, %arg11: memref<1x1x32xf32, #tpu.memory_space<vmem>>, %arg12: memref<1x32x128xf32, #tpu.memory_space<vmem>>, %arg13: memref<1x1x128xf32, #tpu.memory_space<vmem>>, %arg14: memref<1x128x32xf32, #tpu.memory_space<vmem>>, %arg15: memref<1x1x32xf32, #tpu.memory_space<vmem>>, %arg16: memref<1x32xf32, #tpu.memory_space<vmem>>, %arg17: memref<1x32xf32, #tpu.memory_space<vmem>>, %arg18: memref<2x34xf32, #tpu.memory_space<vmem>>, %arg19: memref<32x32xf32, #tpu.memory_space<vmem>>, %arg20: memref<1x32xf32, #tpu.memory_space<vmem>>, %arg21: memref<2x32xf32, #tpu.memory_space<vmem>>, %arg22: memref<34x32xf32, #tpu.memory_space<vmem>>, %arg23: memref<34x32xf32, #tpu.memory_space<vmem>>, %arg24: memref<34x34xf32, #tpu.memory_space<vmem>>) attributes {dimension_semantics = [#tpu.dimension_semantics<arbitrary>], iteration_bounds = array<i64: 2>, scalar_prefetch = 0 : i64, scratch_operands = 3 : i64, tpu.core_type = #tpu.core_type<tc>, window_params = [{pipeline_mode = #tpu.pipeline_mode<synchronous>, transform_indices = @transform_0, window_bounds = array<i64: 34, 48>}, {pipeline_mode = #tpu.pipeline_mode<synchronous>, transform_indices = @transform_1, window_bounds = array<i64: 48, 32>}, {pipeline_mode = #tpu.pipeline_mode<synchronous>, transform_indices = @transform_2, window_bounds = array<i64: 34, 32>}, {transform_indices = @transform_3, window_bounds = array<i64: 1, 1, 32>}, {transform_indices = @transform_4, window_bounds = array<i64: 1, 1, 32>}, {transform_indices = @transform_5, window_bounds = array<i64: 1, 32, 96>}, {transform_indices = @transform_6, window_bounds = array<i64: 1, 1, 96>}, {transform_indices = @transform_7, window_bounds = array<i64: 1, 32, 32>}, {transform_indices = @transform_8, window_bounds = array<i64: 1, 1, 32>}, {transform_indices = @transform_9, window_bounds = array<i64: 1, 1, 32>}, {transform_indices = @transform_10, window_bounds = array<i64: 1, 1, 32>}, {transform_indices = @transform_11, window_bounds = array<i64: 1, 32, 128>}, {transform_indices = @transform_12, window_bounds = array<i64: 1, 1, 128>}, {transform_indices = @transform_13, window_bounds = array<i64: 1, 128, 32>}, {transform_indices = @transform_14, window_bounds = array<i64: 1, 1, 32>}, {pipeline_mode = #tpu.pipeline_mode<synchronous>, transform_indices = @transform_15, window_bounds = array<i64: 1, 32>}, {pipeline_mode = #tpu.pipeline_mode<synchronous>, transform_indices = @transform_16, window_bounds = array<i64: 1, 32>}, {pipeline_mode = #tpu.pipeline_mode<synchronous>, transform_indices = @transform_17, window_bounds = array<i64: 2, 34>}, {pipeline_mode = #tpu.pipeline_mode<synchronous>, transform_indices = @transform_18, window_bounds = array<i64: 32, 32>}, {pipeline_mode = #tpu.pipeline_mode<synchronous>, transform_indices = @transform_19, window_bounds = array<i64: 1, 32>}, {pipeline_mode = #tpu.pipeline_mode<synchronous>, transform_indices = @transform_20, window_bounds = array<i64: 2, 32>}]} {
    %c0_i32 = arith.constant 0 : i32
    %0 = arith.cmpi eq, %arg0, %c0_i32 : i32
    %1 = arith.extui %0 : i1 to i32
    %c0_i32_0 = arith.constant 0 : i32
    %2 = arith.cmpi ne, %1, %c0_i32_0 : i32
    scf.if %2 {
      %c0_87 = arith.constant 0 : index
      %c0_88 = arith.constant 0 : index
      %177 = vector.load %arg1[%c0_87, %c0_88] : memref<34x48xf32, #tpu.memory_space<vmem>>, vector<34x48xf32>
      %c0_89 = arith.constant 0 : index
      %c0_90 = arith.constant 0 : index
      %178 = vector.load %arg2[%c0_89, %c0_90] : memref<48x32xf32, #tpu.memory_space<vmem>>, vector<48x32xf32>
      %cst_91 = arith.constant dense<0.000000e+00> : vector<34x32xf32>
      %179 = tpu.matmul %177, %178, %cst_91 {dimension_numbers = #tpu.dot_dimension_numbers<[1], [0], [0], [1], [0, 0, 1, 1], [], []>} : vector<34x48xf32>, vector<48x32xf32>, vector<34x32xf32> -> vector<34x32xf32>
      %c0_92 = arith.constant 0 : index
      %c0_93 = arith.constant 0 : index
      %180 = vector.load %arg3[%c0_92, %c0_93] : memref<34x32xf32, #tpu.memory_space<vmem>>, vector<34x32xf32>
      %181 = arith.addf %179, %180 : vector<34x32xf32>
      %c0_94 = arith.constant 0 : index
      %c0_95 = arith.constant 0 : index
      %182 = vector.load %arg22[%c0_94, %c0_95] : memref<34x32xf32, #tpu.memory_space<vmem>>, vector<34x32xf32>
      tpu.vector_store %arg22[%c0_94, %c0_95], %181 {strides = array<i32>} : memref<34x32xf32, #tpu.memory_space<vmem>>, vector<34x32xf32>,
      %183 = tpu.iota {dimensions = array<i32: 0>} : vector<34x34xi32>
      %184 = tpu.iota {dimensions = array<i32: 1>} : vector<34x34xi32>
      %c0_i32_96 = arith.constant 0 : i32
      %185 = vector.broadcast %c0_i32_96 : i32 to vector<34x34xi32>
      %186 = arith.cmpi sge, %183, %185 : vector<34x34xi32>
      %c17_i32 = arith.constant 17 : i32
      %187 = vector.broadcast %c17_i32 : i32 to vector<34x34xi32>
      %188 = arith.cmpi slt, %183, %187 : vector<34x34xi32>
      %189 = arith.andi %186, %188 : vector<34x34xi1>
      %c0_i32_97 = arith.constant 0 : i32
      %190 = vector.broadcast %c0_i32_97 : i32 to vector<34x34xi32>
      %191 = arith.cmpi sge, %184, %190 : vector<34x34xi32>
      %192 = arith.andi %189, %191 : vector<34x34xi1>
      %c17_i32_98 = arith.constant 17 : i32
      %193 = vector.broadcast %c17_i32_98 : i32 to vector<34x34xi32>
      %194 = arith.cmpi slt, %184, %193 : vector<34x34xi32>
      %195 = arith.andi %192, %194 : vector<34x34xi1>
      %c17_i32_99 = arith.constant 17 : i32
      %196 = vector.broadcast %c17_i32_99 : i32 to vector<34x34xi32>
      %197 = arith.cmpi sge, %183, %196 : vector<34x34xi32>
      %c34_i32 = arith.constant 34 : i32
      %198 = vector.broadcast %c34_i32 : i32 to vector<34x34xi32>
      %199 = arith.cmpi slt, %183, %198 : vector<34x34xi32>
      %200 = arith.andi %197, %199 : vector<34x34xi1>
      %c17_i32_100 = arith.constant 17 : i32
      %201 = vector.broadcast %c17_i32_100 : i32 to vector<34x34xi32>
      %202 = arith.cmpi sge, %184, %201 : vector<34x34xi32>
      %203 = arith.andi %200, %202 : vector<34x34xi1>
      %c34_i32_101 = arith.constant 34 : i32
      %204 = vector.broadcast %c34_i32_101 : i32 to vector<34x34xi32>
      %205 = arith.cmpi slt, %184, %204 : vector<34x34xi32>
      %206 = arith.andi %203, %205 : vector<34x34xi1>
      %207 = arith.ori %195, %206 : vector<34x34xi1>
      %cst_102 = arith.constant 0.000000e+00 : f32
      %cst_103 = arith.constant -1.000000e+30 : f32
      %208 = vector.broadcast %cst_102 : f32 to vector<34x34xf32>
      %209 = vector.broadcast %cst_103 : f32 to vector<34x34xf32>
      %210 = arith.select %207, %208, %209 : vector<34x34xi1>, vector<34x34xf32>
      %c0_104 = arith.constant 0 : index
      %c0_105 = arith.constant 0 : index
      %211 = vector.load %arg24[%c0_104, %c0_105] : memref<34x34xf32, #tpu.memory_space<vmem>>, vector<34x34xf32>
      tpu.vector_store %arg24[%c0_104, %c0_105], %210 {strides = array<i32>} : memref<34x34xf32, #tpu.memory_space<vmem>>, vector<34x34xf32>,
    } else {
    }
    %c0 = arith.constant 0 : index
    %c0_1 = arith.constant 0 : index
    %3 = vector.load %arg22[%c0, %c0_1] : memref<34x32xf32, #tpu.memory_space<vmem>>, vector<34x32xf32>
    %c0_2 = arith.constant 0 : index
    %c0_3 = arith.constant 0 : index
    %4 = vector.load %arg24[%c0_2, %c0_3] : memref<34x34xf32, #tpu.memory_space<vmem>>, vector<34x34xf32>
    %c0_4 = arith.constant 0 : index
    %c0_5 = arith.constant 0 : index
    %c0_6 = arith.constant 0 : index
    %5 = vector.load %arg4[%c0_4, %c0_5, %c0_6] : memref<1x1x32xf32, #tpu.memory_space<vmem>>, vector<1x1x32xf32>
    %6 = vector.shape_cast %5 : vector<1x1x32xf32> to vector<1x32xf32>
    %c0_7 = arith.constant 0 : index
    %c0_8 = arith.constant 0 : index
    %c0_9 = arith.constant 0 : index
    %7 = vector.load %arg5[%c0_7, %c0_8, %c0_9] : memref<1x1x32xf32, #tpu.memory_space<vmem>>, vector<1x1x32xf32>
    %8 = vector.shape_cast %7 : vector<1x1x32xf32> to vector<1x32xf32>
    %cst = arith.constant dense<0.000000e+00> : vector<34xf32>
    %9 = vector.multi_reduction <add>, %3, %cst [1] : vector<34x32xf32> to vector<34xf32>
    %10 = vector.shape_cast %9 : vector<34xf32> to vector<34x1xf32>
    %cst_10 = arith.constant 3.200000e+01 : f32
    %11 = vector.broadcast %cst_10 : f32 to vector<34x1xf32>
    %12 = arith.divf %10, %11 : vector<34x1xf32>
    %13 = vector.broadcast %12 : vector<34x1xf32> to vector<34x32xf32>
    %14 = arith.subf %3, %13 : vector<34x32xf32>
    %15 = arith.mulf %14, %14 : vector<34x32xf32>
    %cst_11 = arith.constant dense<0.000000e+00> : vector<34xf32>
    %16 = vector.multi_reduction <add>, %15, %cst_11 [1] : vector<34x32xf32> to vector<34xf32>
    %17 = vector.shape_cast %16 : vector<34xf32> to vector<34x1xf32>
    %cst_12 = arith.constant 3.200000e+01 : f32
    %18 = vector.broadcast %cst_12 : f32 to vector<34x1xf32>
    %19 = arith.divf %17, %18 : vector<34x1xf32>
    %cst_13 = arith.constant 9.99999974E-6 : f32
    %20 = vector.broadcast %cst_13 : f32 to vector<34x1xf32>
    %21 = arith.addf %19, %20 : vector<34x1xf32>
    %22 = math.rsqrt %21 : vector<34x1xf32>
    %23 = vector.broadcast %22 : vector<34x1xf32> to vector<34x32xf32>
    %24 = arith.mulf %14, %23 : vector<34x32xf32>
    %25 = vector.broadcast %6 : vector<1x32xf32> to vector<34x32xf32>
    %26 = arith.mulf %24, %25 : vector<34x32xf32>
    %27 = vector.broadcast %8 : vector<1x32xf32> to vector<34x32xf32>
    %28 = arith.addf %26, %27 : vector<34x32xf32>
    %c0_14 = arith.constant 0 : index
    %c0_15 = arith.constant 0 : index
    %c0_16 = arith.constant 0 : index
    %29 = vector.load %arg6[%c0_14, %c0_15, %c0_16] : memref<1x32x96xf32, #tpu.memory_space<vmem>>, vector<1x32x96xf32>
    %30 = vector.shape_cast %29 : vector<1x32x96xf32> to vector<32x96xf32>
    %cst_17 = arith.constant dense<0.000000e+00> : vector<34x96xf32>
    %31 = tpu.matmul %28, %30, %cst_17 {dimension_numbers = #tpu.dot_dimension_numbers<[1], [0], [0], [1], [0, 0, 1, 1], [], []>} : vector<34x32xf32>, vector<32x96xf32>, vector<34x96xf32> -> vector<34x96xf32>
    %c0_18 = arith.constant 0 : index
    %c0_19 = arith.constant 0 : index
    %c0_20 = arith.constant 0 : index
    %32 = vector.load %arg7[%c0_18, %c0_19, %c0_20] : memref<1x1x96xf32, #tpu.memory_space<vmem>>, vector<1x1x96xf32>
    %33 = vector.shape_cast %32 : vector<1x1x96xf32> to vector<1x96xf32>
    %34 = vector.broadcast %33 : vector<1x96xf32> to vector<34x96xf32>
    %35 = arith.addf %31, %34 : vector<34x96xf32>
    %36 = vector.extract_strided_slice %35 {offsets = [0, 0], sizes = [34, 8], strides = [1, 1]} : vector<34x96xf32> to vector<34x8xf32>
    %cst_21 = arith.constant 0.353553385 : f32
    %37 = vector.broadcast %cst_21 : f32 to vector<34x8xf32>
    %38 = arith.mulf %36, %37 : vector<34x8xf32>
    %39 = vector.extract_strided_slice %35 {offsets = [0, 32], sizes = [34, 8], strides = [1, 1]} : vector<34x96xf32> to vector<34x8xf32>
    %40 = vector.extract_strided_slice %35 {offsets = [0, 64], sizes = [34, 8], strides = [1, 1]} : vector<34x96xf32> to vector<34x8xf32>
    %cst_22 = arith.constant dense<0.000000e+00> : vector<34x34xf32>
    %41 = tpu.matmul %38, %39, %cst_22 {dimension_numbers = #tpu.dot_dimension_numbers<[1], [1], [0], [0], [0, 0, 1, 0], [], []>} : vector<34x8xf32>, vector<34x8xf32>, vector<34x34xf32> -> vector<34x34xf32>
    %42 = arith.addf %41, %4 : vector<34x34xf32>
    %cst_23 = arith.constant dense<0xFF800000> : vector<34xf32>
    %43 = vector.multi_reduction <maximumf>, %42, %cst_23 [1] : vector<34x34xf32> to vector<34xf32>
    %44 = vector.shape_cast %43 : vector<34xf32> to vector<34x1xf32>
    %45 = vector.broadcast %44 : vector<34x1xf32> to vector<34x34xf32>
    %46 = arith.subf %42, %45 : vector<34x34xf32>
    %47 = math.exp %46 : vector<34x34xf32>
    %cst_24 = arith.constant dense<0.000000e+00> : vector<34xf32>
    %48 = vector.multi_reduction <add>, %47, %cst_24 [1] : vector<34x34xf32> to vector<34xf32>
    %49 = vector.shape_cast %48 : vector<34xf32> to vector<34x1xf32>
    %50 = tpu.reciprocal %49 {approx = true} : vector<34x1xf32> -> vector<34x1xf32>
    %51 = vector.broadcast %50 : vector<34x1xf32> to vector<34x34xf32>
    %52 = arith.mulf %47, %51 : vector<34x34xf32>
    %cst_25 = arith.constant dense<0.000000e+00> : vector<34x8xf32>
    %53 = tpu.matmul %52, %40, %cst_25 {dimension_numbers = #tpu.dot_dimension_numbers<[1], [0], [0], [1], [0, 0, 1, 1], [], []>} : vector<34x34xf32>, vector<34x8xf32>, vector<34x8xf32> -> vector<34x8xf32>
    %c0_26 = arith.constant 0 : index
    %c0_27 = arith.constant 0 : index
    %54 = vector.load %arg23[%c0_26, %c0_27] : memref<34x32xf32, #tpu.memory_space<vmem>>, vector<34x8xf32>
    tpu.vector_store %arg23[%c0_26, %c0_27], %53 {strides = array<i32>} : memref<34x32xf32, #tpu.memory_space<vmem>>, vector<34x8xf32>,
    %55 = vector.extract_strided_slice %35 {offsets = [0, 8], sizes = [34, 8], strides = [1, 1]} : vector<34x96xf32> to vector<34x8xf32>
    %cst_28 = arith.constant 0.353553385 : f32
    %56 = vector.broadcast %cst_28 : f32 to vector<34x8xf32>
    %57 = arith.mulf %55, %56 : vector<34x8xf32>
    %58 = vector.extract_strided_slice %35 {offsets = [0, 40], sizes = [34, 8], strides = [1, 1]} : vector<34x96xf32> to vector<34x8xf32>
    %59 = vector.extract_strided_slice %35 {offsets = [0, 72], sizes = [34, 8], strides = [1, 1]} : vector<34x96xf32> to vector<34x8xf32>
    %cst_29 = arith.constant dense<0.000000e+00> : vector<34x34xf32>
    %60 = tpu.matmul %57, %58, %cst_29 {dimension_numbers = #tpu.dot_dimension_numbers<[1], [1], [0], [0], [0, 0, 1, 0], [], []>} : vector<34x8xf32>, vector<34x8xf32>, vector<34x34xf32> -> vector<34x34xf32>
    %61 = arith.addf %60, %4 : vector<34x34xf32>
    %cst_30 = arith.constant dense<0xFF800000> : vector<34xf32>
    %62 = vector.multi_reduction <maximumf>, %61, %cst_30 [1] : vector<34x34xf32> to vector<34xf32>
    %63 = vector.shape_cast %62 : vector<34xf32> to vector<34x1xf32>
    %64 = vector.broadcast %63 : vector<34x1xf32> to vector<34x34xf32>
    %65 = arith.subf %61, %64 : vector<34x34xf32>
    %66 = math.exp %65 : vector<34x34xf32>
    %cst_31 = arith.constant dense<0.000000e+00> : vector<34xf32>
    %67 = vector.multi_reduction <add>, %66, %cst_31 [1] : vector<34x34xf32> to vector<34xf32>
    %68 = vector.shape_cast %67 : vector<34xf32> to vector<34x1xf32>
    %69 = tpu.reciprocal %68 {approx = true} : vector<34x1xf32> -> vector<34x1xf32>
    %70 = vector.broadcast %69 : vector<34x1xf32> to vector<34x34xf32>
    %71 = arith.mulf %66, %70 : vector<34x34xf32>
    %cst_32 = arith.constant dense<0.000000e+00> : vector<34x8xf32>
    %72 = tpu.matmul %71, %59, %cst_32 {dimension_numbers = #tpu.dot_dimension_numbers<[1], [0], [0], [1], [0, 0, 1, 1], [], []>} : vector<34x34xf32>, vector<34x8xf32>, vector<34x8xf32> -> vector<34x8xf32>
    %c0_33 = arith.constant 0 : index
    %c8 = arith.constant 8 : index
    %73 = vector.load %arg23[%c0_33, %c8] : memref<34x32xf32, #tpu.memory_space<vmem>>, vector<34x8xf32>
    tpu.vector_store %arg23[%c0_33, %c8], %72 {strides = array<i32>} : memref<34x32xf32, #tpu.memory_space<vmem>>, vector<34x8xf32>,
    %74 = vector.extract_strided_slice %35 {offsets = [0, 16], sizes = [34, 8], strides = [1, 1]} : vector<34x96xf32> to vector<34x8xf32>
    %cst_34 = arith.constant 0.353553385 : f32
    %75 = vector.broadcast %cst_34 : f32 to vector<34x8xf32>
    %76 = arith.mulf %74, %75 : vector<34x8xf32>
    %77 = vector.extract_strided_slice %35 {offsets = [0, 48], sizes = [34, 8], strides = [1, 1]} : vector<34x96xf32> to vector<34x8xf32>
    %78 = vector.extract_strided_slice %35 {offsets = [0, 80], sizes = [34, 8], strides = [1, 1]} : vector<34x96xf32> to vector<34x8xf32>
    %cst_35 = arith.constant dense<0.000000e+00> : vector<34x34xf32>
    %79 = tpu.matmul %76, %77, %cst_35 {dimension_numbers = #tpu.dot_dimension_numbers<[1], [1], [0], [0], [0, 0, 1, 0], [], []>} : vector<34x8xf32>, vector<34x8xf32>, vector<34x34xf32> -> vector<34x34xf32>
    %80 = arith.addf %79, %4 : vector<34x34xf32>
    %cst_36 = arith.constant dense<0xFF800000> : vector<34xf32>
    %81 = vector.multi_reduction <maximumf>, %80, %cst_36 [1] : vector<34x34xf32> to vector<34xf32>
    %82 = vector.shape_cast %81 : vector<34xf32> to vector<34x1xf32>
    %83 = vector.broadcast %82 : vector<34x1xf32> to vector<34x34xf32>
    %84 = arith.subf %80, %83 : vector<34x34xf32>
    %85 = math.exp %84 : vector<34x34xf32>
    %cst_37 = arith.constant dense<0.000000e+00> : vector<34xf32>
    %86 = vector.multi_reduction <add>, %85, %cst_37 [1] : vector<34x34xf32> to vector<34xf32>
    %87 = vector.shape_cast %86 : vector<34xf32> to vector<34x1xf32>
    %88 = tpu.reciprocal %87 {approx = true} : vector<34x1xf32> -> vector<34x1xf32>
    %89 = vector.broadcast %88 : vector<34x1xf32> to vector<34x34xf32>
    %90 = arith.mulf %85, %89 : vector<34x34xf32>
    %cst_38 = arith.constant dense<0.000000e+00> : vector<34x8xf32>
    %91 = tpu.matmul %90, %78, %cst_38 {dimension_numbers = #tpu.dot_dimension_numbers<[1], [0], [0], [1], [0, 0, 1, 1], [], []>} : vector<34x34xf32>, vector<34x8xf32>, vector<34x8xf32> -> vector<34x8xf32>
    %c0_39 = arith.constant 0 : index
    %c16 = arith.constant 16 : index
    %92 = vector.load %arg23[%c0_39, %c16] : memref<34x32xf32, #tpu.memory_space<vmem>>, vector<34x8xf32>
    tpu.vector_store %arg23[%c0_39, %c16], %91 {strides = array<i32>} : memref<34x32xf32, #tpu.memory_space<vmem>>, vector<34x8xf32>,
    %93 = vector.extract_strided_slice %35 {offsets = [0, 24], sizes = [34, 8], strides = [1, 1]} : vector<34x96xf32> to vector<34x8xf32>
    %cst_40 = arith.constant 0.353553385 : f32
    %94 = vector.broadcast %cst_40 : f32 to vector<34x8xf32>
    %95 = arith.mulf %93, %94 : vector<34x8xf32>
    %96 = vector.extract_strided_slice %35 {offsets = [0, 56], sizes = [34, 8], strides = [1, 1]} : vector<34x96xf32> to vector<34x8xf32>
    %97 = vector.extract_strided_slice %35 {offsets = [0, 88], sizes = [34, 8], strides = [1, 1]} : vector<34x96xf32> to vector<34x8xf32>
    %cst_41 = arith.constant dense<0.000000e+00> : vector<34x34xf32>
    %98 = tpu.matmul %95, %96, %cst_41 {dimension_numbers = #tpu.dot_dimension_numbers<[1], [1], [0], [0], [0, 0, 1, 0], [], []>} : vector<34x8xf32>, vector<34x8xf32>, vector<34x34xf32> -> vector<34x34xf32>
    %99 = arith.addf %98, %4 : vector<34x34xf32>
    %cst_42 = arith.constant dense<0xFF800000> : vector<34xf32>
    %100 = vector.multi_reduction <maximumf>, %99, %cst_42 [1] : vector<34x34xf32> to vector<34xf32>
    %101 = vector.shape_cast %100 : vector<34xf32> to vector<34x1xf32>
    %102 = vector.broadcast %101 : vector<34x1xf32> to vector<34x34xf32>
    %103 = arith.subf %99, %102 : vector<34x34xf32>
    %104 = math.exp %103 : vector<34x34xf32>
    %cst_43 = arith.constant dense<0.000000e+00> : vector<34xf32>
    %105 = vector.multi_reduction <add>, %104, %cst_43 [1] : vector<34x34xf32> to vector<34xf32>
    %106 = vector.shape_cast %105 : vector<34xf32> to vector<34x1xf32>
    %107 = tpu.reciprocal %106 {approx = true} : vector<34x1xf32> -> vector<34x1xf32>
    %108 = vector.broadcast %107 : vector<34x1xf32> to vector<34x34xf32>
    %109 = arith.mulf %104, %108 : vector<34x34xf32>
    %cst_44 = arith.constant dense<0.000000e+00> : vector<34x8xf32>
    %110 = tpu.matmul %109, %97, %cst_44 {dimension_numbers = #tpu.dot_dimension_numbers<[1], [0], [0], [1], [0, 0, 1, 1], [], []>} : vector<34x34xf32>, vector<34x8xf32>, vector<34x8xf32> -> vector<34x8xf32>
    %c0_45 = arith.constant 0 : index
    %c24 = arith.constant 24 : index
    %111 = vector.load %arg23[%c0_45, %c24] : memref<34x32xf32, #tpu.memory_space<vmem>>, vector<34x8xf32>
    tpu.vector_store %arg23[%c0_45, %c24], %110 {strides = array<i32>} : memref<34x32xf32, #tpu.memory_space<vmem>>, vector<34x8xf32>,
    %c0_46 = arith.constant 0 : index
    %c0_47 = arith.constant 0 : index
    %112 = vector.load %arg23[%c0_46, %c0_47] : memref<34x32xf32, #tpu.memory_space<vmem>>, vector<34x32xf32>
    %c0_48 = arith.constant 0 : index
    %c0_49 = arith.constant 0 : index
    %c0_50 = arith.constant 0 : index
    %113 = vector.load %arg8[%c0_48, %c0_49, %c0_50] : memref<1x32x32xf32, #tpu.memory_space<vmem>>, vector<1x32x32xf32>
    %114 = vector.shape_cast %113 : vector<1x32x32xf32> to vector<32x32xf32>
    %cst_51 = arith.constant dense<0.000000e+00> : vector<34x32xf32>
    %115 = tpu.matmul %112, %114, %cst_51 {dimension_numbers = #tpu.dot_dimension_numbers<[1], [0], [0], [1], [0, 0, 1, 1], [], []>} : vector<34x32xf32>, vector<32x32xf32>, vector<34x32xf32> -> vector<34x32xf32>
    %116 = arith.addf %3, %115 : vector<34x32xf32>
    %c0_52 = arith.constant 0 : index
    %c0_53 = arith.constant 0 : index
    %c0_54 = arith.constant 0 : index
    %117 = vector.load %arg9[%c0_52, %c0_53, %c0_54] : memref<1x1x32xf32, #tpu.memory_space<vmem>>, vector<1x1x32xf32>
    %118 = vector.shape_cast %117 : vector<1x1x32xf32> to vector<1x32xf32>
    %119 = vector.broadcast %118 : vector<1x32xf32> to vector<34x32xf32>
    %120 = arith.addf %116, %119 : vector<34x32xf32>
    %c0_55 = arith.constant 0 : index
    %c0_56 = arith.constant 0 : index
    %c0_57 = arith.constant 0 : index
    %121 = vector.load %arg10[%c0_55, %c0_56, %c0_57] : memref<1x1x32xf32, #tpu.memory_space<vmem>>, vector<1x1x32xf32>
    %122 = vector.shape_cast %121 : vector<1x1x32xf32> to vector<1x32xf32>
    %c0_58 = arith.constant 0 : index
    %c0_59 = arith.constant 0 : index
    %c0_60 = arith.constant 0 : index
    %123 = vector.load %arg11[%c0_58, %c0_59, %c0_60] : memref<1x1x32xf32, #tpu.memory_space<vmem>>, vector<1x1x32xf32>
    %124 = vector.shape_cast %123 : vector<1x1x32xf32> to vector<1x32xf32>
    %cst_61 = arith.constant dense<0.000000e+00> : vector<34xf32>
    %125 = vector.multi_reduction <add>, %120, %cst_61 [1] : vector<34x32xf32> to vector<34xf32>
    %126 = vector.shape_cast %125 : vector<34xf32> to vector<34x1xf32>
    %cst_62 = arith.constant 3.200000e+01 : f32
    %127 = vector.broadcast %cst_62 : f32 to vector<34x1xf32>
    %128 = arith.divf %126, %127 : vector<34x1xf32>
    %129 = vector.broadcast %128 : vector<34x1xf32> to vector<34x32xf32>
    %130 = arith.subf %120, %129 : vector<34x32xf32>
    %131 = arith.mulf %130, %130 : vector<34x32xf32>
    %cst_63 = arith.constant dense<0.000000e+00> : vector<34xf32>
    %132 = vector.multi_reduction <add>, %131, %cst_63 [1] : vector<34x32xf32> to vector<34xf32>
    %133 = vector.shape_cast %132 : vector<34xf32> to vector<34x1xf32>
    %cst_64 = arith.constant 3.200000e+01 : f32
    %134 = vector.broadcast %cst_64 : f32 to vector<34x1xf32>
    %135 = arith.divf %133, %134 : vector<34x1xf32>
    %cst_65 = arith.constant 9.99999974E-6 : f32
    %136 = vector.broadcast %cst_65 : f32 to vector<34x1xf32>
    %137 = arith.addf %135, %136 : vector<34x1xf32>
    %138 = math.rsqrt %137 : vector<34x1xf32>
    %139 = vector.broadcast %138 : vector<34x1xf32> to vector<34x32xf32>
    %140 = arith.mulf %130, %139 : vector<34x32xf32>
    %141 = vector.broadcast %122 : vector<1x32xf32> to vector<34x32xf32>
    %142 = arith.mulf %140, %141 : vector<34x32xf32>
    %143 = vector.broadcast %124 : vector<1x32xf32> to vector<34x32xf32>
    %144 = arith.addf %142, %143 : vector<34x32xf32>
    %c0_66 = arith.constant 0 : index
    %c0_67 = arith.constant 0 : index
    %c0_68 = arith.constant 0 : index
    %145 = vector.load %arg12[%c0_66, %c0_67, %c0_68] : memref<1x32x128xf32, #tpu.memory_space<vmem>>, vector<1x32x128xf32>
    %146 = vector.shape_cast %145 : vector<1x32x128xf32> to vector<32x128xf32>
    %cst_69 = arith.constant dense<0.000000e+00> : vector<34x128xf32>
    %147 = tpu.matmul %144, %146, %cst_69 {dimension_numbers = #tpu.dot_dimension_numbers<[1], [0], [0], [1], [0, 0, 1, 1], [], []>} : vector<34x32xf32>, vector<32x128xf32>, vector<34x128xf32> -> vector<34x128xf32>
    %c0_70 = arith.constant 0 : index
    %c0_71 = arith.constant 0 : index
    %c0_72 = arith.constant 0 : index
    %148 = vector.load %arg13[%c0_70, %c0_71, %c0_72] : memref<1x1x128xf32, #tpu.memory_space<vmem>>, vector<1x1x128xf32>
    %149 = vector.shape_cast %148 : vector<1x1x128xf32> to vector<1x128xf32>
    %150 = vector.broadcast %149 : vector<1x128xf32> to vector<34x128xf32>
    %151 = arith.addf %147, %150 : vector<34x128xf32>
    %152 = arith.mulf %151, %151 : vector<34x128xf32>
    %153 = arith.mulf %151, %152 : vector<34x128xf32>
    %cst_73 = arith.constant 4.471500e-02 : f32
    %154 = vector.broadcast %cst_73 : f32 to vector<34x128xf32>
    %155 = arith.mulf %154, %153 : vector<34x128xf32>
    %156 = arith.addf %151, %155 : vector<34x128xf32>
    %cst_74 = arith.constant 0.797884583 : f32
    %157 = vector.broadcast %cst_74 : f32 to vector<34x128xf32>
    %158 = arith.mulf %157, %156 : vector<34x128xf32>
    %159 = math.tanh %158 : vector<34x128xf32>
    %cst_75 = arith.constant 1.000000e+00 : f32
    %160 = vector.broadcast %cst_75 : f32 to vector<34x128xf32>
    %161 = arith.addf %160, %159 : vector<34x128xf32>
    %cst_76 = arith.constant 5.000000e-01 : f32
    %162 = vector.broadcast %cst_76 : f32 to vector<34x128xf32>
    %163 = arith.mulf %162, %161 : vector<34x128xf32>
    %164 = arith.mulf %151, %163 : vector<34x128xf32>
    %c0_77 = arith.constant 0 : index
    %c0_78 = arith.constant 0 : index
    %c0_79 = arith.constant 0 : index
    %165 = vector.load %arg14[%c0_77, %c0_78, %c0_79] : memref<1x128x32xf32, #tpu.memory_space<vmem>>, vector<1x128x32xf32>
    %166 = vector.shape_cast %165 : vector<1x128x32xf32> to vector<128x32xf32>
    %cst_80 = arith.constant dense<0.000000e+00> : vector<34x32xf32>
    %167 = tpu.matmul %164, %166, %cst_80 {dimension_numbers = #tpu.dot_dimension_numbers<[1], [0], [0], [1], [0, 0, 1, 1], [], []>} : vector<34x128xf32>, vector<128x32xf32>, vector<34x32xf32> -> vector<34x32xf32>
    %c0_81 = arith.constant 0 : index
    %c0_82 = arith.constant 0 : index
    %c0_83 = arith.constant 0 : index
    %168 = vector.load %arg15[%c0_81, %c0_82, %c0_83] : memref<1x1x32xf32, #tpu.memory_space<vmem>>, vector<1x1x32xf32>
    %169 = vector.shape_cast %168 : vector<1x1x32xf32> to vector<1x32xf32>
    %170 = vector.broadcast %169 : vector<1x32xf32> to vector<34x32xf32>
    %171 = arith.addf %167, %170 : vector<34x32xf32>
    %172 = arith.addf %120, %171 : vector<34x32xf32>
    %c0_84 = arith.constant 0 : index
    %c0_85 = arith.constant 0 : index
    %173 = vector.load %arg22[%c0_84, %c0_85] : memref<34x32xf32, #tpu.memory_space<vmem>>, vector<34x32xf32>
    tpu.vector_store %arg22[%c0_84, %c0_85], %172 {strides = array<i32>} : memref<34x32xf32, #tpu.memory_space<vmem>>, vector<34x32xf32>,
    %c1_i32 = arith.constant 1 : i32
    %174 = arith.cmpi eq, %arg0, %c1_i32 : i32
    %175 = arith.extui %174 : i1 to i32
    %c0_i32_86 = arith.constant 0 : i32
    %176 = arith.cmpi ne, %175, %c0_i32_86 : i32
    scf.if %176 {
      %c0_87 = arith.constant 0 : index
      %c0_88 = arith.constant 0 : index
      %177 = vector.load %arg16[%c0_87, %c0_88] : memref<1x32xf32, #tpu.memory_space<vmem>>, vector<1x32xf32>
      %c0_89 = arith.constant 0 : index
      %c0_90 = arith.constant 0 : index
      %178 = vector.load %arg17[%c0_89, %c0_90] : memref<1x32xf32, #tpu.memory_space<vmem>>, vector<1x32xf32>
      %cst_91 = arith.constant dense<0.000000e+00> : vector<34xf32>
      %179 = vector.multi_reduction <add>, %172, %cst_91 [1] : vector<34x32xf32> to vector<34xf32>
      %180 = vector.shape_cast %179 : vector<34xf32> to vector<34x1xf32>
      %cst_92 = arith.constant 3.200000e+01 : f32
      %181 = vector.broadcast %cst_92 : f32 to vector<34x1xf32>
      %182 = arith.divf %180, %181 : vector<34x1xf32>
      %183 = vector.broadcast %182 : vector<34x1xf32> to vector<34x32xf32>
      %184 = arith.subf %172, %183 : vector<34x32xf32>
      %185 = arith.mulf %184, %184 : vector<34x32xf32>
      %cst_93 = arith.constant dense<0.000000e+00> : vector<34xf32>
      %186 = vector.multi_reduction <add>, %185, %cst_93 [1] : vector<34x32xf32> to vector<34xf32>
      %187 = vector.shape_cast %186 : vector<34xf32> to vector<34x1xf32>
      %cst_94 = arith.constant 3.200000e+01 : f32
      %188 = vector.broadcast %cst_94 : f32 to vector<34x1xf32>
      %189 = arith.divf %187, %188 : vector<34x1xf32>
      %cst_95 = arith.constant 9.99999974E-6 : f32
      %190 = vector.broadcast %cst_95 : f32 to vector<34x1xf32>
      %191 = arith.addf %189, %190 : vector<34x1xf32>
      %192 = math.rsqrt %191 : vector<34x1xf32>
      %193 = vector.broadcast %192 : vector<34x1xf32> to vector<34x32xf32>
      %194 = arith.mulf %184, %193 : vector<34x32xf32>
      %195 = vector.broadcast %177 : vector<1x32xf32> to vector<34x32xf32>
      %196 = arith.mulf %194, %195 : vector<34x32xf32>
      %197 = vector.broadcast %178 : vector<1x32xf32> to vector<34x32xf32>
      %198 = arith.addf %196, %197 : vector<34x32xf32>
      %c0_96 = arith.constant 0 : index
      %c0_97 = arith.constant 0 : index
      %199 = vector.load %arg18[%c0_96, %c0_97] : memref<2x34xf32, #tpu.memory_space<vmem>>, vector<2x34xf32>
      %cst_98 = arith.constant dense<0.000000e+00> : vector<2x32xf32>
      %200 = tpu.matmul %199, %198, %cst_98 {dimension_numbers = #tpu.dot_dimension_numbers<[1], [0], [0], [1], [0, 0, 1, 1], [], []>} : vector<2x34xf32>, vector<34x32xf32>, vector<2x32xf32> -> vector<2x32xf32>
      %c0_99 = arith.constant 0 : index
      %c0_100 = arith.constant 0 : index
      %201 = vector.load %arg19[%c0_99, %c0_100] : memref<32x32xf32, #tpu.memory_space<vmem>>, vector<32x32xf32>
      %cst_101 = arith.constant dense<0.000000e+00> : vector<2x32xf32>
      %202 = tpu.matmul %200, %201, %cst_101 {dimension_numbers = #tpu.dot_dimension_numbers<[1], [0], [0], [1], [0, 0, 1, 1], [], []>} : vector<2x32xf32>, vector<32x32xf32>, vector<2x32xf32> -> vector<2x32xf32>
      %c0_102 = arith.constant 0 : index
      %c0_103 = arith.constant 0 : index
      %203 = vector.load %arg20[%c0_102, %c0_103] : memref<1x32xf32, #tpu.memory_space<vmem>>, vector<1x32xf32>
      %204 = vector.broadcast %203 : vector<1x32xf32> to vector<2x32xf32>
      %205 = arith.addf %202, %204 : vector<2x32xf32>
      %206 = arith.mulf %205, %205 : vector<2x32xf32>
      %cst_104 = arith.constant dense<0.000000e+00> : vector<2xf32>
      %207 = vector.multi_reduction <add>, %206, %cst_104 [1] : vector<2x32xf32> to vector<2xf32>
      %208 = vector.shape_cast %207 : vector<2xf32> to vector<2x1xf32>
      %209 = math.rsqrt %208 : vector<2x1xf32>
      %210 = vector.broadcast %209 : vector<2x1xf32> to vector<2x32xf32>
      %211 = arith.mulf %205, %210 : vector<2x32xf32>
      %c0_105 = arith.constant 0 : index
      %c0_106 = arith.constant 0 : index
      %212 = vector.load %arg21[%c0_105, %c0_106] : memref<2x32xf32, #tpu.memory_space<vmem>>, vector<2x32xf32>
      tpu.vector_store %arg21[%c0_105, %c0_106], %211 {strides = array<i32>} : memref<2x32xf32, #tpu.memory_space<vmem>>, vector<2x32xf32>,
    } else {
    }
    return
  }
  func.func @transform_0(%arg0: i32) -> (i32, i32) {
    %c0_i32 = arith.constant 0 : i32
    %c0_i32_0 = arith.constant 0 : i32
    %c0_i32_1 = arith.constant 0 : i32
    return %c0_i32, %c0_i32_0 : i32, i32
  }
  func.func @transform_1(%arg0: i32) -> (i32, i32) {
    %c0_i32 = arith.constant 0 : i32
    %c0_i32_0 = arith.constant 0 : i32
    %c0_i32_1 = arith.constant 0 : i32
    return %c0_i32, %c0_i32_0 : i32, i32
  }
  func.func @transform_2(%arg0: i32) -> (i32, i32) {
    %c0_i32 = arith.constant 0 : i32
    %c0_i32_0 = arith.constant 0 : i32
    %c0_i32_1 = arith.constant 0 : i32
    return %c0_i32, %c0_i32_0 : i32, i32
  }
  func.func @transform_3(%arg0: i32) -> (i32, i32, i32) {
    %c0_i32 = arith.constant 0 : i32
    %c0_i32_0 = arith.constant 0 : i32
    %c0_i32_1 = arith.constant 0 : i32
    return %arg0, %c0_i32, %c0_i32_0 : i32, i32, i32
  }
  func.func @transform_4(%arg0: i32) -> (i32, i32, i32) {
    %c0_i32 = arith.constant 0 : i32
    %c0_i32_0 = arith.constant 0 : i32
    %c0_i32_1 = arith.constant 0 : i32
    return %arg0, %c0_i32, %c0_i32_0 : i32, i32, i32
  }
  func.func @transform_5(%arg0: i32) -> (i32, i32, i32) {
    %c0_i32 = arith.constant 0 : i32
    %c0_i32_0 = arith.constant 0 : i32
    %c0_i32_1 = arith.constant 0 : i32
    return %arg0, %c0_i32, %c0_i32_0 : i32, i32, i32
  }
  func.func @transform_6(%arg0: i32) -> (i32, i32, i32) {
    %c0_i32 = arith.constant 0 : i32
    %c0_i32_0 = arith.constant 0 : i32
    %c0_i32_1 = arith.constant 0 : i32
    return %arg0, %c0_i32, %c0_i32_0 : i32, i32, i32
  }
  func.func @transform_7(%arg0: i32) -> (i32, i32, i32) {
    %c0_i32 = arith.constant 0 : i32
    %c0_i32_0 = arith.constant 0 : i32
    %c0_i32_1 = arith.constant 0 : i32
    return %arg0, %c0_i32, %c0_i32_0 : i32, i32, i32
  }
  func.func @transform_8(%arg0: i32) -> (i32, i32, i32) {
    %c0_i32 = arith.constant 0 : i32
    %c0_i32_0 = arith.constant 0 : i32
    %c0_i32_1 = arith.constant 0 : i32
    return %arg0, %c0_i32, %c0_i32_0 : i32, i32, i32
  }
  func.func @transform_9(%arg0: i32) -> (i32, i32, i32) {
    %c0_i32 = arith.constant 0 : i32
    %c0_i32_0 = arith.constant 0 : i32
    %c0_i32_1 = arith.constant 0 : i32
    return %arg0, %c0_i32, %c0_i32_0 : i32, i32, i32
  }
  func.func @transform_10(%arg0: i32) -> (i32, i32, i32) {
    %c0_i32 = arith.constant 0 : i32
    %c0_i32_0 = arith.constant 0 : i32
    %c0_i32_1 = arith.constant 0 : i32
    return %arg0, %c0_i32, %c0_i32_0 : i32, i32, i32
  }
  func.func @transform_11(%arg0: i32) -> (i32, i32, i32) {
    %c0_i32 = arith.constant 0 : i32
    %c0_i32_0 = arith.constant 0 : i32
    %c0_i32_1 = arith.constant 0 : i32
    return %arg0, %c0_i32, %c0_i32_0 : i32, i32, i32
  }
  func.func @transform_12(%arg0: i32) -> (i32, i32, i32) {
    %c0_i32 = arith.constant 0 : i32
    %c0_i32_0 = arith.constant 0 : i32
    %c0_i32_1 = arith.constant 0 : i32
    return %arg0, %c0_i32, %c0_i32_0 : i32, i32, i32
  }
  func.func @transform_13(%arg0: i32) -> (i32, i32, i32) {
    %c0_i32 = arith.constant 0 : i32
    %c0_i32_0 = arith.constant 0 : i32
    %c0_i32_1 = arith.constant 0 : i32
    return %arg0, %c0_i32, %c0_i32_0 : i32, i32, i32
  }
  func.func @transform_14(%arg0: i32) -> (i32, i32, i32) {
    %c0_i32 = arith.constant 0 : i32
    %c0_i32_0 = arith.constant 0 : i32
    %c0_i32_1 = arith.constant 0 : i32
    return %arg0, %c0_i32, %c0_i32_0 : i32, i32, i32
  }
  func.func @transform_15(%arg0: i32) -> (i32, i32) {
    %c0_i32 = arith.constant 0 : i32
    %c0_i32_0 = arith.constant 0 : i32
    %c0_i32_1 = arith.constant 0 : i32
    return %c0_i32, %c0_i32_0 : i32, i32
  }
  func.func @transform_16(%arg0: i32) -> (i32, i32) {
    %c0_i32 = arith.constant 0 : i32
    %c0_i32_0 = arith.constant 0 : i32
    %c0_i32_1 = arith.constant 0 : i32
    return %c0_i32, %c0_i32_0 : i32, i32
  }
  func.func @transform_17(%arg0: i32) -> (i32, i32) {
    %c0_i32 = arith.constant 0 : i32
    %c0_i32_0 = arith.constant 0 : i32
    %c0_i32_1 = arith.constant 0 : i32
    return %c0_i32, %c0_i32_0 : i32, i32
  }
  func.func @transform_18(%arg0: i32) -> (i32, i32) {
    %c0_i32 = arith.constant 0 : i32
    %c0_i32_0 = arith.constant 0 : i32
    %c0_i32_1 = arith.constant 0 : i32
    return %c0_i32, %c0_i32_0 : i32, i32
  }
  func.func @transform_19(%arg0: i32) -> (i32, i32) {
    %c0_i32 = arith.constant 0 : i32
    %c0_i32_0 = arith.constant 0 : i32
    %c0_i32_1 = arith.constant 0 : i32
    return %c0_i32, %c0_i32_0 : i32, i32
  }
  func.func @transform_20(%arg0: i32) -> (i32, i32) {
    %c0_i32 = arith.constant 0 : i32
    %c0_i32_0 = arith.constant 0 : i32
    %c0_i32_1 = arith.constant 0 : i32
    return %c0_i32, %c0_i32_0 : i32, i32
  }
}

module attributes {stable_mosaic.version = 11 : i64} {
  func.func @_encoder_kernel(%arg0: i32, %arg1: memref<16x32xf32, #tpu.memory_space<vmem>>, %arg2: memref<16x32xf32, #tpu.memory_space<vmem>>, %arg3: memref<1x1x32xf32, #tpu.memory_space<vmem>>, %arg4: memref<1x1x32xf32, #tpu.memory_space<vmem>>, %arg5: memref<1x32x96xf32, #tpu.memory_space<vmem>>, %arg6: memref<1x1x96xf32, #tpu.memory_space<vmem>>, %arg7: memref<1x32x32xf32, #tpu.memory_space<vmem>>, %arg8: memref<1x1x32xf32, #tpu.memory_space<vmem>>, %arg9: memref<1x1x32xf32, #tpu.memory_space<vmem>>, %arg10: memref<1x1x32xf32, #tpu.memory_space<vmem>>, %arg11: memref<1x32x128xf32, #tpu.memory_space<vmem>>, %arg12: memref<1x1x128xf32, #tpu.memory_space<vmem>>, %arg13: memref<1x128x32xf32, #tpu.memory_space<vmem>>, %arg14: memref<1x1x32xf32, #tpu.memory_space<vmem>>, %arg15: memref<1x32xf32, #tpu.memory_space<vmem>>, %arg16: memref<1x32xf32, #tpu.memory_space<vmem>>, %arg17: memref<2x16xf32, #tpu.memory_space<vmem>>, %arg18: memref<32x32xf32, #tpu.memory_space<vmem>>, %arg19: memref<1x32xf32, #tpu.memory_space<vmem>>, %arg20: memref<2x32xf32, #tpu.memory_space<vmem>>, %arg21: memref<16x32xf32, #tpu.memory_space<vmem>>, %arg22: memref<16x32xf32, #tpu.memory_space<vmem>>, %arg23: memref<16x16xf32, #tpu.memory_space<vmem>>) attributes {dimension_semantics = [#tpu.dimension_semantics<arbitrary>], iteration_bounds = array<i64: 2>, scalar_prefetch = 0 : i64, scratch_operands = 3 : i64, tpu.core_type = #tpu.core_type<tc>, window_params = [{pipeline_mode = #tpu.pipeline_mode<synchronous>, transform_indices = @transform_0, window_bounds = array<i64: 16, 32>}, {pipeline_mode = #tpu.pipeline_mode<synchronous>, transform_indices = @transform_1, window_bounds = array<i64: 16, 32>}, {transform_indices = @transform_2, window_bounds = array<i64: 1, 1, 32>}, {transform_indices = @transform_3, window_bounds = array<i64: 1, 1, 32>}, {transform_indices = @transform_4, window_bounds = array<i64: 1, 32, 96>}, {transform_indices = @transform_5, window_bounds = array<i64: 1, 1, 96>}, {transform_indices = @transform_6, window_bounds = array<i64: 1, 32, 32>}, {transform_indices = @transform_7, window_bounds = array<i64: 1, 1, 32>}, {transform_indices = @transform_8, window_bounds = array<i64: 1, 1, 32>}, {transform_indices = @transform_9, window_bounds = array<i64: 1, 1, 32>}, {transform_indices = @transform_10, window_bounds = array<i64: 1, 32, 128>}, {transform_indices = @transform_11, window_bounds = array<i64: 1, 1, 128>}, {transform_indices = @transform_12, window_bounds = array<i64: 1, 128, 32>}, {transform_indices = @transform_13, window_bounds = array<i64: 1, 1, 32>}, {pipeline_mode = #tpu.pipeline_mode<synchronous>, transform_indices = @transform_14, window_bounds = array<i64: 1, 32>}, {pipeline_mode = #tpu.pipeline_mode<synchronous>, transform_indices = @transform_15, window_bounds = array<i64: 1, 32>}, {pipeline_mode = #tpu.pipeline_mode<synchronous>, transform_indices = @transform_16, window_bounds = array<i64: 2, 16>}, {pipeline_mode = #tpu.pipeline_mode<synchronous>, transform_indices = @transform_17, window_bounds = array<i64: 32, 32>}, {pipeline_mode = #tpu.pipeline_mode<synchronous>, transform_indices = @transform_18, window_bounds = array<i64: 1, 32>}, {pipeline_mode = #tpu.pipeline_mode<synchronous>, transform_indices = @transform_19, window_bounds = array<i64: 2, 32>}]} {
    %c0_i32 = arith.constant 0 : i32
    %0 = arith.cmpi eq, %arg0, %c0_i32 : i32
    %1 = arith.extui %0 : i1 to i32
    %c0_i32_0 = arith.constant 0 : i32
    %2 = arith.cmpi ne, %1, %c0_i32_0 : i32
    scf.if %2 {
      %c0_87 = arith.constant 0 : index
      %c0_88 = arith.constant 0 : index
      %177 = vector.load %arg1[%c0_87, %c0_88] : memref<16x32xf32, #tpu.memory_space<vmem>>, vector<16x32xf32>
      %c0_89 = arith.constant 0 : index
      %c0_90 = arith.constant 0 : index
      %178 = vector.load %arg2[%c0_89, %c0_90] : memref<16x32xf32, #tpu.memory_space<vmem>>, vector<16x32xf32>
      %179 = arith.addf %177, %178 : vector<16x32xf32>
      %c0_91 = arith.constant 0 : index
      %c0_92 = arith.constant 0 : index
      %180 = vector.load %arg21[%c0_91, %c0_92] : memref<16x32xf32, #tpu.memory_space<vmem>>, vector<16x32xf32>
      tpu.vector_store %arg21[%c0_91, %c0_92], %179 {strides = array<i32>} : memref<16x32xf32, #tpu.memory_space<vmem>>, vector<16x32xf32>,
      %181 = tpu.iota {dimensions = array<i32: 0>} : vector<16x16xi32>
      %182 = tpu.iota {dimensions = array<i32: 1>} : vector<16x16xi32>
      %c0_i32_93 = arith.constant 0 : i32
      %183 = vector.broadcast %c0_i32_93 : i32 to vector<16x16xi32>
      %184 = arith.cmpi sge, %181, %183 : vector<16x16xi32>
      %c8_i32 = arith.constant 8 : i32
      %185 = vector.broadcast %c8_i32 : i32 to vector<16x16xi32>
      %186 = arith.cmpi slt, %181, %185 : vector<16x16xi32>
      %187 = arith.andi %184, %186 : vector<16x16xi1>
      %c0_i32_94 = arith.constant 0 : i32
      %188 = vector.broadcast %c0_i32_94 : i32 to vector<16x16xi32>
      %189 = arith.cmpi sge, %182, %188 : vector<16x16xi32>
      %190 = arith.andi %187, %189 : vector<16x16xi1>
      %c8_i32_95 = arith.constant 8 : i32
      %191 = vector.broadcast %c8_i32_95 : i32 to vector<16x16xi32>
      %192 = arith.cmpi slt, %182, %191 : vector<16x16xi32>
      %193 = arith.andi %190, %192 : vector<16x16xi1>
      %c8_i32_96 = arith.constant 8 : i32
      %194 = vector.broadcast %c8_i32_96 : i32 to vector<16x16xi32>
      %195 = arith.cmpi sge, %181, %194 : vector<16x16xi32>
      %c16_i32 = arith.constant 16 : i32
      %196 = vector.broadcast %c16_i32 : i32 to vector<16x16xi32>
      %197 = arith.cmpi slt, %181, %196 : vector<16x16xi32>
      %198 = arith.andi %195, %197 : vector<16x16xi1>
      %c8_i32_97 = arith.constant 8 : i32
      %199 = vector.broadcast %c8_i32_97 : i32 to vector<16x16xi32>
      %200 = arith.cmpi sge, %182, %199 : vector<16x16xi32>
      %201 = arith.andi %198, %200 : vector<16x16xi1>
      %c16_i32_98 = arith.constant 16 : i32
      %202 = vector.broadcast %c16_i32_98 : i32 to vector<16x16xi32>
      %203 = arith.cmpi slt, %182, %202 : vector<16x16xi32>
      %204 = arith.andi %201, %203 : vector<16x16xi1>
      %205 = arith.ori %193, %204 : vector<16x16xi1>
      %206 = arith.cmpi sle, %182, %181 : vector<16x16xi32>
      %207 = arith.andi %205, %206 : vector<16x16xi1>
      %cst_99 = arith.constant 0.000000e+00 : f32
      %cst_100 = arith.constant -1.000000e+30 : f32
      %208 = vector.broadcast %cst_99 : f32 to vector<16x16xf32>
      %209 = vector.broadcast %cst_100 : f32 to vector<16x16xf32>
      %210 = arith.select %207, %208, %209 : vector<16x16xi1>, vector<16x16xf32>
      %c0_101 = arith.constant 0 : index
      %c0_102 = arith.constant 0 : index
      %211 = vector.load %arg23[%c0_101, %c0_102] : memref<16x16xf32, #tpu.memory_space<vmem>>, vector<16x16xf32>
      tpu.vector_store %arg23[%c0_101, %c0_102], %210 {strides = array<i32>} : memref<16x16xf32, #tpu.memory_space<vmem>>, vector<16x16xf32>,
    } else {
    }
    %c0 = arith.constant 0 : index
    %c0_1 = arith.constant 0 : index
    %3 = vector.load %arg21[%c0, %c0_1] : memref<16x32xf32, #tpu.memory_space<vmem>>, vector<16x32xf32>
    %c0_2 = arith.constant 0 : index
    %c0_3 = arith.constant 0 : index
    %4 = vector.load %arg23[%c0_2, %c0_3] : memref<16x16xf32, #tpu.memory_space<vmem>>, vector<16x16xf32>
    %c0_4 = arith.constant 0 : index
    %c0_5 = arith.constant 0 : index
    %c0_6 = arith.constant 0 : index
    %5 = vector.load %arg3[%c0_4, %c0_5, %c0_6] : memref<1x1x32xf32, #tpu.memory_space<vmem>>, vector<1x1x32xf32>
    %6 = vector.shape_cast %5 : vector<1x1x32xf32> to vector<1x32xf32>
    %c0_7 = arith.constant 0 : index
    %c0_8 = arith.constant 0 : index
    %c0_9 = arith.constant 0 : index
    %7 = vector.load %arg4[%c0_7, %c0_8, %c0_9] : memref<1x1x32xf32, #tpu.memory_space<vmem>>, vector<1x1x32xf32>
    %8 = vector.shape_cast %7 : vector<1x1x32xf32> to vector<1x32xf32>
    %cst = arith.constant dense<0.000000e+00> : vector<16xf32>
    %9 = vector.multi_reduction <add>, %3, %cst [1] : vector<16x32xf32> to vector<16xf32>
    %10 = vector.shape_cast %9 : vector<16xf32> to vector<16x1xf32>
    %cst_10 = arith.constant 3.200000e+01 : f32
    %11 = vector.broadcast %cst_10 : f32 to vector<16x1xf32>
    %12 = arith.divf %10, %11 : vector<16x1xf32>
    %13 = vector.broadcast %12 : vector<16x1xf32> to vector<16x32xf32>
    %14 = arith.subf %3, %13 : vector<16x32xf32>
    %15 = arith.mulf %14, %14 : vector<16x32xf32>
    %cst_11 = arith.constant dense<0.000000e+00> : vector<16xf32>
    %16 = vector.multi_reduction <add>, %15, %cst_11 [1] : vector<16x32xf32> to vector<16xf32>
    %17 = vector.shape_cast %16 : vector<16xf32> to vector<16x1xf32>
    %cst_12 = arith.constant 3.200000e+01 : f32
    %18 = vector.broadcast %cst_12 : f32 to vector<16x1xf32>
    %19 = arith.divf %17, %18 : vector<16x1xf32>
    %cst_13 = arith.constant 9.99999974E-6 : f32
    %20 = vector.broadcast %cst_13 : f32 to vector<16x1xf32>
    %21 = arith.addf %19, %20 : vector<16x1xf32>
    %22 = math.rsqrt %21 : vector<16x1xf32>
    %23 = vector.broadcast %22 : vector<16x1xf32> to vector<16x32xf32>
    %24 = arith.mulf %14, %23 : vector<16x32xf32>
    %25 = vector.broadcast %6 : vector<1x32xf32> to vector<16x32xf32>
    %26 = arith.mulf %24, %25 : vector<16x32xf32>
    %27 = vector.broadcast %8 : vector<1x32xf32> to vector<16x32xf32>
    %28 = arith.addf %26, %27 : vector<16x32xf32>
    %c0_14 = arith.constant 0 : index
    %c0_15 = arith.constant 0 : index
    %c0_16 = arith.constant 0 : index
    %29 = vector.load %arg5[%c0_14, %c0_15, %c0_16] : memref<1x32x96xf32, #tpu.memory_space<vmem>>, vector<1x32x96xf32>
    %30 = vector.shape_cast %29 : vector<1x32x96xf32> to vector<32x96xf32>
    %cst_17 = arith.constant dense<0.000000e+00> : vector<16x96xf32>
    %31 = tpu.matmul %28, %30, %cst_17 {dimension_numbers = #tpu.dot_dimension_numbers<[1], [0], [0], [1], [0, 0, 1, 1], [], []>} : vector<16x32xf32>, vector<32x96xf32>, vector<16x96xf32> -> vector<16x96xf32>
    %c0_18 = arith.constant 0 : index
    %c0_19 = arith.constant 0 : index
    %c0_20 = arith.constant 0 : index
    %32 = vector.load %arg6[%c0_18, %c0_19, %c0_20] : memref<1x1x96xf32, #tpu.memory_space<vmem>>, vector<1x1x96xf32>
    %33 = vector.shape_cast %32 : vector<1x1x96xf32> to vector<1x96xf32>
    %34 = vector.broadcast %33 : vector<1x96xf32> to vector<16x96xf32>
    %35 = arith.addf %31, %34 : vector<16x96xf32>
    %36 = vector.extract_strided_slice %35 {offsets = [0, 0], sizes = [16, 8], strides = [1, 1]} : vector<16x96xf32> to vector<16x8xf32>
    %cst_21 = arith.constant 0.353553385 : f32
    %37 = vector.broadcast %cst_21 : f32 to vector<16x8xf32>
    %38 = arith.mulf %36, %37 : vector<16x8xf32>
    %39 = vector.extract_strided_slice %35 {offsets = [0, 32], sizes = [16, 8], strides = [1, 1]} : vector<16x96xf32> to vector<16x8xf32>
    %40 = vector.extract_strided_slice %35 {offsets = [0, 64], sizes = [16, 8], strides = [1, 1]} : vector<16x96xf32> to vector<16x8xf32>
    %cst_22 = arith.constant dense<0.000000e+00> : vector<16x16xf32>
    %41 = tpu.matmul %38, %39, %cst_22 {dimension_numbers = #tpu.dot_dimension_numbers<[1], [1], [0], [0], [0, 0, 1, 0], [], []>} : vector<16x8xf32>, vector<16x8xf32>, vector<16x16xf32> -> vector<16x16xf32>
    %42 = arith.addf %41, %4 : vector<16x16xf32>
    %cst_23 = arith.constant dense<0xFF800000> : vector<16xf32>
    %43 = vector.multi_reduction <maximumf>, %42, %cst_23 [1] : vector<16x16xf32> to vector<16xf32>
    %44 = vector.shape_cast %43 : vector<16xf32> to vector<16x1xf32>
    %45 = vector.broadcast %44 : vector<16x1xf32> to vector<16x16xf32>
    %46 = arith.subf %42, %45 : vector<16x16xf32>
    %47 = math.exp %46 : vector<16x16xf32>
    %cst_24 = arith.constant dense<0.000000e+00> : vector<16xf32>
    %48 = vector.multi_reduction <add>, %47, %cst_24 [1] : vector<16x16xf32> to vector<16xf32>
    %49 = vector.shape_cast %48 : vector<16xf32> to vector<16x1xf32>
    %50 = tpu.reciprocal %49 {approx = true} : vector<16x1xf32> -> vector<16x1xf32>
    %51 = vector.broadcast %50 : vector<16x1xf32> to vector<16x16xf32>
    %52 = arith.mulf %47, %51 : vector<16x16xf32>
    %cst_25 = arith.constant dense<0.000000e+00> : vector<16x8xf32>
    %53 = tpu.matmul %52, %40, %cst_25 {dimension_numbers = #tpu.dot_dimension_numbers<[1], [0], [0], [1], [0, 0, 1, 1], [], []>} : vector<16x16xf32>, vector<16x8xf32>, vector<16x8xf32> -> vector<16x8xf32>
    %c0_26 = arith.constant 0 : index
    %c0_27 = arith.constant 0 : index
    %54 = vector.load %arg22[%c0_26, %c0_27] : memref<16x32xf32, #tpu.memory_space<vmem>>, vector<16x8xf32>
    tpu.vector_store %arg22[%c0_26, %c0_27], %53 {strides = array<i32>} : memref<16x32xf32, #tpu.memory_space<vmem>>, vector<16x8xf32>,
    %55 = vector.extract_strided_slice %35 {offsets = [0, 8], sizes = [16, 8], strides = [1, 1]} : vector<16x96xf32> to vector<16x8xf32>
    %cst_28 = arith.constant 0.353553385 : f32
    %56 = vector.broadcast %cst_28 : f32 to vector<16x8xf32>
    %57 = arith.mulf %55, %56 : vector<16x8xf32>
    %58 = vector.extract_strided_slice %35 {offsets = [0, 40], sizes = [16, 8], strides = [1, 1]} : vector<16x96xf32> to vector<16x8xf32>
    %59 = vector.extract_strided_slice %35 {offsets = [0, 72], sizes = [16, 8], strides = [1, 1]} : vector<16x96xf32> to vector<16x8xf32>
    %cst_29 = arith.constant dense<0.000000e+00> : vector<16x16xf32>
    %60 = tpu.matmul %57, %58, %cst_29 {dimension_numbers = #tpu.dot_dimension_numbers<[1], [1], [0], [0], [0, 0, 1, 0], [], []>} : vector<16x8xf32>, vector<16x8xf32>, vector<16x16xf32> -> vector<16x16xf32>
    %61 = arith.addf %60, %4 : vector<16x16xf32>
    %cst_30 = arith.constant dense<0xFF800000> : vector<16xf32>
    %62 = vector.multi_reduction <maximumf>, %61, %cst_30 [1] : vector<16x16xf32> to vector<16xf32>
    %63 = vector.shape_cast %62 : vector<16xf32> to vector<16x1xf32>
    %64 = vector.broadcast %63 : vector<16x1xf32> to vector<16x16xf32>
    %65 = arith.subf %61, %64 : vector<16x16xf32>
    %66 = math.exp %65 : vector<16x16xf32>
    %cst_31 = arith.constant dense<0.000000e+00> : vector<16xf32>
    %67 = vector.multi_reduction <add>, %66, %cst_31 [1] : vector<16x16xf32> to vector<16xf32>
    %68 = vector.shape_cast %67 : vector<16xf32> to vector<16x1xf32>
    %69 = tpu.reciprocal %68 {approx = true} : vector<16x1xf32> -> vector<16x1xf32>
    %70 = vector.broadcast %69 : vector<16x1xf32> to vector<16x16xf32>
    %71 = arith.mulf %66, %70 : vector<16x16xf32>
    %cst_32 = arith.constant dense<0.000000e+00> : vector<16x8xf32>
    %72 = tpu.matmul %71, %59, %cst_32 {dimension_numbers = #tpu.dot_dimension_numbers<[1], [0], [0], [1], [0, 0, 1, 1], [], []>} : vector<16x16xf32>, vector<16x8xf32>, vector<16x8xf32> -> vector<16x8xf32>
    %c0_33 = arith.constant 0 : index
    %c8 = arith.constant 8 : index
    %73 = vector.load %arg22[%c0_33, %c8] : memref<16x32xf32, #tpu.memory_space<vmem>>, vector<16x8xf32>
    tpu.vector_store %arg22[%c0_33, %c8], %72 {strides = array<i32>} : memref<16x32xf32, #tpu.memory_space<vmem>>, vector<16x8xf32>,
    %74 = vector.extract_strided_slice %35 {offsets = [0, 16], sizes = [16, 8], strides = [1, 1]} : vector<16x96xf32> to vector<16x8xf32>
    %cst_34 = arith.constant 0.353553385 : f32
    %75 = vector.broadcast %cst_34 : f32 to vector<16x8xf32>
    %76 = arith.mulf %74, %75 : vector<16x8xf32>
    %77 = vector.extract_strided_slice %35 {offsets = [0, 48], sizes = [16, 8], strides = [1, 1]} : vector<16x96xf32> to vector<16x8xf32>
    %78 = vector.extract_strided_slice %35 {offsets = [0, 80], sizes = [16, 8], strides = [1, 1]} : vector<16x96xf32> to vector<16x8xf32>
    %cst_35 = arith.constant dense<0.000000e+00> : vector<16x16xf32>
    %79 = tpu.matmul %76, %77, %cst_35 {dimension_numbers = #tpu.dot_dimension_numbers<[1], [1], [0], [0], [0, 0, 1, 0], [], []>} : vector<16x8xf32>, vector<16x8xf32>, vector<16x16xf32> -> vector<16x16xf32>
    %80 = arith.addf %79, %4 : vector<16x16xf32>
    %cst_36 = arith.constant dense<0xFF800000> : vector<16xf32>
    %81 = vector.multi_reduction <maximumf>, %80, %cst_36 [1] : vector<16x16xf32> to vector<16xf32>
    %82 = vector.shape_cast %81 : vector<16xf32> to vector<16x1xf32>
    %83 = vector.broadcast %82 : vector<16x1xf32> to vector<16x16xf32>
    %84 = arith.subf %80, %83 : vector<16x16xf32>
    %85 = math.exp %84 : vector<16x16xf32>
    %cst_37 = arith.constant dense<0.000000e+00> : vector<16xf32>
    %86 = vector.multi_reduction <add>, %85, %cst_37 [1] : vector<16x16xf32> to vector<16xf32>
    %87 = vector.shape_cast %86 : vector<16xf32> to vector<16x1xf32>
    %88 = tpu.reciprocal %87 {approx = true} : vector<16x1xf32> -> vector<16x1xf32>
    %89 = vector.broadcast %88 : vector<16x1xf32> to vector<16x16xf32>
    %90 = arith.mulf %85, %89 : vector<16x16xf32>
    %cst_38 = arith.constant dense<0.000000e+00> : vector<16x8xf32>
    %91 = tpu.matmul %90, %78, %cst_38 {dimension_numbers = #tpu.dot_dimension_numbers<[1], [0], [0], [1], [0, 0, 1, 1], [], []>} : vector<16x16xf32>, vector<16x8xf32>, vector<16x8xf32> -> vector<16x8xf32>
    %c0_39 = arith.constant 0 : index
    %c16 = arith.constant 16 : index
    %92 = vector.load %arg22[%c0_39, %c16] : memref<16x32xf32, #tpu.memory_space<vmem>>, vector<16x8xf32>
    tpu.vector_store %arg22[%c0_39, %c16], %91 {strides = array<i32>} : memref<16x32xf32, #tpu.memory_space<vmem>>, vector<16x8xf32>,
    %93 = vector.extract_strided_slice %35 {offsets = [0, 24], sizes = [16, 8], strides = [1, 1]} : vector<16x96xf32> to vector<16x8xf32>
    %cst_40 = arith.constant 0.353553385 : f32
    %94 = vector.broadcast %cst_40 : f32 to vector<16x8xf32>
    %95 = arith.mulf %93, %94 : vector<16x8xf32>
    %96 = vector.extract_strided_slice %35 {offsets = [0, 56], sizes = [16, 8], strides = [1, 1]} : vector<16x96xf32> to vector<16x8xf32>
    %97 = vector.extract_strided_slice %35 {offsets = [0, 88], sizes = [16, 8], strides = [1, 1]} : vector<16x96xf32> to vector<16x8xf32>
    %cst_41 = arith.constant dense<0.000000e+00> : vector<16x16xf32>
    %98 = tpu.matmul %95, %96, %cst_41 {dimension_numbers = #tpu.dot_dimension_numbers<[1], [1], [0], [0], [0, 0, 1, 0], [], []>} : vector<16x8xf32>, vector<16x8xf32>, vector<16x16xf32> -> vector<16x16xf32>
    %99 = arith.addf %98, %4 : vector<16x16xf32>
    %cst_42 = arith.constant dense<0xFF800000> : vector<16xf32>
    %100 = vector.multi_reduction <maximumf>, %99, %cst_42 [1] : vector<16x16xf32> to vector<16xf32>
    %101 = vector.shape_cast %100 : vector<16xf32> to vector<16x1xf32>
    %102 = vector.broadcast %101 : vector<16x1xf32> to vector<16x16xf32>
    %103 = arith.subf %99, %102 : vector<16x16xf32>
    %104 = math.exp %103 : vector<16x16xf32>
    %cst_43 = arith.constant dense<0.000000e+00> : vector<16xf32>
    %105 = vector.multi_reduction <add>, %104, %cst_43 [1] : vector<16x16xf32> to vector<16xf32>
    %106 = vector.shape_cast %105 : vector<16xf32> to vector<16x1xf32>
    %107 = tpu.reciprocal %106 {approx = true} : vector<16x1xf32> -> vector<16x1xf32>
    %108 = vector.broadcast %107 : vector<16x1xf32> to vector<16x16xf32>
    %109 = arith.mulf %104, %108 : vector<16x16xf32>
    %cst_44 = arith.constant dense<0.000000e+00> : vector<16x8xf32>
    %110 = tpu.matmul %109, %97, %cst_44 {dimension_numbers = #tpu.dot_dimension_numbers<[1], [0], [0], [1], [0, 0, 1, 1], [], []>} : vector<16x16xf32>, vector<16x8xf32>, vector<16x8xf32> -> vector<16x8xf32>
    %c0_45 = arith.constant 0 : index
    %c24 = arith.constant 24 : index
    %111 = vector.load %arg22[%c0_45, %c24] : memref<16x32xf32, #tpu.memory_space<vmem>>, vector<16x8xf32>
    tpu.vector_store %arg22[%c0_45, %c24], %110 {strides = array<i32>} : memref<16x32xf32, #tpu.memory_space<vmem>>, vector<16x8xf32>,
    %c0_46 = arith.constant 0 : index
    %c0_47 = arith.constant 0 : index
    %112 = vector.load %arg22[%c0_46, %c0_47] : memref<16x32xf32, #tpu.memory_space<vmem>>, vector<16x32xf32>
    %c0_48 = arith.constant 0 : index
    %c0_49 = arith.constant 0 : index
    %c0_50 = arith.constant 0 : index
    %113 = vector.load %arg7[%c0_48, %c0_49, %c0_50] : memref<1x32x32xf32, #tpu.memory_space<vmem>>, vector<1x32x32xf32>
    %114 = vector.shape_cast %113 : vector<1x32x32xf32> to vector<32x32xf32>
    %cst_51 = arith.constant dense<0.000000e+00> : vector<16x32xf32>
    %115 = tpu.matmul %112, %114, %cst_51 {dimension_numbers = #tpu.dot_dimension_numbers<[1], [0], [0], [1], [0, 0, 1, 1], [], []>} : vector<16x32xf32>, vector<32x32xf32>, vector<16x32xf32> -> vector<16x32xf32>
    %116 = arith.addf %3, %115 : vector<16x32xf32>
    %c0_52 = arith.constant 0 : index
    %c0_53 = arith.constant 0 : index
    %c0_54 = arith.constant 0 : index
    %117 = vector.load %arg8[%c0_52, %c0_53, %c0_54] : memref<1x1x32xf32, #tpu.memory_space<vmem>>, vector<1x1x32xf32>
    %118 = vector.shape_cast %117 : vector<1x1x32xf32> to vector<1x32xf32>
    %119 = vector.broadcast %118 : vector<1x32xf32> to vector<16x32xf32>
    %120 = arith.addf %116, %119 : vector<16x32xf32>
    %c0_55 = arith.constant 0 : index
    %c0_56 = arith.constant 0 : index
    %c0_57 = arith.constant 0 : index
    %121 = vector.load %arg9[%c0_55, %c0_56, %c0_57] : memref<1x1x32xf32, #tpu.memory_space<vmem>>, vector<1x1x32xf32>
    %122 = vector.shape_cast %121 : vector<1x1x32xf32> to vector<1x32xf32>
    %c0_58 = arith.constant 0 : index
    %c0_59 = arith.constant 0 : index
    %c0_60 = arith.constant 0 : index
    %123 = vector.load %arg10[%c0_58, %c0_59, %c0_60] : memref<1x1x32xf32, #tpu.memory_space<vmem>>, vector<1x1x32xf32>
    %124 = vector.shape_cast %123 : vector<1x1x32xf32> to vector<1x32xf32>
    %cst_61 = arith.constant dense<0.000000e+00> : vector<16xf32>
    %125 = vector.multi_reduction <add>, %120, %cst_61 [1] : vector<16x32xf32> to vector<16xf32>
    %126 = vector.shape_cast %125 : vector<16xf32> to vector<16x1xf32>
    %cst_62 = arith.constant 3.200000e+01 : f32
    %127 = vector.broadcast %cst_62 : f32 to vector<16x1xf32>
    %128 = arith.divf %126, %127 : vector<16x1xf32>
    %129 = vector.broadcast %128 : vector<16x1xf32> to vector<16x32xf32>
    %130 = arith.subf %120, %129 : vector<16x32xf32>
    %131 = arith.mulf %130, %130 : vector<16x32xf32>
    %cst_63 = arith.constant dense<0.000000e+00> : vector<16xf32>
    %132 = vector.multi_reduction <add>, %131, %cst_63 [1] : vector<16x32xf32> to vector<16xf32>
    %133 = vector.shape_cast %132 : vector<16xf32> to vector<16x1xf32>
    %cst_64 = arith.constant 3.200000e+01 : f32
    %134 = vector.broadcast %cst_64 : f32 to vector<16x1xf32>
    %135 = arith.divf %133, %134 : vector<16x1xf32>
    %cst_65 = arith.constant 9.99999974E-6 : f32
    %136 = vector.broadcast %cst_65 : f32 to vector<16x1xf32>
    %137 = arith.addf %135, %136 : vector<16x1xf32>
    %138 = math.rsqrt %137 : vector<16x1xf32>
    %139 = vector.broadcast %138 : vector<16x1xf32> to vector<16x32xf32>
    %140 = arith.mulf %130, %139 : vector<16x32xf32>
    %141 = vector.broadcast %122 : vector<1x32xf32> to vector<16x32xf32>
    %142 = arith.mulf %140, %141 : vector<16x32xf32>
    %143 = vector.broadcast %124 : vector<1x32xf32> to vector<16x32xf32>
    %144 = arith.addf %142, %143 : vector<16x32xf32>
    %c0_66 = arith.constant 0 : index
    %c0_67 = arith.constant 0 : index
    %c0_68 = arith.constant 0 : index
    %145 = vector.load %arg11[%c0_66, %c0_67, %c0_68] : memref<1x32x128xf32, #tpu.memory_space<vmem>>, vector<1x32x128xf32>
    %146 = vector.shape_cast %145 : vector<1x32x128xf32> to vector<32x128xf32>
    %cst_69 = arith.constant dense<0.000000e+00> : vector<16x128xf32>
    %147 = tpu.matmul %144, %146, %cst_69 {dimension_numbers = #tpu.dot_dimension_numbers<[1], [0], [0], [1], [0, 0, 1, 1], [], []>} : vector<16x32xf32>, vector<32x128xf32>, vector<16x128xf32> -> vector<16x128xf32>
    %c0_70 = arith.constant 0 : index
    %c0_71 = arith.constant 0 : index
    %c0_72 = arith.constant 0 : index
    %148 = vector.load %arg12[%c0_70, %c0_71, %c0_72] : memref<1x1x128xf32, #tpu.memory_space<vmem>>, vector<1x1x128xf32>
    %149 = vector.shape_cast %148 : vector<1x1x128xf32> to vector<1x128xf32>
    %150 = vector.broadcast %149 : vector<1x128xf32> to vector<16x128xf32>
    %151 = arith.addf %147, %150 : vector<16x128xf32>
    %152 = arith.mulf %151, %151 : vector<16x128xf32>
    %153 = arith.mulf %151, %152 : vector<16x128xf32>
    %cst_73 = arith.constant 4.471500e-02 : f32
    %154 = vector.broadcast %cst_73 : f32 to vector<16x128xf32>
    %155 = arith.mulf %154, %153 : vector<16x128xf32>
    %156 = arith.addf %151, %155 : vector<16x128xf32>
    %cst_74 = arith.constant 0.797884583 : f32
    %157 = vector.broadcast %cst_74 : f32 to vector<16x128xf32>
    %158 = arith.mulf %157, %156 : vector<16x128xf32>
    %159 = math.tanh %158 : vector<16x128xf32>
    %cst_75 = arith.constant 1.000000e+00 : f32
    %160 = vector.broadcast %cst_75 : f32 to vector<16x128xf32>
    %161 = arith.addf %160, %159 : vector<16x128xf32>
    %cst_76 = arith.constant 5.000000e-01 : f32
    %162 = vector.broadcast %cst_76 : f32 to vector<16x128xf32>
    %163 = arith.mulf %162, %161 : vector<16x128xf32>
    %164 = arith.mulf %151, %163 : vector<16x128xf32>
    %c0_77 = arith.constant 0 : index
    %c0_78 = arith.constant 0 : index
    %c0_79 = arith.constant 0 : index
    %165 = vector.load %arg13[%c0_77, %c0_78, %c0_79] : memref<1x128x32xf32, #tpu.memory_space<vmem>>, vector<1x128x32xf32>
    %166 = vector.shape_cast %165 : vector<1x128x32xf32> to vector<128x32xf32>
    %cst_80 = arith.constant dense<0.000000e+00> : vector<16x32xf32>
    %167 = tpu.matmul %164, %166, %cst_80 {dimension_numbers = #tpu.dot_dimension_numbers<[1], [0], [0], [1], [0, 0, 1, 1], [], []>} : vector<16x128xf32>, vector<128x32xf32>, vector<16x32xf32> -> vector<16x32xf32>
    %c0_81 = arith.constant 0 : index
    %c0_82 = arith.constant 0 : index
    %c0_83 = arith.constant 0 : index
    %168 = vector.load %arg14[%c0_81, %c0_82, %c0_83] : memref<1x1x32xf32, #tpu.memory_space<vmem>>, vector<1x1x32xf32>
    %169 = vector.shape_cast %168 : vector<1x1x32xf32> to vector<1x32xf32>
    %170 = vector.broadcast %169 : vector<1x32xf32> to vector<16x32xf32>
    %171 = arith.addf %167, %170 : vector<16x32xf32>
    %172 = arith.addf %120, %171 : vector<16x32xf32>
    %c0_84 = arith.constant 0 : index
    %c0_85 = arith.constant 0 : index
    %173 = vector.load %arg21[%c0_84, %c0_85] : memref<16x32xf32, #tpu.memory_space<vmem>>, vector<16x32xf32>
    tpu.vector_store %arg21[%c0_84, %c0_85], %172 {strides = array<i32>} : memref<16x32xf32, #tpu.memory_space<vmem>>, vector<16x32xf32>,
    %c1_i32 = arith.constant 1 : i32
    %174 = arith.cmpi eq, %arg0, %c1_i32 : i32
    %175 = arith.extui %174 : i1 to i32
    %c0_i32_86 = arith.constant 0 : i32
    %176 = arith.cmpi ne, %175, %c0_i32_86 : i32
    scf.if %176 {
      %c0_87 = arith.constant 0 : index
      %c0_88 = arith.constant 0 : index
      %177 = vector.load %arg15[%c0_87, %c0_88] : memref<1x32xf32, #tpu.memory_space<vmem>>, vector<1x32xf32>
      %c0_89 = arith.constant 0 : index
      %c0_90 = arith.constant 0 : index
      %178 = vector.load %arg16[%c0_89, %c0_90] : memref<1x32xf32, #tpu.memory_space<vmem>>, vector<1x32xf32>
      %cst_91 = arith.constant dense<0.000000e+00> : vector<16xf32>
      %179 = vector.multi_reduction <add>, %172, %cst_91 [1] : vector<16x32xf32> to vector<16xf32>
      %180 = vector.shape_cast %179 : vector<16xf32> to vector<16x1xf32>
      %cst_92 = arith.constant 3.200000e+01 : f32
      %181 = vector.broadcast %cst_92 : f32 to vector<16x1xf32>
      %182 = arith.divf %180, %181 : vector<16x1xf32>
      %183 = vector.broadcast %182 : vector<16x1xf32> to vector<16x32xf32>
      %184 = arith.subf %172, %183 : vector<16x32xf32>
      %185 = arith.mulf %184, %184 : vector<16x32xf32>
      %cst_93 = arith.constant dense<0.000000e+00> : vector<16xf32>
      %186 = vector.multi_reduction <add>, %185, %cst_93 [1] : vector<16x32xf32> to vector<16xf32>
      %187 = vector.shape_cast %186 : vector<16xf32> to vector<16x1xf32>
      %cst_94 = arith.constant 3.200000e+01 : f32
      %188 = vector.broadcast %cst_94 : f32 to vector<16x1xf32>
      %189 = arith.divf %187, %188 : vector<16x1xf32>
      %cst_95 = arith.constant 9.99999974E-6 : f32
      %190 = vector.broadcast %cst_95 : f32 to vector<16x1xf32>
      %191 = arith.addf %189, %190 : vector<16x1xf32>
      %192 = math.rsqrt %191 : vector<16x1xf32>
      %193 = vector.broadcast %192 : vector<16x1xf32> to vector<16x32xf32>
      %194 = arith.mulf %184, %193 : vector<16x32xf32>
      %195 = vector.broadcast %177 : vector<1x32xf32> to vector<16x32xf32>
      %196 = arith.mulf %194, %195 : vector<16x32xf32>
      %197 = vector.broadcast %178 : vector<1x32xf32> to vector<16x32xf32>
      %198 = arith.addf %196, %197 : vector<16x32xf32>
      %c0_96 = arith.constant 0 : index
      %c0_97 = arith.constant 0 : index
      %199 = vector.load %arg17[%c0_96, %c0_97] : memref<2x16xf32, #tpu.memory_space<vmem>>, vector<2x16xf32>
      %cst_98 = arith.constant dense<0.000000e+00> : vector<2x32xf32>
      %200 = tpu.matmul %199, %198, %cst_98 {dimension_numbers = #tpu.dot_dimension_numbers<[1], [0], [0], [1], [0, 0, 1, 1], [], []>} : vector<2x16xf32>, vector<16x32xf32>, vector<2x32xf32> -> vector<2x32xf32>
      %c0_99 = arith.constant 0 : index
      %c0_100 = arith.constant 0 : index
      %201 = vector.load %arg18[%c0_99, %c0_100] : memref<32x32xf32, #tpu.memory_space<vmem>>, vector<32x32xf32>
      %cst_101 = arith.constant dense<0.000000e+00> : vector<2x32xf32>
      %202 = tpu.matmul %200, %201, %cst_101 {dimension_numbers = #tpu.dot_dimension_numbers<[1], [0], [0], [1], [0, 0, 1, 1], [], []>} : vector<2x32xf32>, vector<32x32xf32>, vector<2x32xf32> -> vector<2x32xf32>
      %c0_102 = arith.constant 0 : index
      %c0_103 = arith.constant 0 : index
      %203 = vector.load %arg19[%c0_102, %c0_103] : memref<1x32xf32, #tpu.memory_space<vmem>>, vector<1x32xf32>
      %204 = vector.broadcast %203 : vector<1x32xf32> to vector<2x32xf32>
      %205 = arith.addf %202, %204 : vector<2x32xf32>
      %206 = arith.mulf %205, %205 : vector<2x32xf32>
      %cst_104 = arith.constant dense<0.000000e+00> : vector<2xf32>
      %207 = vector.multi_reduction <add>, %206, %cst_104 [1] : vector<2x32xf32> to vector<2xf32>
      %208 = vector.shape_cast %207 : vector<2xf32> to vector<2x1xf32>
      %209 = math.rsqrt %208 : vector<2x1xf32>
      %210 = vector.broadcast %209 : vector<2x1xf32> to vector<2x32xf32>
      %211 = arith.mulf %205, %210 : vector<2x32xf32>
      %c0_105 = arith.constant 0 : index
      %c0_106 = arith.constant 0 : index
      %212 = vector.load %arg20[%c0_105, %c0_106] : memref<2x32xf32, #tpu.memory_space<vmem>>, vector<2x32xf32>
      tpu.vector_store %arg20[%c0_105, %c0_106], %211 {strides = array<i32>} : memref<2x32xf32, #tpu.memory_space<vmem>>, vector<2x32xf32>,
    } else {
    }
    return
  }
  func.func @transform_0(%arg0: i32) -> (i32, i32) {
    %c0_i32 = arith.constant 0 : i32
    %c0_i32_0 = arith.constant 0 : i32
    %c0_i32_1 = arith.constant 0 : i32
    return %c0_i32, %c0_i32_0 : i32, i32
  }
  func.func @transform_1(%arg0: i32) -> (i32, i32) {
    %c0_i32 = arith.constant 0 : i32
    %c0_i32_0 = arith.constant 0 : i32
    %c0_i32_1 = arith.constant 0 : i32
    return %c0_i32, %c0_i32_0 : i32, i32
  }
  func.func @transform_2(%arg0: i32) -> (i32, i32, i32) {
    %c0_i32 = arith.constant 0 : i32
    %c0_i32_0 = arith.constant 0 : i32
    %c0_i32_1 = arith.constant 0 : i32
    return %arg0, %c0_i32, %c0_i32_0 : i32, i32, i32
  }
  func.func @transform_3(%arg0: i32) -> (i32, i32, i32) {
    %c0_i32 = arith.constant 0 : i32
    %c0_i32_0 = arith.constant 0 : i32
    %c0_i32_1 = arith.constant 0 : i32
    return %arg0, %c0_i32, %c0_i32_0 : i32, i32, i32
  }
  func.func @transform_4(%arg0: i32) -> (i32, i32, i32) {
    %c0_i32 = arith.constant 0 : i32
    %c0_i32_0 = arith.constant 0 : i32
    %c0_i32_1 = arith.constant 0 : i32
    return %arg0, %c0_i32, %c0_i32_0 : i32, i32, i32
  }
  func.func @transform_5(%arg0: i32) -> (i32, i32, i32) {
    %c0_i32 = arith.constant 0 : i32
    %c0_i32_0 = arith.constant 0 : i32
    %c0_i32_1 = arith.constant 0 : i32
    return %arg0, %c0_i32, %c0_i32_0 : i32, i32, i32
  }
  func.func @transform_6(%arg0: i32) -> (i32, i32, i32) {
    %c0_i32 = arith.constant 0 : i32
    %c0_i32_0 = arith.constant 0 : i32
    %c0_i32_1 = arith.constant 0 : i32
    return %arg0, %c0_i32, %c0_i32_0 : i32, i32, i32
  }
  func.func @transform_7(%arg0: i32) -> (i32, i32, i32) {
    %c0_i32 = arith.constant 0 : i32
    %c0_i32_0 = arith.constant 0 : i32
    %c0_i32_1 = arith.constant 0 : i32
    return %arg0, %c0_i32, %c0_i32_0 : i32, i32, i32
  }
  func.func @transform_8(%arg0: i32) -> (i32, i32, i32) {
    %c0_i32 = arith.constant 0 : i32
    %c0_i32_0 = arith.constant 0 : i32
    %c0_i32_1 = arith.constant 0 : i32
    return %arg0, %c0_i32, %c0_i32_0 : i32, i32, i32
  }
  func.func @transform_9(%arg0: i32) -> (i32, i32, i32) {
    %c0_i32 = arith.constant 0 : i32
    %c0_i32_0 = arith.constant 0 : i32
    %c0_i32_1 = arith.constant 0 : i32
    return %arg0, %c0_i32, %c0_i32_0 : i32, i32, i32
  }
  func.func @transform_10(%arg0: i32) -> (i32, i32, i32) {
    %c0_i32 = arith.constant 0 : i32
    %c0_i32_0 = arith.constant 0 : i32
    %c0_i32_1 = arith.constant 0 : i32
    return %arg0, %c0_i32, %c0_i32_0 : i32, i32, i32
  }
  func.func @transform_11(%arg0: i32) -> (i32, i32, i32) {
    %c0_i32 = arith.constant 0 : i32
    %c0_i32_0 = arith.constant 0 : i32
    %c0_i32_1 = arith.constant 0 : i32
    return %arg0, %c0_i32, %c0_i32_0 : i32, i32, i32
  }
  func.func @transform_12(%arg0: i32) -> (i32, i32, i32) {
    %c0_i32 = arith.constant 0 : i32
    %c0_i32_0 = arith.constant 0 : i32
    %c0_i32_1 = arith.constant 0 : i32
    return %arg0, %c0_i32, %c0_i32_0 : i32, i32, i32
  }
  func.func @transform_13(%arg0: i32) -> (i32, i32, i32) {
    %c0_i32 = arith.constant 0 : i32
    %c0_i32_0 = arith.constant 0 : i32
    %c0_i32_1 = arith.constant 0 : i32
    return %arg0, %c0_i32, %c0_i32_0 : i32, i32, i32
  }
  func.func @transform_14(%arg0: i32) -> (i32, i32) {
    %c0_i32 = arith.constant 0 : i32
    %c0_i32_0 = arith.constant 0 : i32
    %c0_i32_1 = arith.constant 0 : i32
    return %c0_i32, %c0_i32_0 : i32, i32
  }
  func.func @transform_15(%arg0: i32) -> (i32, i32) {
    %c0_i32 = arith.constant 0 : i32
    %c0_i32_0 = arith.constant 0 : i32
    %c0_i32_1 = arith.constant 0 : i32
    return %c0_i32, %c0_i32_0 : i32, i32
  }
  func.func @transform_16(%arg0: i32) -> (i32, i32) {
    %c0_i32 = arith.constant 0 : i32
    %c0_i32_0 = arith.constant 0 : i32
    %c0_i32_1 = arith.constant 0 : i32
    return %c0_i32, %c0_i32_0 : i32, i32
  }
  func.func @transform_17(%arg0: i32) -> (i32, i32) {
    %c0_i32 = arith.constant 0 : i32
    %c0_i32_0 = arith.constant 0 : i32
    %c0_i32_1 = arith.constant 0 : i32
    return %c0_i32, %c0_i32_0 : i32, i32
  }
  func.func @transform_18(%arg0: i32) -> (i32, i32) {
    %c0_i32 = arith.constant 0 : i32
    %c0_i32_0 = arith.constant 0 : i32
    %c0_i32_1 = arith.constant 0 : i32
    return %c0_i32, %c0_i32_0 : i32, i32
  }
  func.func @transform_19(%arg0: i32) -> (i32, i32) {
    %c0_i32 = arith.constant 0 : i32
    %c0_i32_0 = arith.constant 0 : i32
    %c0_i32_1 = arith.constant 0 : i32
    return %c0_i32, %c0_i32_0 : i32, i32
  }
}

</mosaic_0001>

<bundles_post_ra>
// kernel: tile.14
= control target key start
LH: loop header
LB: loop body
LE: loop exit
PB: predicated region body
PF: predicated region fallthrough
CT: control target
= control target key end

     0   :  { %vm3_vm0 = vcmask 261120   ;;  %s11_s6 = smov 3  ;;  %s74_s0 = inlined_call_operand.vmem [shape: f32[2,17,32], index: 0, kind: input, shape index: {}]   ;;  %s75_s1 = inlined_call_operand.vmem [shape: f32[34,32], index: 1, kind: output, shape index: {}]  }
   0x1   :  { %v2_v0 = vld [vmem:[%s74_s0] sm:$0xff]   ;;  %v26_v1 = vld [vmem:[%s74_s0 + $0x8] sm:$0xff]  }
   0x2   :  { %v28_v2 = vld [vmem:[%s74_s0 + $0x10] ss:$8 sm:%s11_s6]   ;;  %4 = vst.msk [vmem:[%s75_s1] sm:$0xff] %vm3_vm0, %v2_v0  }
   0x3   :  { %v30_v3 = vld [vmem:[%s74_s0 + $0x19] sm:$0xff]   ;;  %27 = vst.msk [vmem:[%s75_s1 + $0x8] sm:$0xff] %vm3_vm0, %v26_v1   ;;  %v32_v4 = vld [vmem:[%s74_s0 + $0x21] sm:$0xff]  }
   0x4   :  { %29 = vst.msk [vmem:[%s75_s1 + $0x10] sm:$0x3] %vm3_vm0, %v28_v2  }
   0x5   :  { %31 = vst.msk [vmem:[%s75_s1 + $0x12] sm:$0xff] %vm3_vm0, %v30_v3  }
   0x6   :  { %33 = vst.msk [vmem:[%s75_s1 + $0x1a] sm:$0xff] %vm3_vm0, %v32_v4  }

// kernel: forward.3
= control target key start
LH: loop header
LB: loop body
LE: loop exit
PB: predicated region body
PF: predicated region fallthrough
CT: control target
= control target key end

     0   :  { %s2495_s0 = inlined_call_operand.vmem [shape: f32[16,32], index: 0, kind: input, shape index: {}]   ;;  %s2496_s1 = inlined_call_operand.vmem [shape: f32[16,32], index: 1, kind: input, shape index: {}]   ;;  %s2497_s2 = inlined_call_operand.vmem [shape: f32[2,1,32], index: 2, kind: input, shape index: {}]   ;;  %s2498_s3 = inlined_call_operand.vmem [shape: f32[2,1,32], index: 3, kind: input, shape index: {}]   ;;  %s2499_s4 = inlined_call_operand.vmem [shape: f32[2,32,96], index: 4, kind: input, shape index: {}]   ;;  %s2500_s5 = inlined_call_operand.vmem [shape: f32[2,1,96], index: 5, kind: input, shape index: {}]   ;;  %s2501_s6 = inlined_call_operand.vmem [shape: f32[2,32,32], index: 6, kind: input, shape index: {}]   ;;  %s2502_s7 = inlined_call_operand.vmem [shape: f32[2,1,32], index: 7, kind: input, shape index: {}]   ;;  %s2503_s8 = inlined_call_operand.vmem [shape: f32[2,1,32], index: 8, kind: input, shape index: {}]   ;;  %s2504_s9 = inlined_call_operand.vmem [shape: f32[2,1,32], index: 9, kind: input, shape index: {}]   ;;  %s2505_s10 = inlined_call_operand.vmem [shape: f32[2,32,128], index: 10, kind: input, shape index: {}]   ;;  %s2506_s11 = inlined_call_operand.vmem [shape: f32[2,1,128], index: 11, kind: input, shape index: {}]   ;;  %s2507_s12 = inlined_call_operand.vmem [shape: f32[2,128,32], index: 12, kind: input, shape index: {}]   ;;  %s2508_s13 = inlined_call_operand.vmem [shape: f32[2,1,32], index: 13, kind: input, shape index: {}]   ;;  %s2509_s14 = inlined_call_operand.vmem [shape: f32[1,32], index: 14, kind: input, shape index: {}]   ;;  %s2510_s15 = inlined_call_operand.vmem [shape: f32[1,32], index: 15, kind: input, shape index: {}]   ;;  %s2511_s16 = inlined_call_operand.vmem [shape: f32[2,16], index: 16, kind: input, shape index: {}]   ;;  %s2512_s17 = inlined_call_operand.vmem [shape: f32[32,32], index: 17, kind: input, shape index: {}]   ;;  %s2513_s18 = inlined_call_operand.vmem [shape: f32[1,32], index: 18, kind: input, shape index: {}]   ;;  %s2514_s19 = inlined_call_operand.hbm [shape: f32[2,32], index: 19, kind: output, shape index: {}]  }
   0x1   :  { %2518 = sst [smem:[#allocation9_spill]] %s2495_s0 }
   0x2   :  { %2519 = sst [smem:[#allocation10_spill]] %s2496_s1 }
   0x3   :  { %2520 = sst [smem:[#allocation11_spill]] %s2497_s2 }
   0x4   :  { %2521 = sst [smem:[#allocation12_spill]] %s2498_s3 }
   0x5   :  { %2522 = sst [smem:[#allocation13_spill]] %s2499_s4 }
   0x6   :  { %2523 = sst [smem:[#allocation14_spill]] %s2501_s6 }
   0x7   :  { %2524 = sst [smem:[#allocation15_spill]] %s2510_s15 }
   0x8   :  { %2525 = sst [smem:[#allocation16_spill]] %s2511_s16 }
   0x9   :  { %2526 = sst [smem:[#allocation17_spill]] %s2513_s18 }
   0xa   :  { %2527 = sst [smem:[#allocation18_spill]] %s2514_s19 }
   0xb   :  { %24 = vsyncpa [#allocation6], 0  ;;  %s2158_s0 = smov 0  }
   0xc LB: > { %2528 = sst [smem:[#allocation8_spill]] %s2039_s0  ;;  %s2164_s30 = sadd.s32 4294967295, %s2039_s0   ;;  %s2039_s0 = sphi %s2158_s0, %s30_s0  }
   0xd   : > { %p1834_p0 = scmp.ge.s32.totalorder %s2039_s0, 1  ;;  %p627_p1 = scmp.lt.s32.totalorder %s2039_s0, 3 }
   0xf   : > { %p628_p2 = pnand %p1834_p0, %p627_p1 }
  0x10   : > { %p717_p3 = scmp.lt.s32.totalorder (!%p628_p2), %s2164_s30, 1  ;;  %s2531_s4 = sld [smem:[#allocation13_spill]] (!%p628_p2) }
  0x11   : > { %631 = sbr.rel (%p628_p2) target bundleno = 2985 (0xba9), region = 96  ;;  %s2532_s6 = sld [smem:[#allocation14_spill]] (!%p628_p2) }
  0x12   : > { %p1843_p4 = scmp.ne.s32.totalorder (!%p628_p2), %s2164_s30, 0 }
  0x16   : > { %s2170_s20 = scalar_select %p717_p3, %s2164_s30, 1 }
  0x17   : > { %s2533_s21 = sld [smem:[#allocation9_spill]] (!%p1843_p4) }
  0x18   : > { %s1881_s26 = sshll.u32 %s2170_s20, 5  ;;  %s741_s3 = scalar_lea.vmem %s2503_s8, %s2170_s20 }
  0x19   : > { %s2188_s0 = scalar_lea.vmem %s2531_s4, %s1881_s26  ;;  %s2193_s16 = scalar_lea.vmem %s2532_s6, %s1881_s26 }
  0x1a   : > { %s744_s29 = scalar_lea.vmem %s2504_s9, %s2170_s20  ;;  %s2210_s4 = scalar_lea.vmem %s2505_s10, %s1881_s26 }
  0x1b   : > { %s1884_s15 = sshll.u32 %s2170_s20, 7  ;;  %s760_s27 = scalar_lea.vmem %s2508_s13, %s2170_s20 }
  0x1c   : > { %s2220_s23 = scalar_lea.vmem %s2507_s12, %s1884_s15  ;;  %764 = sbr.rel (%p1843_p4) target bundleno = 43 (0x2b), region = 100 }
  0x1d   : > { %s2534_s19 = sld [smem:[#allocation10_spill]] (!%p1843_p4) }
  0x21   : > { %v765_v0 = vld [vmem:[%s2533_s21] sm:$0xff]  ;;  %vm771_vm0 = vcmask 261120   ;;  %v766_v2 = vld [vmem:[%s2533_s21 + $0x8] sm:$0xff]  ;;  %v774_v3 = vlaneseq  ;;  %vm811_vm1 = vcmask 130048   ;;  %v2041_v10 = vmov -1e+30  }
  0x23   : > { %v767_v1 = vld [vmem:[%s2534_s19] sm:$0xff]  ;;  %v768_v5 = vld [vmem:[%s2534_s19 + $0x8] sm:$0xff]  ;;  %v775_v7 = vshrl.u32 %v774_v3, 7  ;;  %v778_v8 = vand.u32 127, %v774_v3 }
  0x24   : > { %v769_v4 = vadd.f32 %v767_v1, %v765_v0  ;;  %v770_v6 = vadd.f32 %v768_v5, %v766_v2 }
  0x25   : > { %vm788_vm2 = vcmp.lt.s32.totalorder %v778_v8, 8  ;;  %vm805_vm3 = vcmp.le.s32.totalorder %v778_v8, %v775_v7  ;;  %v776_v9 = vadd.s32 8, %v775_v7  ;;  %vm797_vm4 = vcmp.ge.s32.totalorder %v778_v8, 8 }
  0x26   : > { %772 = vst.msk [vmem:[#allocation2] sm:$0xff] %vm771_vm0, %v769_v4  ;;  %vm807_vm5 = vmand %vm788_vm2, %vm805_vm3  ;;  %vm800_vm6 = vcmp.lt.s32.totalorder %v778_v8, 16 }
  0x27   : > { %773 = vst.msk [vmem:[#allocation2 + $0x8] sm:$0xff] %vm771_vm0, %v770_v6  ;;  %v809_v11 = vsel %vm807_vm5, 0.0, %v2041_v10  ;;  %vm802_vm7 = vmand %vm797_vm4, %vm800_vm6  ;;  %vm806_vm8 = vcmp.le.s32.totalorder %v778_v8, %v776_v9 }
  0x28   : > { %812 = vst.msk [vmem:[#allocation4] sm:$0xff] %vm811_vm1, %v809_v11  ;;  %vm808_vm9 = vmand %vm802_vm7, %vm806_vm8 }
  0x29   : > { %v810_v12 = vsel %vm808_vm9, 0.0, %v2041_v10 }
  0x2a   : > { %813 = vst.msk [vmem:[#allocation4 + $0x8] sm:$0xff] %vm811_vm1, %v810_v12 }
  0x2b PF: > { %vm820_vm10 = vcmask 261120   ;;  %v2042_v17 = vmov 32.0   ;;  %v885_v34 = vld [vmem:[%s2188_s0 + $0x18] sm:$0xff]  ;;  %v884_v35 = vld [vmem:[%s2188_s0 + $0x10] sm:$0xff]  ;;  %v883_v36 = vld [vmem:[%s2188_s0 + $0x8] sm:$0xff]  ;;  %s2535_s24 = sld [smem:[#allocation11_spill]]  ;;  %s2539_s22 = scalar_lea.vmem %s2500_s5, %s2170_s20 }
  0x2c   : > { %1946 = vrcp.f32 %v2042_v17  ;;  %908 = vmatpush.msra.mxu0 %v885_v34  ;;  %v882_v37 = vld [vmem:[%s2188_s0] sm:$0xff]  ;;  %s2537_s1 = sld [smem:[#allocation12_spill]]  ;;  %s2043_s6 = smov 88   ;;  %vm927_vm2 = vcmask 64512   ;;  %vm961_vm3 = vcmask 130048   ;;  %vm1125_vm4 = vcmask 130112  }
  0x2d   : > { %v2239_v13 = vld [vmem:[#allocation2] sm:$0xff]  ;;  %s2044_s0 = smov 96   ;;  %s2047_s28 = smov 104   ;;  %vm1232_vm5 = vcmask 195712   ;;  %vm1339_vm6 = vcmask 261312  }
  0x2e   : > { %v821_v14 = vsel %vm820_vm10, %v2239_v13, 0.0  ;;  %v2243_v15 = vld [vmem:[#allocation2 + $0x8] sm:$0xff]  ;;  %909 = vmatpush.msra.mxu0 %v884_v35  ;;  %v1940_v3 = vld [vmem:[%s2539_s22] ss:$0 sm:$0xff]  ;;  %s2048_s26 = smov 72   ;;  %s2051_s2 = smov 56  }
  0x2f   : > { %822 = vadd.xlane.f32.xlu0 %v821_v14  ;;  %v824_v16 = vsel %vm820_vm10, %v2243_v15, 0.0  ;;  %v2297_v12 = vld [vmem:[#allocation4] sm:$0xff]  ;;  %s2052_s15 = smov 48   ;;  %s2053_s22 = smov 40  }
  0x30   : > { %910 = vmatpush.msra.mxu0 %v883_v36  ;;  %p1874_p5 = scmp.ne.s32.totalorder %s2164_s30, 1 }
  0x31   : > { %s2536_s25 = scalar_lea.vmem %s2535_s24, %s2170_s20  ;;  %s2045_s24 = smov 120  }
  0x32   : > { %v1947_v18 = vpop.eup %1946  ;;  %911 = vmatpush.msra.mxu0 %v882_v37  ;;  %v1938_v52 = vld [vmem:[%s2536_s25] ss:$0 sm:$0xff]  ;;  %s2538_s18 = scalar_lea.vmem %s2537_s1, %s2170_s20  ;;  %s2046_s25 = smov 64  }
  0x33   : > { %v828_v19 = vmul.f32 32.0, %v1947_v18  ;;  %vm832_vm11 = vweird.f32 %v1947_v18  ;;  %v1939_v56 = vld [vmem:[%s2538_s18] ss:$0 sm:$0xff]  ;;  %s2049_s1 = smov 80   ;;  %s2050_s18 = smov 112  }
  0x35   : > { %v829_v20 = vsub.f32 1.0, %v828_v19 }
  0x37   : > { %825 = vadd.xlane.f32.xlu0 %v824_v16  ;;  %v830_v21 = vmul.f32 %v1947_v18, %v829_v20 }
  0x39   : > { %v831_v22 = vadd.f32 %v1947_v18, %v830_v21 }
  0x3b   : > { %v2247_v23 = vsel %vm832_vm11, %v1947_v18, %v831_v22  ;;  %v2301_v18 = vld [vmem:[#allocation4 + $0x8] sm:$0xff] }
  0xa2   : > { %v823_v24 = vpop.xlane.xlu0 %822 }
  0xa3   : > { %v834_v25 = vmul.f32 %v2247_v23, %v823_v24 }
  0xa5   : > { %v836_v26 = vsub.f32 %v2239_v13, %v834_v25 }
  0xa7   : > { %v838_v27 = vmul.f32 %v836_v26, %v836_v26 }
  0xa9   : > { %v840_v28 = vsel %vm820_vm10, %v838_v27, 0.0 }
  0xaa   : > { %841 = vadd.xlane.f32.xlu1 %v840_v28  ;;  %v826_v29 = vpop.xlane.xlu0 %825 }
  0xab   : > { %v835_v30 = vmul.f32 %v2247_v23, %v826_v29 }
  0xad   : > { %v837_v31 = vsub.f32 %v2243_v15, %v835_v30 }
  0xaf   : > { %v839_v32 = vmul.f32 %v837_v31, %v837_v31 }
  0xb1   : > { %v843_v33 = vsel %vm820_vm10, %v839_v32, 0.0 }
  0xb2   : > { %844 = vadd.xlane.f32.xlu1 %v843_v33 }
 0x11d   : > { %v842_v38 = vpop.xlane.xlu1 %841 }
 0x11e   : > { %v846_v39 = vmul.f32 %v842_v38, %v2247_v23 }
 0x120   : > { %v848_v40 = vadd.f32 1e-05, %v846_v39 }
 0x122   : > { %1948 = vrsqrt.f32 %v848_v40  ;;  %vm856_vm13 = vweird.f32 %v848_v40 }
 0x125   : > { %v845_v41 = vpop.xlane.xlu1 %844 }
 0x126   : > { %v847_v42 = vmul.f32 %v845_v41, %v2247_v23 }
 0x128   : > { %v1949_v43 = vpop.eup %1948  ;;  %v849_v44 = vadd.f32 1e-05, %v847_v42 }
 0x129   : > { %v851_v45 = vmul.f32 %v1949_v43, %v848_v40  ;;  %vm857_vm12 = vweird.f32 %v1949_v43 }
 0x12a   : > { %1950 = vrsqrt.f32 %v849_v44  ;;  %vm858_vm14 = vmor %vm856_vm13, %vm857_vm12  ;;  %vm866_vm0 = vweird.f32 %v849_v44 }
 0x12b   : > { %v852_v46 = vmul.f32 %v1949_v43, %v851_v45 }
 0x12d   : > { %v853_v47 = vmul.f32 0.5, %v852_v46 }
 0x12f   : > { %v854_v48 = vsub.f32 1.5, %v853_v47 }
 0x130   : > { %v1951_v49 = vpop.eup %1950 }
 0x131   : > { %v855_v50 = vmul.f32 %v1949_v43, %v854_v48  ;;  %v861_v51 = vmul.f32 %v1951_v49, %v849_v44  ;;  %vm867_vm15 = vweird.f32 %v1951_v49 }
 0x132   : > { %vm868_vm1 = vmor %vm866_vm0, %vm867_vm15 }
 0x133   : > { %v859_v53 = vsel %vm858_vm14, %v1949_v43, %v855_v50  ;;  %v862_v54 = vmul.f32 %v1951_v49, %v861_v51 }
 0x134   : > { %v870_v55 = vmul.f32 %v859_v53, %v836_v26 }
 0x135   : > { %v863_v57 = vmul.f32 0.5, %v862_v54 }
 0x136   : > { %v875_v58 = vmul.f32 %v1938_v52, %v870_v55 }
 0x137   : > { %v864_v59 = vsub.f32 1.5, %v863_v57 }
 0x138   : > { %v880_v60 = vadd.f32 %v1939_v56, %v875_v58 }
 0x139   : > { %v865_v61 = vmul.f32 %v1951_v49, %v864_v59 }
 0x13a   : > { %1844 = vmatmul.msk.f32.vlgmr.msra.gmra.mxu0 %vm820_vm10, %v880_v60 }
 0x13b   : > { %v869_v62 = vsel %vm868_vm1, %v1951_v49, %v865_v61 }
 0x13c   : > { %v871_v63 = vmul.f32 %v869_v62, %v837_v31 }
 0x13e   : > { %v876_v0 = vmul.f32 %v1938_v52, %v871_v63 }
 0x140   : > { %v881_v1 = vadd.f32 %v1939_v56, %v876_v0 }
 0x142   : > { %1845 = vmatmul.msk.f32.gmra.mxu0 %vm820_vm10, %v881_v1 }
 0x1b7   : > { %v913_v2 = vpop.f32.mrf.mxu0 }
 0x1b8   : > { %v2283_v6 = vadd.f32 %v1940_v3, %v913_v2 }
 0x1ba   : > { %v919_v10 = vmul.f32 0.35355338, %v2283_v6 }
 0x1bf   : > { %v916_v4 = vpop.f32.mrf.mxu0 }
 0x1c0   : > { %v2278_v5 = vadd.f32 %v1940_v3, %v916_v4 }
 0x1c2   : > { %1027 = vrot.lane.b32.xlu1 %v2278_v5, %s2043_s6  ;;  %925 = vrot.lane.b32.xlu2 %v2278_v5, %s2044_s0  ;;  %v2286_v7 = vmul.f32 0.35355338, %v2278_v5  ;;  %v2307_v22 = vpack.i.bf16 %v2283_v6, %v2278_v5 }
 0x1ca   : > { %923 = vrot.lane.b32.xlu2 %v2283_v6, %s2044_s0  ;;  %1023 = vrot.lane.b32.xlu1 %v2286_v7, %s2045_s24  ;;  %s2055_s0 = smov 16  }
 0x21c   : > { %v926_v8 = vpop.permute.xlu2 %925 }
 0x21d   : > { %1846 = vmatpush.xpose.msk.msra.mxu1 %vm927_vm2, %v926_v8 }
 0x224   : > { %v924_v9 = vpop.permute.xlu2 %923 }
 0x225   : > { %1847 = vmatpush.xpose.msk.msra.mxu1 %vm927_vm2, %v924_v9 }
 0x228   : > { %1848 = vmatmul.msk.f32.vlgmr.msra.gmra.mxu1 %vm927_vm2, %v919_v10 }
 0x230   : > { %1849 = vmatmul.msk.f32.gmra.mxu1 %vm927_vm2, %v2286_v7 }
 0x234   : > { %v1028_v11 = vpop.permute.xlu1 %1027 }
 0x235   : > { %1885 = vmatpush.xpose.msk.msra.mxu3 %vm927_vm2, %v1028_v11 }
 0x23c   : > { %v1024_v24 = vpop.permute.xlu1 %1023 }
 0x2a5   : > { %v955_v14 = vpop.f32.mrf.mxu1 }
 0x2a6   : > { %v956_v16 = vadd.f32 %v955_v14, %v2297_v12 }
 0x2a8   : > { %v962_v17 = vsel %vm961_vm3, %v956_v16, -inf }
 0x2a9   : > { %963 = vmax.xlane.f32.xlu0 %v962_v17 }
 0x2ad   : > { %v958_v19 = vpop.f32.mrf.mxu1 }
 0x2ae   : > { %v959_v20 = vadd.f32 %v958_v19, %v2301_v18 }
 0x2b0   : > { %v965_v21 = vsel %vm961_vm3, %v959_v20, -inf }
 0x2b1   : > { %966 = vmax.xlane.f32.xlu1 %v965_v21 }
 0x2bd   : > { %1919 = vrot.lane.b32.xlu0 %v2307_v22, %s2046_s25 }
 0x2c5   : > { %1025 = vrot.lane.b32.xlu0 %v2283_v6, %s2043_s6  ;;  %s2054_s6 = smov 8  }
 0x2ca   : > { %1235 = vrot.lane.b32.xlu1 %v919_v10, %s2047_s28 }
 0x2cd   : > { %1021 = vrot.lane.b32.xlu0 %v919_v10, %s2045_s24  ;;  %s2056_s24 = smov 24  }
 0x2d5   : > { %1239 = vrot.lane.b32.xlu0 %v2283_v6, %s2048_s26 }
 0x2dd   : > { %1134 = vrot.lane.b32.xlu0 %v2278_v5, %s2049_s1 }
 0x2e5   : > { %1237 = vrot.lane.b32.xlu0 %v2286_v7, %s2047_s28  ;;  %s2540_s28 = scalar_lea.vmem %s2502_s7, %s2170_s20 }
 0x31c   : > { %v964_v25 = vpop.xlane.xlu0 %963 }
 0x31d   : > { %v968_v26 = vsub.f32 %v956_v16, %v964_v25 }
 0x31f   : > { %v970_v27 = vmul.f32 1.442695, %v968_v26 }
 0x321   : > { %1952 = vpow2.f32 %v970_v27 }
 0x324   : > { %v967_v28 = vpop.xlane.xlu1 %966 }
 0x325   : > { %v969_v29 = vsub.f32 %v959_v20, %v967_v28 }
 0x327   : > { %v1953_v30 = vpop.eup %1952  ;;  %v972_v31 = vmul.f32 1.442695, %v969_v29 }
 0x328   : > { %v974_v32 = vsel %vm961_vm3, %v1953_v30, 0.0 }
 0x329   : > { %1954 = vpow2.f32 %v972_v31  ;;  %975 = vadd.xlane.f32.xlu2 %v974_v32 }
 0x32f   : > { %v1955_v33 = vpop.eup %1954  ;;  %v1920_v34 = vpop.permute.xlu0 %1919 }
 0x330   : > { %v977_v35 = vsel %vm961_vm3, %v1955_v33, 0.0  ;;  %v1921_v36 = vunpack.i.l.bf16 %v1920_v34  ;;  %v1922_v37 = vunpack.i.h.bf16 %v1920_v34 }
 0x331   : > { %978 = vadd.xlane.f32.xlu1 %v977_v35 }
 0x332   : > { %1010 = vmatpush.msra.mxu2 %v1921_v36 }
 0x334   : > { %1011 = vmatpush.msra.mxu2 %v1922_v37 }
 0x336   : > { %1852 = vmatpush.xpose.msk.msrb.mxu2 %vm927_vm2, %v1028_v11 }
 0x337   : > { %v1026_v38 = vpop.permute.xlu0 %1025 }
 0x338   : > { %1886 = vmatpush.xpose.msk.msra.mxu3 %vm927_vm2, %v1026_v38 }
 0x33a   : > { %1853 = vmatpush.xpose.msk.msrb.mxu2 %vm927_vm2, %v1026_v38 }
 0x33b   : > { %1855 = vmatmul.msk.f32.vlgmr.msra.gmra.mxu3 %vm927_vm2, %v1024_v24 }
 0x33c   : > { %v1236_v42 = vpop.permute.xlu1 %1235 }
 0x33f   : > { %v1022_v39 = vpop.permute.xlu0 %1021 }
 0x341   : > { %1241 = vrot.lane.b32.xlu2 %v2278_v5, %s2048_s26  ;;  %s2542_s26 = sld [smem:[#allocation15_spill]] (!%p1874_p5) }
 0x347   : > { %v1240_v40 = vpop.permute.xlu0 %1239 }
 0x349   : > { %1130 = vrot.lane.b32.xlu2 %v2286_v7, %s2050_s18 }
 0x34a   : > { %1132 = vrot.lane.b32.xlu1 %v2283_v6, %s2049_s1 }
 0x34f   : > { %v1135_v41 = vpop.permute.xlu0 %1134 }
 0x350   : > { %1858 = vmatpush.xpose.msk.msrb.mxu0 %vm927_vm2, %v1135_v41 }
 0x352   : > { %1128 = vrot.lane.b32.xlu1 %v919_v10, %s2050_s18 }
 0x357   : > { %v1238_v50 = vpop.permute.xlu0 %1237 }
 0x39c   : > { %v976_v43 = vpop.xlane.xlu2 %975 }
 0x39d   : > { %1956 = vrcp.f32 %v976_v43 }
 0x3a3   : > { %v1957_v44 = vpop.eup %1956 }
 0x3a4   : > { %v1242_v45 = vpop.permute.xlu2 %1241  ;;  %v979_v46 = vpop.xlane.xlu1 %978  ;;  %v982_v47 = vmul.f32 %v1957_v44, %v1953_v30 }
 0x3a5   : > { %1958 = vrcp.f32 %v979_v46  ;;  %1864 = vmatpush.xpose.msk.msrb.mxu3 %vm927_vm2, %v1242_v45 }
 0x3a6   : > { %1850 = vmatmul.msk.f32.vlgmr.msra.gmra.mxu2 %vm961_vm3, %v982_v47 }
 0x3a9   : > { %1865 = vmatpush.xpose.msk.msrb.mxu3 %vm927_vm2, %v1240_v40 }
 0x3ab   : > { %v1959_v48 = vpop.eup %1958 }
 0x3ac   : > { %1866 = vmatmul.msk.f32.vlgmr.msrb.gmra.mxu3 %vm927_vm2, %v1236_v42  ;;  %v983_v49 = vmul.f32 %v1959_v48, %v1955_v33  ;;  %v1131_v56 = vpop.permute.xlu2 %1130 }
 0x3ae   : > { %1851 = vmatmul.msk.f32.gmra.mxu2 %vm961_vm3, %v983_v49 }
 0x3b4   : > { %1867 = vmatmul.msk.f32.gmra.mxu3 %vm927_vm2, %v1238_v50 }
 0x3b6   : > { %1854 = vmatmul.msk.f32.vlgmr.msrb.gmra.mxu2 %vm927_vm2, %v1022_v39 }
 0x3bc   : > { %v1133_v51 = vpop.permute.xlu1 %1132 }
 0x3bd   : > { %1859 = vmatpush.xpose.msk.msrb.mxu0 %vm927_vm2, %v1133_v51 }
 0x3be   : > { %v1057_v52 = vpop.f32.mrf.mxu3 }
 0x3bf   : > { %v1058_v53 = vadd.f32 %v1057_v52, %v2301_v18 }
 0x3c1   : > { %v1063_v54 = vsel %vm961_vm3, %v1058_v53, -inf }
 0x3c2   : > { %1064 = vmax.xlane.f32.xlu1 %v1063_v54 }
 0x3c4   : > { %v1129_v55 = vpop.permute.xlu1 %1128 }
 0x3c5   : > { %1860 = vmatmul.msk.f32.vlgmr.msrb.gmra.mxu0 %vm927_vm2, %v1129_v55 }
 0x3cd   : > { %1861 = vmatmul.msk.f32.gmra.mxu0 %vm927_vm2, %v1131_v56 }
 0x429   : > { %v1013_v57 = vpop.f32.mrf.mxu2 }
 0x42a   : > { %1019 = vst.msk [vmem:[#allocation3] sm:$0xff] %vm927_vm2, %v1013_v57 }
 0x42f   : > { %v1268_v58 = vpop.f32.mrf.mxu3 }
 0x430   : > { %v1269_v59 = vadd.f32 %v1268_v58, %v2297_v12 }
 0x431   : > { %v1016_v60 = vpop.f32.mrf.mxu2 }
 0x432   : > { %1020 = vst.msk [vmem:[#allocation3 + $0x8] sm:$0xff] %vm927_vm2, %v1016_v60  ;;  %v1274_v61 = vsel %vm961_vm3, %v1269_v59, -inf }
 0x433   : > { %1275 = vmax.xlane.f32.xlu2 %v1274_v61 }
 0x435   : > { %v1065_v4 = vpop.xlane.xlu1 %1064 }
 0x436   : > { %v1067_v7 = vsub.f32 %v1058_v53, %v1065_v4 }
 0x437   : > { %v1271_v62 = vpop.f32.mrf.mxu3 }
 0x438   : > { %v1272_v63 = vadd.f32 %v1271_v62, %v2301_v18  ;;  %v1070_v9 = vmul.f32 1.442695, %v1067_v7 }
 0x439   : > { %v1054_v0 = vpop.f32.mrf.mxu2 }
 0x43a   : > { %v1055_v1 = vadd.f32 %v1054_v0, %v2297_v12  ;;  %v1277_v2 = vsel %vm961_vm3, %v1272_v63, -inf  ;;  %1960 = vpow2.f32 %v1070_v9 }
 0x43b   : > { %1278 = vmax.xlane.f32.xlu2 %v1277_v2 }
 0x43c   : > { %v1060_v3 = vsel %vm961_vm3, %v1055_v1, -inf }
 0x43d   : > { %1061 = vmax.xlane.f32.xlu0 %v1060_v3 }
 0x440   : > { %v2353_v16 = vpop.eup %1960 }
 0x442   : > { %v1161_v5 = vpop.f32.mrf.mxu0 }
 0x443   : > { %v1162_v6 = vadd.f32 %v1161_v5, %v2297_v12  ;;  %v1075_v12 = vsel %vm961_vm3, %v2353_v16, 0.0 }
 0x445   : > { %v1167_v8 = vsel %vm961_vm3, %v1162_v6, -inf }
 0x446   : > { %1168 = vmax.xlane.f32.xlu0 %v1167_v8 }
 0x44a   : > { %v1164_v10 = vpop.f32.mrf.mxu0 }
 0x44b   : > { %v1165_v11 = vadd.f32 %v1164_v10, %v2301_v18 }
 0x44d   : > { %v1170_v14 = vsel %vm961_vm3, %v1165_v11, -inf }
 0x44e   : > { %1171 = vmax.xlane.f32.xlu1 %v1170_v14  ;;  %v1347_v14 = vld [vmem:[%s2193_s16 + $0x18] sm:$0xff] }
 0x44f   : > { %1366 = vmatpush.msra.mxu0 %v1347_v14 }
 0x453   : > { %1924 = vrot.lane.b32.xlu2 %v2307_v22, %s2051_s2  ;;  %s2541_s2 = scalar_lea.vmem %s2506_s11, %s2170_s20  ;;  %s2544_s20 = sld [smem:[#allocation17_spill]] (!%p1874_p5) }
 0x456   : > { %1076 = vadd.xlane.f32.xlu1 %v1075_v12  ;;  %v1345_v12 = vld [vmem:[%s2193_s16 + $0x8] sm:$0xff] }
 0x45b   : > { %1934 = vrot.lane.b32.xlu2 %v2307_v22, %s2052_s15 }
 0x4a6   : > { %v1276_v17 = vpop.xlane.xlu2 %1275 }
 0x4a7   : > { %v1280_v19 = vsub.f32 %v1269_v59, %v1276_v17  ;;  %v1344_v17 = vld [vmem:[%s2193_s16] sm:$0xff] }
 0x4a9   : > { %v1282_v20 = vmul.f32 1.442695, %v1280_v19 }
 0x4ab   : > { %1962 = vpow2.f32 %v1282_v20 }
 0x4ae   : > { %v1279_v18 = vpop.xlane.xlu2 %1278 }
 0x4af   : > { %v1281_v34 = vsub.f32 %v1272_v63, %v1279_v18 }
 0x4b0   : > { %v1062_v21 = vpop.xlane.xlu0 %1061 }
 0x4b1   : > { %v2359_v24 = vpop.eup %1962  ;;  %v1066_v25 = vsub.f32 %v1055_v1, %v1062_v21  ;;  %v1284_v39 = vmul.f32 1.442695, %v1281_v34 }
 0x4b2   : > { %v1286_v26 = vsel %vm961_vm3, %v2359_v24, 0.0 }
 0x4b3   : > { %v1068_v27 = vmul.f32 1.442695, %v1066_v25  ;;  %1287 = vadd.xlane.f32.xlu0 %v1286_v26 }
 0x4b5   : > { %1964 = vpow2.f32 %v1068_v27 }
 0x4b6   : > { %v1925_v28 = vpop.permute.xlu2 %1924 }
 0x4b7   : > { %v1926_v29 = vunpack.i.l.bf16 %v1925_v28  ;;  %v1927_v30 = vunpack.i.h.bf16 %v1925_v28  ;;  %v1941_v28 = vld [vmem:[%s2540_s28] ss:$0 sm:$0xff] }
 0x4b9   : > { %1108 = vmatpush.msra.mxu2 %v1926_v29  ;;  %v1169_v31 = vpop.xlane.xlu0 %1168 }
 0x4ba   : > { %v1173_v32 = vsub.f32 %v1162_v6, %v1169_v31 }
 0x4bb   : > { %v1965_v33 = vpop.eup %1964  ;;  %1109 = vmatpush.msra.mxu2 %v1927_v30 }
 0x4bc   : > { %v1175_v35 = vmul.f32 1.442695, %v1173_v32  ;;  %v1072_v36 = vsel %vm961_vm3, %v1965_v33, 0.0 }
 0x4bd   : > { %1073 = vadd.xlane.f32.xlu0 %v1072_v36 }
 0x4be   : > { %1966 = vpow2.f32 %v1175_v35  ;;  %v1935_v37 = vpop.permute.xlu2 %1934 }
 0x4bf   : > { %v1936_v38 = vunpack.i.l.bf16 %v1935_v37  ;;  %v1937_v41 = vunpack.i.h.bf16 %v1935_v37  ;;  %1968 = vpow2.f32 %v1284_v39 }
 0x4c1   : > { %1215 = vmatpush.msrb.mxu1 %v1936_v38  ;;  %v1172_v40 = vpop.xlane.xlu1 %1171 }
 0x4c2   : > { %v1174_v43 = vsub.f32 %v1165_v11, %v1172_v40 }
 0x4c3   : > { %1216 = vmatpush.msrb.mxu1 %v1937_v41 }
 0x4c4   : > { %v1967_v42 = vpop.eup %1966  ;;  %v1177_v45 = vmul.f32 1.442695, %v1174_v43 }
 0x4c5   : > { %v1179_v44 = vsel %vm961_vm3, %v1967_v42, 0.0  ;;  %v1969_v46 = vpop.eup %1968 }
 0x4c6   : > { %1180 = vadd.xlane.f32.xlu1 %v1179_v44  ;;  %1970 = vpow2.f32 %v1177_v45  ;;  %v1289_v47 = vsel %vm961_vm3, %v1969_v46, 0.0  ;;  %v1444_v45 = vld [vmem:[%s2210_s4 + $0x18] sm:$0xff] }
 0x4c7   : > { %1467 = vmatpush.msra.mxu1 %v1444_v45 }
 0x4c9   : > { %v1077_v52 = vpop.xlane.xlu1 %1076 }
 0x4cc   : > { %v1971_v48 = vpop.eup %1970 }
 0x4cd   : > { %v1182_v49 = vsel %vm961_vm3, %v1971_v48, 0.0 }
 0x4ce   : > { %1290 = vadd.xlane.f32.xlu1 %v1289_v47  ;;  %v1442_v47 = vld [vmem:[%s2210_s4 + $0x8] sm:$0xff] }
 0x4d1   : > { %1929 = vrot.lane.b32.xlu0 %v2307_v22, %s2053_s22 }
 0x4d6   : > { %1183 = vadd.xlane.f32.xlu1 %v1182_v49 }
 0x526   : > { %v1288_v50 = vpop.xlane.xlu0 %1287 }
 0x530   : > { %v1074_v51 = vpop.xlane.xlu0 %1073 }
 0x531   : > { %1972 = vrcp.f32 %v1074_v51 }
 0x532   : > { %1974 = vrcp.f32 %v1077_v52  ;;  %v1511_v52 = vld [vmem:[%s2220_s23 + $0x78] sm:$0xff] }
 0x533   : > { %1516 = vmatpush.msra.mxu3 %v1511_v52 }
 0x537   : > { %v1973_v53 = vpop.eup %1972 }
 0x538   : > { %v1080_v54 = vmul.f32 %v1973_v53, %v1965_v33  ;;  %v1975_v56 = vpop.eup %1974  ;;  %v1510_v53 = vld [vmem:[%s2220_s23 + $0x70] sm:$0xff] }
 0x539   : > { %v1181_v55 = vpop.xlane.xlu1 %1180  ;;  %v1081_v22 = vmul.f32 %v1975_v56, %v2353_v16  ;;  %v1346_v16 = vld [vmem:[%s2193_s16 + $0x10] sm:$0xff]  ;;  %1517 = vmatpush.msra.mxu3 %v1510_v53 }
 0x53a   : > { %1976 = vrcp.f32 %v1181_v55  ;;  %1856 = vmatmul.msk.f32.vlgmr.msra.gmra.mxu2 %vm961_vm3, %v1080_v54  ;;  %1367 = vmatpush.msra.mxu0 %v1346_v16  ;;  %v1509_v54 = vld [vmem:[%s2220_s23 + $0x68] sm:$0xff] }
 0x53b   : > { %1978 = vrcp.f32 %v1288_v50  ;;  %1518 = vmatpush.msra.mxu3 %v1509_v54 }
 0x53c   : > { %1368 = vmatpush.msra.mxu0 %v1345_v12 }
 0x53e   : > { %1369 = vmatpush.msra.mxu0 %v1344_v17  ;;  %v1508_v17 = vld [vmem:[%s2220_s23 + $0x60] sm:$0xff] }
 0x53f   : > { %1519 = vmatpush.msra.mxu3 %v1508_v17 }
 0x540   : > { %v1977_v57 = vpop.eup %1976 }
 0x541   : > { %v1291_v58 = vpop.xlane.xlu1 %1290  ;;  %v1187_v59 = vmul.f32 %v1977_v57, %v1967_v42  ;;  %v1979_v62 = vpop.eup %1978 }
 0x542   : > { %1857 = vmatmul.msk.f32.gmra.mxu2 %vm961_vm3, %v1081_v22  ;;  %1980 = vrcp.f32 %v1291_v58  ;;  %v1294_v0 = vmul.f32 %v1979_v62, %v2359_v24 }
 0x543   : > { %v1930_v60 = vpop.permute.xlu0 %1929  ;;  %1862 = vmatmul.msk.f32.vlgmr.msrb.gmra.mxu1 %vm961_vm3, %v1187_v59 }
 0x544   : > { %v1931_v61 = vunpack.i.l.bf16 %v1930_v60  ;;  %v1932_v63 = vunpack.i.h.bf16 %v1930_v60 }
 0x546   : > { %1322 = vmatpush.msrb.mxu2 %v1931_v61 }
 0x548   : > { %1323 = vmatpush.msrb.mxu2 %v1932_v63  ;;  %v1981_v2 = vpop.eup %1980 }
 0x549   : > { %v1184_v1 = vpop.xlane.xlu1 %1183  ;;  %v1295_v4 = vmul.f32 %v1981_v2, %v1969_v46  ;;  %v1443_v46 = vld [vmem:[%s2210_s4 + $0x10] sm:$0xff] }
 0x54a   : > { %1982 = vrcp.f32 %v1184_v1  ;;  %1868 = vmatmul.msk.f32.vlgmr.msrb.gmra.mxu2 %vm961_vm3, %v1294_v0  ;;  %1468 = vmatpush.msra.mxu1 %v1443_v46  ;;  %v1942_v1 = vld [vmem:[%s741_s3] ss:$0 sm:$0xff]  ;;  %s2543_s3 = sld [smem:[#allocation16_spill]] (!%p1874_p5) }
 0x54c   : > { %1469 = vmatpush.msra.mxu1 %v1442_v47 }
 0x550   : > { %v1983_v3 = vpop.eup %1982 }
 0x551   : > { %v1188_v5 = vmul.f32 %v1983_v3, %v1971_v48  ;;  %v1441_v48 = vld [vmem:[%s2210_s4] sm:$0xff] }
 0x552   : > { %1869 = vmatmul.msk.f32.gmra.mxu2 %vm961_vm3, %v1295_v4  ;;  %1470 = vmatpush.msra.mxu1 %v1441_v48 }
 0x553   : > { %1863 = vmatmul.msk.f32.gmra.mxu1 %vm961_vm3, %v1188_v5  ;;  %v1943_v5 = vld [vmem:[%s744_s29] ss:$0 sm:$0xff] }
 0x5bd   : > { %v1111_v6 = vpop.f32.mrf.mxu2 }
 0x5be   : > { %1119 = vrot.lane.b32.xlu0 %v1111_v6, %s2054_s6 }
 0x5c0   : > { %v1218_v7 = vpop.f32.mrf.mxu1 }
 0x5c1   : > { %1226 = vrot.lane.b32.xlu2 %v1218_v7, %s2055_s0 }
 0x5c5   : > { %v1114_v8 = vpop.f32.mrf.mxu2 }
 0x5c6   : > { %1121 = vrot.lane.b32.xlu0 %v1114_v8, %s2054_s6 }
 0x5cd   : > { %v1325_v9 = vpop.f32.mrf.mxu2 }
 0x5ce   : > { %1333 = vrot.lane.b32.xlu1 %v1325_v9, %s2056_s24 }
 0x5d0   : > { %v1221_v10 = vpop.f32.mrf.mxu1 }
 0x5d1   : > { %1228 = vrot.lane.b32.xlu2 %v1221_v10, %s2055_s0 }
 0x5d5   : > { %v1328_v11 = vpop.f32.mrf.mxu2 }
 0x5d6   : > { %1335 = vrot.lane.b32.xlu0 %v1328_v11, %s2056_s24 }
 0x61b   : > { %v1227_v20 = vpop.permute.xlu2 %1226 }
 0x62b   : > { %v1229_v21 = vpop.permute.xlu2 %1228 }
 0x630   : > { %v1120_v19 = vpop.permute.xlu0 %1119 }
 0x631   : > { %1126 = vst.msk [vmem:[#allocation3] sm:$0xff] %vm1125_vm4, %v1120_v19  ;;  %v1507_v19 = vld [vmem:[%s2220_s23 + $0x58] sm:$0xff] }
 0x632   : > { %1233 = vst.msk [vmem:[#allocation3] sm:$0xff] %vm1232_vm5, %v1227_v20  ;;  %1520 = vmatpush.msra.mxu3 %v1507_v19  ;;  %v1506_v20 = vld [vmem:[%s2220_s23 + $0x50] sm:$0xff] }
 0x634   : > { %1521 = vmatpush.msra.mxu3 %v1506_v20 }
 0x638   : > { %v1122_v18 = vpop.permute.xlu0 %1121 }
 0x639   : > { %1127 = vst.msk [vmem:[#allocation3 + $0x8] sm:$0xff] %vm1125_vm4, %v1122_v18  ;;  %v1505_v18 = vld [vmem:[%s2220_s23 + $0x48] sm:$0xff] }
 0x63a   : > { %1234 = vst.msk [vmem:[#allocation3 + $0x8] sm:$0xff] %vm1232_vm5, %v1229_v21  ;;  %1522 = vmatpush.msra.mxu3 %v1505_v18  ;;  %v1504_v21 = vld [vmem:[%s2220_s23 + $0x40] sm:$0xff] }
 0x63c   : > { %1523 = vmatpush.msra.mxu3 %v1504_v21 }
 0x640   : > { %v1334_v24 = vpop.permute.xlu1 %1333 }
 0x641   : > { %1340 = vst.msk [vmem:[#allocation3] sm:$0xff] %vm1339_vm6, %v1334_v24  ;;  %v1503_v24 = vld [vmem:[%s2220_s23 + $0x38] sm:$0xff] }
 0x642   : > { %1524 = vmatpush.msra.mxu3 %v1503_v24 }
 0x648   : > { %v1336_v25 = vpop.permute.xlu0 %1335  ;;  %v1342_v26 = vld [vmem:[#allocation3] sm:$0xff] }
 0x649   : > { %1341 = vst.msk [vmem:[#allocation3 + $0x8] sm:$0xff] %vm1339_vm6, %v1336_v25  ;;  %1870 = vmatmul.msk.f32.vlgmr.msra.gmra.mxu0 %vm820_vm10, %v1342_v26  ;;  %v1502_v25 = vld [vmem:[%s2220_s23 + $0x30] sm:$0xff]  ;;  %v1501_v26 = vld [vmem:[%s2220_s23 + $0x28] sm:$0xff] }
 0x64a   : > { %1525 = vmatpush.msra.mxu3 %v1502_v25 }
 0x64c   : > { %1526 = vmatpush.msra.mxu3 %v1501_v26 }
 0x650   : > { %v1343_v27 = vld [vmem:[#allocation3 + $0x8] sm:$0xff] }
 0x651   : > { %1871 = vmatmul.msk.f32.gmra.mxu0 %vm820_vm10, %v1343_v27  ;;  %v1500_v27 = vld [vmem:[%s2220_s23 + $0x20] sm:$0xff] }
 0x652   : > { %1527 = vmatpush.msra.mxu3 %v1500_v27 }
 0x6c6   : > { %v1371_v29 = vpop.f32.mrf.mxu0 }
 0x6c7   : > { %v1377_v30 = vadd.f32 %v1371_v29, %v2239_v13  ;;  %v1498_v29 = vld [vmem:[%s2220_s23 + $0x10] sm:$0xff] }
 0x6c9   : > { %v2388_v31 = vadd.f32 %v1941_v28, %v1377_v30  ;;  %v1497_v30 = vld [vmem:[%s2220_s23 + $0x8] sm:$0xff] }
 0x6cb   : > { %v1387_v32 = vsel %vm820_vm10, %v2388_v31, 0.0 }
 0x6cc   : > { %1388 = vadd.xlane.f32.xlu2 %v1387_v32  ;;  %v1496_v32 = vld [vmem:[%s2220_s23] sm:$0xff] }
 0x6ce   : > { %v1374_v33 = vpop.f32.mrf.mxu0 }
 0x6cf   : > { %v1378_v34 = vadd.f32 %v1374_v33, %v2243_v15  ;;  %v1944_v33 = vld [vmem:[%s2541_s2] ss:$0 sm:$0xff] }
 0x6d1   : > { %v2393_v35 = vadd.f32 %v1941_v28, %v1378_v34  ;;  %v1499_v28 = vld [vmem:[%s2220_s23 + $0x18] sm:$0xff] }
 0x6d2   : > { %1528 = vmatpush.msra.mxu3 %v1499_v28 }
 0x6d3   : > { %v1390_v36 = vsel %vm820_vm10, %v2393_v35, 0.0 }
 0x6d4   : > { %1391 = vadd.xlane.f32.xlu0 %v1390_v36  ;;  %1529 = vmatpush.msra.mxu3 %v1498_v29 }
 0x6d6   : > { %1530 = vmatpush.msra.mxu3 %v1497_v30 }
 0x6d8   : > { %1531 = vmatpush.msra.mxu3 %v1496_v32 }
 0x73f   : > { %v1389_v37 = vpop.xlane.xlu2 %1388 }
 0x740   : > { %v1393_v13 = vmul.f32 %v1389_v37, %v2247_v23 }
 0x742   : > { %v1395_v38 = vsub.f32 %v2388_v31, %v1393_v13 }
 0x744   : > { %v1397_v39 = vmul.f32 %v1395_v38, %v1395_v38 }
 0x746   : > { %v1399_v40 = vsel %vm820_vm10, %v1397_v39, 0.0 }
 0x747   : > { %1400 = vadd.xlane.f32.xlu1 %v1399_v40  ;;  %v1392_v15 = vpop.xlane.xlu0 %1391 }
 0x748   : > { %v1394_v41 = vmul.f32 %v1392_v15, %v2247_v23 }
 0x74a   : > { %v1396_v42 = vsub.f32 %v2393_v35, %v1394_v41 }
 0x74c   : > { %v1398_v43 = vmul.f32 %v1396_v42, %v1396_v42 }
 0x74e   : > { %v1402_v44 = vsel %vm820_vm10, %v1398_v43, 0.0 }
 0x74f   : > { %1403 = vadd.xlane.f32.xlu2 %v1402_v44 }
 0x7ba   : > { %v1401_v49 = vpop.xlane.xlu1 %1400 }
 0x7bb   : > { %v1405_v50 = vmul.f32 %v1401_v49, %v2247_v23 }
 0x7bd   : > { %v1407_v51 = vadd.f32 1e-05, %v1405_v50 }
 0x7bf   : > { %1984 = vrsqrt.f32 %v1407_v51  ;;  %vm1415_vm8 = vweird.f32 %v1407_v51 }
 0x7c2   : > { %v1404_v55 = vpop.xlane.xlu2 %1403 }
 0x7c3   : > { %v1406_v56 = vmul.f32 %v1404_v55, %v2247_v23  ;;  %v1945_v55 = vld [vmem:[%s760_s27] ss:$0 sm:$0xff] }
 0x7c5   : > { %v1985_v57 = vpop.eup %1984  ;;  %v1408_v22 = vadd.f32 1e-05, %v1406_v56 }
 0x7c6   : > { %v1410_v58 = vmul.f32 %v1985_v57, %v1407_v51  ;;  %vm1416_vm7 = vweird.f32 %v1985_v57 }
 0x7c7   : > { %1986 = vrsqrt.f32 %v1408_v22  ;;  %vm1417_vm9 = vmor %vm1415_vm8, %vm1416_vm7  ;;  %vm1425_vm12 = vweird.f32 %v1408_v22 }
 0x7c8   : > { %v1411_v59 = vmul.f32 %v1985_v57, %v1410_v58 }
 0x7ca   : > { %v1412_v60 = vmul.f32 0.5, %v1411_v59 }
 0x7cc   : > { %v1413_v61 = vsub.f32 1.5, %v1412_v60 }
 0x7cd   : > { %v1987_v62 = vpop.eup %1986 }
 0x7ce   : > { %v1414_v63 = vmul.f32 %v1985_v57, %v1413_v61  ;;  %v1420_v0 = vmul.f32 %v1987_v62, %v1408_v22  ;;  %vm1426_vm11 = vweird.f32 %v1987_v62 }
 0x7cf   : > { %vm1427_vm13 = vmor %vm1425_vm12, %vm1426_vm11 }
 0x7d0   : > { %v1418_v2 = vsel %vm1417_vm9, %v1985_v57, %v1414_v63  ;;  %v1421_v3 = vmul.f32 %v1987_v62, %v1420_v0 }
 0x7d1   : > { %v1429_v4 = vmul.f32 %v1418_v2, %v1395_v38 }
 0x7d2   : > { %v1422_v6 = vmul.f32 0.5, %v1421_v3 }
 0x7d3   : > { %v1434_v7 = vmul.f32 %v1942_v1, %v1429_v4 }
 0x7d4   : > { %v1423_v8 = vsub.f32 1.5, %v1422_v6 }
 0x7d5   : > { %v1439_v9 = vadd.f32 %v1943_v5, %v1434_v7 }
 0x7d6   : > { %v1424_v10 = vmul.f32 %v1987_v62, %v1423_v8 }
 0x7d7   : > { %1872 = vmatmul.msk.f32.vlgmr.msra.gmra.mxu1 %vm820_vm10, %v1439_v9 }
 0x7d8   : > { %v1428_v11 = vsel %vm1427_vm13, %v1987_v62, %v1424_v10 }
 0x7d9   : > { %v1430_v14 = vmul.f32 %v1428_v11, %v1396_v42 }
 0x7db   : > { %v1435_v16 = vmul.f32 %v1942_v1, %v1430_v14 }
 0x7dd   : > { %v1440_v12 = vadd.f32 %v1943_v5, %v1435_v16 }
 0x7df   : > { %1873 = vmatmul.msk.f32.gmra.mxu1 %vm820_vm10, %v1440_v12 }
 0x854   : > { %v1472_v34 = vpop.f32.mrf.mxu1 }
 0x855   : > { %v1473_v36 = vadd.f32 %v1944_v33, %v1472_v34 }
 0x857   : > { %v1478_v37 = vmul.f32 %v1473_v36, %v1473_v36 }
 0x859   : > { %v1480_v13 = vmul.f32 %v1478_v37, %v1473_v36 }
 0x85b   : > { %v1482_v38 = vmul.f32 0.044715, %v1480_v13 }
 0x85c   : > { %v1475_v39 = vpop.f32.mrf.mxu1 }
 0x85d   : > { %v1484_v40 = vadd.f32 %v1482_v38, %v1473_v36  ;;  %v1476_v15 = vadd.f32 %v1944_v33, %v1475_v39 }
 0x85f   : > { %v1486_v41 = vmul.f32 0.7978846, %v1484_v40  ;;  %v1479_v42 = vmul.f32 %v1476_v15, %v1476_v15 }
 0x861   : > { %1988 = vtanh.f32 %v1486_v41  ;;  %v1481_v43 = vmul.f32 %v1479_v42, %v1476_v15 }
 0x863   : > { %v1483_v44 = vmul.f32 0.044715, %v1481_v43 }
 0x865   : > { %v1485_v45 = vadd.f32 %v1483_v44, %v1476_v15 }
 0x867   : > { %v1989_v46 = vpop.eup %1988  ;;  %v1487_v47 = vmul.f32 0.7978846, %v1485_v45 }
 0x868   : > { %v1490_v48 = vadd.f32 1.0, %v1989_v46 }
 0x869   : > { %1990 = vtanh.f32 %v1487_v47 }
 0x86a   : > { %v1492_v49 = vmul.f32 0.5, %v1490_v48 }
 0x86c   : > { %v1494_v50 = vmul.f32 %v1492_v49, %v1473_v36 }
 0x86e   : > { %1532 = vmatmul.f32.vlgmr.msra.gmra.mxu3 %v1494_v50 }
 0x86f   : > { %v1991_v51 = vpop.eup %1990 }
 0x870   : > { %v1491_v52 = vadd.f32 1.0, %v1991_v51 }
 0x872   : > { %v1493_v53 = vmul.f32 0.5, %v1491_v52 }
 0x874   : > { %v1495_v54 = vmul.f32 %v1493_v53, %v1476_v15 }
 0x876   : > { %1535 = vmatmul.f32.gmra.mxu3 %v1495_v54 }
 0x8f1   : > { %v1533_v56 = vpop.f32.mrf.mxu3 }
 0x8f2   : > { %v1534_v57 = vadd.f32 %v1945_v55, %v1533_v56 }
 0x8f4   : > { %v1539_v22 = vadd.f32 %v1534_v57, %v2388_v31 }
 0x8f6   : > { %1541 = vst.msk [vmem:[#allocation2] sm:$0xff] %vm820_vm10, %v1539_v22 }
 0x8f9   : > { %v1536_v58 = vpop.f32.mrf.mxu3 }
 0x8fa   : > { %v1537_v59 = vadd.f32 %v1945_v55, %v1536_v58  ;;  %1546 = sbr.rel (%p1874_p5) target bundleno = 2974 (0xb9e), region = 104 }
 0x8fc   : > { %v1540_v60 = vadd.f32 %v1537_v59, %v2393_v35 }
 0x8fe   : > { %1542 = vst.msk [vmem:[#allocation2 + $0x8] sm:$0xff] %vm820_vm10, %v1540_v60 }
 0x8ff   : > { %v1552_v61 = vsel %vm820_vm10, %v1540_v60, 0.0  ;;  %v1549_v62 = vsel %vm820_vm10, %v1539_v22, 0.0  ;;  %v1630_v10 = vld [vmem:[%s2512_s17 + $0x18] sm:$0xff]  ;;  %v1629_v11 = vld [vmem:[%s2512_s17 + $0x10] sm:$0xff]  ;;  %v1628_v16 = vld [vmem:[%s2512_s17 + $0x8] sm:$0xff]  ;;  %vm1659_vm5 = vcmask 254976  }
 0x900   : > { %1553 = vadd.xlane.f32.xlu0 %v1552_v61  ;;  %1650 = vmatpush.msra.mxu1 %v1630_v10  ;;  %v1992_v28 = vld [vmem:[%s2509_s14] ss:$0 sm:$0xff] }
 0x901   : > { %v1993_v32 = vld [vmem:[%s2542_s26] ss:$0 sm:$0xff] }
 0x902   : > { %1651 = vmatpush.msra.mxu1 %v1629_v11  ;;  %v1603_v41 = vld [vmem:[%s2543_s3] sm:$0x3] }
 0x903   : > { %v1627_v42 = vld [vmem:[%s2512_s17] sm:$0xff] }
 0x904   : > { %1652 = vmatpush.msra.mxu1 %v1628_v16  ;;  %v1994_v44 = vld [vmem:[%s2544_s20] ss:$0 sm:$0xff] }
 0x906   : > { %1653 = vmatpush.msra.mxu1 %v1627_v42 }
 0x908   : > { %1550 = vadd.xlane.f32.xlu0 %v1549_v62 }
 0x973   : > { %v1554_v63 = vpop.xlane.xlu0 %1553 }
 0x974   : > { %v1556_v31 = vmul.f32 %v1554_v63, %v2247_v23 }
 0x976   : > { %v1558_v0 = vsub.f32 %v1540_v60, %v1556_v31 }
 0x978   : > { %v1560_v1 = vmul.f32 %v1558_v0, %v1558_v0 }
 0x97a   : > { %v1564_v2 = vsel %vm820_vm10, %v1560_v1, 0.0 }
 0x97b   : > { %1565 = vadd.xlane.f32.xlu1 %v1564_v2  ;;  %v1551_v35 = vpop.xlane.xlu0 %1550 }
 0x97c   : > { %v1555_v3 = vmul.f32 %v1551_v35, %v2247_v23 }
 0x97e   : > { %v1557_v4 = vsub.f32 %v1539_v22, %v1555_v3 }
 0x980   : > { %v1559_v5 = vmul.f32 %v1557_v4, %v1557_v4 }
 0x982   : > { %v1561_v6 = vsel %vm820_vm10, %v1559_v5, 0.0 }
 0x983   : > { %1562 = vadd.xlane.f32.xlu1 %v1561_v6 }
 0x9ee   : > { %v1566_v7 = vpop.xlane.xlu1 %1565 }
 0x9ef   : > { %v1568_v8 = vmul.f32 %v1566_v7, %v2247_v23 }
 0x9f1   : > { %v1570_v9 = vadd.f32 1e-05, %v1568_v8 }
 0x9f3   : > { %1995 = vrsqrt.f32 %v1570_v9  ;;  %vm1587_vm15 = vweird.f32 %v1570_v9 }
 0x9f6   : > { %v1563_v14 = vpop.xlane.xlu1 %1562 }
 0x9f7   : > { %v1567_v12 = vmul.f32 %v1563_v14, %v2247_v23 }
 0x9f9   : > { %v1996_v17 = vpop.eup %1995  ;;  %v1569_v19 = vadd.f32 1e-05, %v1567_v12 }
 0x9fa   : > { %v1582_v20 = vmul.f32 %v1996_v17, %v1570_v9  ;;  %vm1588_vm14 = vweird.f32 %v1996_v17 }
 0x9fb   : > { %1997 = vrsqrt.f32 %v1569_v19  ;;  %vm1589_vm0 = vmor %vm1587_vm15, %vm1588_vm14  ;;  %vm1577_vm2 = vweird.f32 %v1569_v19 }
 0x9fc   : > { %v1583_v18 = vmul.f32 %v1996_v17, %v1582_v20 }
 0x9fe   : > { %v1584_v21 = vmul.f32 0.5, %v1583_v18 }
 0xa00   : > { %v1585_v24 = vsub.f32 1.5, %v1584_v21 }
 0xa01   : > { %v1998_v25 = vpop.eup %1997 }
 0xa02   : > { %v1572_v26 = vmul.f32 %v1998_v25, %v1569_v19  ;;  %v1586_v27 = vmul.f32 %v1996_v17, %v1585_v24  ;;  %vm1578_vm1 = vweird.f32 %v1998_v25 }
 0xa03   : > { %vm1579_vm4 = vmor %vm1577_vm2, %vm1578_vm1 }
 0xa04   : > { %v1573_v23 = vmul.f32 %v1998_v25, %v1572_v26  ;;  %v1590_v29 = vsel %vm1589_vm0, %v1996_v17, %v1586_v27 }
 0xa05   : > { %v1592_v30 = vmul.f32 %v1590_v29, %v1558_v0 }
 0xa06   : > { %v1574_v33 = vmul.f32 0.5, %v1573_v23 }
 0xa07   : > { %v1597_v34 = vmul.f32 %v1992_v28, %v1592_v30 }
 0xa08   : > { %v1575_v36 = vsub.f32 1.5, %v1574_v33 }
 0xa09   : > { %v1602_v37 = vadd.f32 %v1993_v32, %v1597_v34 }
 0xa0a   : > { %v1576_v13 = vmul.f32 %v1998_v25, %v1575_v36 }
 0xa0b   : > { %1621 = vmatpush.msra.mxu0 %v1602_v37 }
 0xa0c   : > { %v1580_v38 = vsel %vm1579_vm4, %v1998_v25, %v1576_v13 }
 0xa0d   : > { %v1591_v39 = vmul.f32 %v1580_v38, %v1557_v4 }
 0xa0f   : > { %v1596_v40 = vmul.f32 %v1992_v28, %v1591_v39 }
 0xa11   : > { %v1601_v15 = vadd.f32 %v1993_v32, %v1596_v40 }
 0xa13   : > { %1622 = vmatpush.msra.mxu0 %v1601_v15 }
 0xa14   : > { %1875 = vmatmul.msk.f32.vlgmr.msra.gmra.mxu0 %vm961_vm3, %v1603_v41 }
 0xa91   : > { %v1624_v43 = vpop.f32.mrf.mxu0 }
 0xa92   : > { %1876 = vmatmul.msk.f32.vlgmr.msra.gmra.mxu1 %vm820_vm10, %v1624_v43 }
 0xb0f   : > { %v1655_v45 = vpop.f32.mrf.mxu1 }
 0xb10   : > { %v1656_v46 = vadd.f32 %v1994_v44, %v1655_v45 }
 0xb12   : > { %v1658_v47 = vmul.f32 %v1656_v46, %v1656_v46 }
 0xb14   : > { %v1660_v48 = vsel %vm1659_vm5, %v1658_v47, 0.0 }
 0xb15   : > { %1661 = vadd.xlane.f32.xlu2 %v1660_v48 }
 0xb88   : > { %v1662_v49 = vpop.xlane.xlu2 %1661 }
 0xb89   : > { %1999 = vrsqrt.f32 %v1662_v49  ;;  %vm1669_vm10 = vweird.f32 %v1662_v49 }
 0xb8f   : > { %v2000_v50 = vpop.eup %1999 }
 0xb90   : > { %v1664_v51 = vmul.f32 %v2000_v50, %v1662_v49  ;;  %vm1670_vm3 = vweird.f32 %v2000_v50 }
 0xb91   : > { %vm1671_vm6 = vmor %vm1669_vm10, %vm1670_vm3 }
 0xb92   : > { %v1665_v52 = vmul.f32 %v2000_v50, %v1664_v51 }
 0xb94   : > { %v1666_v53 = vmul.f32 0.5, %v1665_v52 }
 0xb96   : > { %v1667_v54 = vsub.f32 1.5, %v1666_v53 }
 0xb98   : > { %v1668_v55 = vmul.f32 %v2000_v50, %v1667_v54 }
 0xb9a   : > { %v1672_v56 = vsel %vm1671_vm6, %v2000_v50, %v1668_v55 }
 0xb9b   : > { %v1673_v57 = vmul.f32 %v1672_v56, %v1656_v46 }
 0xb9d   : > { %1674 = vst.msk [vmem:[#allocation5] sm:$0x3] %vm1659_vm5, %v1673_v57 }
 0xb9e PF: > { %p1891_p6 = scmp.eq.s32.totalorder %s2164_s30, 1  ;;  %s2057_s27 = smov [#allocation5]  }
 0xb9f   : > { %s1681_s22 = sshll.u32 %s2057_s27, 4  ;;  %s2545_s24 = sld [smem:[#allocation18_spill]]  ;;  %s1682_s22 = int_to_ptr.vmem [resolvable:$true] %s1681_s22 }
 0xba5   : > { %s1683_s16 = sshll.u32 %s2545_s24, 4  ;;  %s1684_s16 = int_to_ptr.hbm [resolvable:$true] %s1683_s16 }
 0xba6   : > { %1888 = dma.vmem_to_hbm [thread:$0]  (%p1891_p6), %s1682_s22, 32, %s1684_s16, [#allocation6]  }
 0xba7   : > { %2034 = dma.done.wait (%p1891_p6), [#allocation6], 32  }
 0xba8   : > { %2036 = vsyncadd (%p1891_p6), [#allocation6], 4294967264 }
 0xba9 PF: > { %s2546_s25 = sld [smem:[#allocation8_spill]] }
 0xbaf   : > { %s30_s0 = sadd.s32 1, %s2546_s25  }
 0xbb0   : > { %p27_p7 = scmp.ge.s32.totalorder %s30_s0, 4  }
 0xbb2   :  { %29 = sbr.rel (!%p27_p7) target bundleno = 12 (0xc), region = 164 }
 0xbb7   :  { %1697 = vsyncpa [#allocation6], 1 }
 0xbb8   :  { %1699 = vsyncpa [#allocation6 + $0x1], 1 }

// kernel: forward.2
= control target key start
LH: loop header
LB: loop body
LE: loop exit
PB: predicated region body
PF: predicated region fallthrough
CT: control target
= control target key end

     0   :  { %s3999_s0 = inlined_call_operand.vmem [shape: f32[34,48], index: 0, kind: input, shape index: {}]   ;;  %s4000_s1 = inlined_call_operand.vmem [shape: f32[48,32], index: 1, kind: input, shape index: {}]   ;;  %s4001_s2 = inlined_call_operand.vmem [shape: f32[34,32], index: 2, kind: input, shape index: {}]   ;;  %s4002_s3 = inlined_call_operand.vmem [shape: f32[2,1,32], index: 3, kind: input, shape index: {}]   ;;  %s4003_s4 = inlined_call_operand.vmem [shape: f32[2,1,32], index: 4, kind: input, shape index: {}]   ;;  %s4004_s5 = inlined_call_operand.vmem [shape: f32[2,32,96], index: 5, kind: input, shape index: {}]   ;;  %s4005_s6 = inlined_call_operand.vmem [shape: f32[2,1,96], index: 6, kind: input, shape index: {}]   ;;  %s4006_s7 = inlined_call_operand.vmem [shape: f32[2,32,32], index: 7, kind: input, shape index: {}]   ;;  %s4007_s8 = inlined_call_operand.vmem [shape: f32[2,1,32], index: 8, kind: input, shape index: {}]   ;;  %s4008_s9 = inlined_call_operand.vmem [shape: f32[2,1,32], index: 9, kind: input, shape index: {}]   ;;  %s4009_s10 = inlined_call_operand.vmem [shape: f32[2,1,32], index: 10, kind: input, shape index: {}]   ;;  %s4010_s11 = inlined_call_operand.vmem [shape: f32[2,32,128], index: 11, kind: input, shape index: {}]   ;;  %s4011_s12 = inlined_call_operand.vmem [shape: f32[2,1,128], index: 12, kind: input, shape index: {}]   ;;  %s4012_s13 = inlined_call_operand.vmem [shape: f32[2,128,32], index: 13, kind: input, shape index: {}]   ;;  %s4013_s14 = inlined_call_operand.vmem [shape: f32[2,1,32], index: 14, kind: input, shape index: {}]   ;;  %s4014_s15 = inlined_call_operand.vmem [shape: f32[1,32], index: 15, kind: input, shape index: {}]   ;;  %s4015_s16 = inlined_call_operand.vmem [shape: f32[1,32], index: 16, kind: input, shape index: {}]   ;;  %s4016_s17 = inlined_call_operand.vmem [shape: f32[2,34], index: 17, kind: input, shape index: {}]   ;;  %s4017_s18 = inlined_call_operand.vmem [shape: f32[32,32], index: 18, kind: input, shape index: {}]   ;;  %s4018_s19 = inlined_call_operand.vmem [shape: f32[1,32], index: 19, kind: input, shape index: {}]   ;;  %s4019_s20 = inlined_call_operand.hbm [shape: f32[2,32], index: 20, kind: output, shape index: {}]  }
   0x1   :  { %4024 = sst [smem:[#allocation9_spill]] %s3999_s0 }
   0x2   :  { %4025 = sst [smem:[#allocation10_spill]] %s4000_s1 }
   0x3   :  { %4026 = sst [smem:[#allocation11_spill]] %s4001_s2 }
   0x4   :  { %4027 = sst [smem:[#allocation12_spill]] %s4002_s3 }
   0x5   :  { %4028 = sst [smem:[#allocation13_spill]] %s4003_s4 }
   0x6   :  { %4029 = sst [smem:[#allocation14_spill]] %s4004_s5 }
   0x7   :  { %4030 = sst [smem:[#allocation15_spill]] %s4006_s7 }
   0x8   :  { %4031 = sst [smem:[#allocation16_spill]] %s4015_s16 }
   0x9   :  { %4032 = sst [smem:[#allocation17_spill]] %s4016_s17 }
   0xa   :  { %4033 = sst [smem:[#allocation18_spill]] %s4018_s19 }
   0xb   :  { %4034 = sst [smem:[#allocation19_spill]] %s4019_s20 }
   0xc   :  { %25 = vsyncpa [#allocation6], 0  ;;  %s3222_s1 = smov 0  }
   0xd LB: > { %4035 = sst [smem:[#allocation8_spill]] %s3098_s1  ;;  %s3228_s22 = sadd.s32 4294967295, %s3098_s1   ;;  %s3098_s1 = sphi %s3222_s1, %s31_s1  }
   0xe   : > { %p2725_p0 = scmp.ge.s32.totalorder %s3098_s1, 1  ;;  %p652_p1 = scmp.lt.s32.totalorder %s3098_s1, 3 }
  0x10   : > { %p653_p2 = pnand %p2725_p0, %p652_p1 }
  0x11   : > { %p744_p3 = scmp.lt.s32.totalorder (!%p653_p2), %s3228_s22, 1  ;;  %s4038_s5 = sld [smem:[#allocation14_spill]] (!%p653_p2) }
  0x12   : > { %656 = sbr.rel (%p653_p2) target bundleno = 3349 (0xd15), region = 100  ;;  %s4039_s7 = sld [smem:[#allocation15_spill]] (!%p653_p2) }
  0x13   : > { %p2734_p4 = scmp.ne.s32.totalorder (!%p653_p2), %s3228_s22, 0 }
  0x17   : > { %s3234_s23 = scalar_select %p744_p3, %s3228_s22, 1 }
  0x18   : > { %s4040_s24 = sld [smem:[#allocation10_spill]] (!%p2734_p4) }
  0x19   : > { %s2827_s29 = sshll.u32 %s3234_s23, 5  ;;  %s768_s4 = scalar_lea.vmem %s4008_s9, %s3234_s23 }
  0x1a   : > { %s3252_s1 = scalar_lea.vmem %s4038_s5, %s2827_s29  ;;  %s3257_s17 = scalar_lea.vmem %s4039_s7, %s2827_s29 }
  0x1b   : > { %s771_s21 = scalar_lea.vmem %s4009_s10, %s3234_s23  ;;  %s3274_s5 = scalar_lea.vmem %s4010_s11, %s2827_s29 }
  0x1c   : > { %s779_s7 = scalar_lea.vmem %s4011_s12, %s3234_s23  ;;  %s2830_s16 = sshll.u32 %s3234_s23, 7 }
  0x1d   : > { %s3284_s26 = scalar_lea.vmem %s4012_s13, %s2830_s16  ;;  %s787_s30 = scalar_lea.vmem %s4013_s14, %s3234_s23 }
  0x1e   : > { %791 = sbr.rel (%p2734_p4) target bundleno = 190 (0xbe), region = 104  ;;  %s4041_s20 = sld [smem:[#allocation9_spill]] (!%p2734_p4) }
  0x1f   : > { %s4044_s3 = sld [smem:[#allocation11_spill]] (!%p2734_p4) }
  0x23   : > { %v802_v0 = vld [vmem:[%s4040_s24 + $0x28] sm:$0xff]  ;;  %v801_v1 = vld [vmem:[%s4040_s24 + $0x20] sm:$0xff]  ;;  %v800_v2 = vld [vmem:[%s4040_s24 + $0x18] sm:$0xff]  ;;  %vm808_vm0 = vcmask 392192   ;;  %v863_v11 = vlaneseq  ;;  %v3100_v17 = vmov -1e+30  }
  0x24   : > { %2833 = vmatpush.msra.mxu3 %v802_v0  ;;  %2832 = vmatpush.msra.mxu2 %v802_v0  ;;  %v799_v3 = vld [vmem:[%s4040_s24 + $0x10] sm:$0xff]  ;;  %v798_v4 = vld [vmem:[%s4040_s24 + $0x8] sm:$0xff]  ;;  %v797_v5 = vld [vmem:[%s4040_s24] sm:$0xff]  ;;  %vm935_vm11 = vcmask 277504   ;;  %vm940_vm13 = vcmask 271360  }
  0x25   : > { %834 = vmatpush.msra.mxu0 %v802_v0  ;;  %2831 = vmatpush.msra.mxu1 %v802_v0  ;;  %v795_v6 = vld [vmem:[%s4041_s20 + $0x18] sm:$0xff]  ;;  %v794_v7 = vld [vmem:[%s4041_s20 + $0x10] sm:$0xff]  ;;  %v792_v8 = vld [vmem:[%s4041_s20] sm:$0xff]  ;;  %v864_v12 = vshrl.u32 %v863_v11, 7  ;;  %v870_v14 = vand.u32 127, %v863_v11 }
  0x26   : > { %2836 = vmatpush.msra.mxu3 %v801_v1  ;;  %2835 = vmatpush.msra.mxu2 %v801_v1  ;;  %v793_v9 = vld [vmem:[%s4041_s20 + $0x8] sm:$0xff]  ;;  %v796_v10 = vld [vmem:[%s4041_s20 + $0x20] sm:$0x3]  ;;  %v806_v28 = vld [vmem:[%s4044_s3 + $0x18] sm:$0xff] }
  0x27   : > { %835 = vmatpush.msra.mxu0 %v801_v1  ;;  %2834 = vmatpush.msra.mxu1 %v801_v1  ;;  %v866_v13 = vadd.s32 16, %v864_v12  ;;  %v868_v15 = vadd.s32 32, %v864_v12  ;;  %vm913_vm2 = vcmp.ge.s32.totalorder %v870_v14, 17  ;;  %vm892_vm4 = vcmp.lt.s32.totalorder %v870_v14, 17  ;;  %v803_v22 = vld [vmem:[%s4044_s3] sm:$0xff]  ;;  %v804_v23 = vld [vmem:[%s4044_s3 + $0x8] sm:$0xff] }
  0x28   : > { %2839 = vmatpush.msra.mxu3 %v800_v2  ;;  %2838 = vmatpush.msra.mxu2 %v800_v2  ;;  %vm919_vm7 = vcmp.lt.s32.totalorder %v870_v14, 34  ;;  %v930_v18 = vsel %vm892_vm4, 0.0, %v3100_v17  ;;  %v805_v29 = vld [vmem:[%s4044_s3 + $0x10] sm:$0xff]  ;;  %v807_v34 = vld [vmem:[%s4044_s3 + $0x20] sm:$0x3] }
  0x29   : > { %836 = vmatpush.msra.mxu0 %v800_v2  ;;  %2837 = vmatpush.msra.mxu1 %v800_v2  ;;  %vm900_vm1 = vcmp.ge.s32.totalorder %v866_v13, 17  ;;  %vm878_vm3 = vcmp.lt.s32.totalorder %v866_v13, 17  ;;  %vm907_vm5 = vcmp.lt.s32.totalorder %v868_v15, 34  ;;  %vm923_vm12 = vmand %vm913_vm2, %vm919_vm7  ;;  %936 = vst.msk [vmem:[#allocation4] sm:$0xff] %vm935_vm11, %v930_v18 }
  0x2a   : > { %2842 = vmatpush.msra.mxu3 %v799_v3  ;;  %2841 = vmatpush.msra.mxu2 %v799_v3  ;;  %vm916_vm6 = vmand %vm900_vm1, %vm913_vm2  ;;  %v933_v19 = vsel %vm923_vm12, 0.0, %v3100_v17  ;;  %937 = vst.msk [vmem:[#allocation4 + $0x8] sm:$0xff] %vm935_vm11, %v930_v18  ;;  %vm861_vm1 = vcmask 254976  }
  0x2b   : > { %837 = vmatpush.msra.mxu0 %v799_v3  ;;  %2840 = vmatpush.msra.mxu1 %v799_v3  ;;  %vm3329_vm8 = vmand %vm878_vm3, %vm892_vm4  ;;  %939 = vst.msk [vmem:[#allocation4 + $0x18] sm:$0xff] %vm935_vm11, %v933_v19 }
  0x2c   : > { %2845 = vmatpush.msra.mxu3 %v798_v4  ;;  %2844 = vmatpush.msra.mxu2 %v798_v4  ;;  %vm918_vm9 = vmand %vm907_vm5, %vm913_vm2 }
  0x2d   : > { %838 = vmatpush.msra.mxu0 %v798_v4  ;;  %2843 = vmatpush.msra.mxu1 %v798_v4  ;;  %vm922_vm10 = vmand %vm916_vm6, %vm919_vm7 }
  0x2e   : > { %2848 = vmatpush.msra.mxu3 %v797_v5  ;;  %2847 = vmatpush.msra.mxu2 %v797_v5  ;;  %vm924_vm14 = vmand %vm918_vm9, %vm919_vm7 }
  0x2f   : > { %2738 = vmatmul.msk.f32.vlgmr.msra.gmra.mxu3 %vm808_vm0, %v795_v6  ;;  %2737 = vmatmul.msk.f32.vlgmr.msra.gmra.mxu2 %vm808_vm0, %v794_v7  ;;  %vm927_vm15 = vmor %vm3329_vm8, %vm922_vm10  ;;  %v934_v20 = vsel %vm924_vm14, 0.0, %v3100_v17 }
  0x30   : > { %839 = vmatpush.msra.mxu0 %v797_v5  ;;  %2846 = vmatpush.msra.mxu1 %v797_v5  ;;  %v932_v21 = vsel %vm927_vm15, 0.0, %v3100_v17  ;;  %941 = vst.msk [vmem:[#allocation4 + $0x20] sm:$0x3] %vm940_vm13, %v934_v20 }
  0x31   : > { %2735 = vmatmul.msk.f32.vlgmr.msra.gmra.mxu0 %vm808_vm0, %v792_v8  ;;  %2736 = vmatmul.msk.f32.vlgmr.msra.gmra.mxu1 %vm808_vm0, %v793_v9  ;;  %938 = vst.msk [vmem:[#allocation4 + $0x10] sm:$0xff] %vm935_vm11, %v932_v21 }
  0x37   : > { %2739 = vmatmul.msk.f32.gmra.mxu3 %vm808_vm0, %v796_v10  ;;  %vm856_vm0 = vcmask 261120  }
  0xae   : > { %v841_v24 = vpop.f32.mrf.mxu0  ;;  %v844_v25 = vpop.f32.mrf.mxu1 }
  0xaf   : > { %v842_v26 = vadd.f32 %v841_v24, %v803_v22  ;;  %v845_v27 = vadd.f32 %v844_v25, %v804_v23 }
  0xb1   : > { %857 = vst.msk [vmem:[#allocation2] sm:$0xff] %vm856_vm0, %v842_v26 }
  0xb2   : > { %v850_v30 = vpop.f32.mrf.mxu3  ;;  %858 = vst.msk [vmem:[#allocation2 + $0x8] sm:$0xff] %vm856_vm0, %v845_v27  ;;  %v847_v31 = vpop.f32.mrf.mxu2 }
  0xb3   : > { %v851_v32 = vadd.f32 %v850_v30, %v806_v28  ;;  %v848_v33 = vadd.f32 %v847_v31, %v805_v29 }
  0xb5   : > { %860 = vst.msk [vmem:[#allocation2 + $0x18] sm:$0xff] %vm856_vm0, %v851_v32 }
  0xb6   : > { %859 = vst.msk [vmem:[#allocation2 + $0x10] sm:$0xff] %vm856_vm0, %v848_v33 }
  0xba   : > { %v853_v35 = vpop.f32.mrf.mxu3 }
  0xbb   : > { %v854_v36 = vadd.f32 %v853_v35, %v807_v34 }
  0xbd   : > { %862 = vst.msk [vmem:[#allocation2 + $0x20] sm:$0x3] %vm861_vm1, %v854_v36 }
  0xbe PF: > { %v944_v37 = vld [vmem:[#allocation2 + $0x10] sm:$0xff]  ;;  %vm954_vm2 = vcmask 261120   ;;  %v942_v38 = vld [vmem:[#allocation2] sm:$0xff]  ;;  %vm967_vm3 = vcmask 254976   ;;  %v945_v42 = vld [vmem:[#allocation2 + $0x18] sm:$0xff]  ;;  %v3101_v47 = vmov 32.0   ;;  %s4049_s25 = scalar_lea.vmem %s4005_s6, %s3234_s23 }
  0xbf   : > { %v961_v39 = vsel %vm954_vm2, %v944_v37, 0.0  ;;  %v955_v40 = vsel %vm954_vm2, %v942_v38, 0.0  ;;  %v943_v43 = vld [vmem:[#allocation2 + $0x8] sm:$0xff]  ;;  %v964_v45 = vsel %vm954_vm2, %v945_v42, 0.0  ;;  %2928 = vrcp.f32 %v3101_v47  ;;  %v1092_v15 = vld [vmem:[%s3252_s1 + $0x18] sm:$0xff]  ;;  %v1091_v16 = vld [vmem:[%s3252_s1 + $0x10] sm:$0xff] }
  0xc0   : > { %962 = vadd.xlane.f32.xlu1 %v961_v39  ;;  %956 = vadd.xlane.f32.xlu0 %v955_v40  ;;  %v958_v46 = vsel %vm954_vm2, %v943_v43, 0.0  ;;  %v1090_v17 = vld [vmem:[%s3252_s1 + $0x8] sm:$0xff]  ;;  %v1089_v18 = vld [vmem:[%s3252_s1] sm:$0xff]  ;;  %s4045_s27 = sld [smem:[#allocation12_spill]]  ;;  %s3104_s0 = smov 80  }
  0xc1   : > { %1124 = vmatpush.msra.mxu0 %v1092_v15  ;;  %s4047_s2 = sld [smem:[#allocation13_spill]]  ;;  %s3105_s29 = smov 120  }
  0xc2   : > { %s3108_s16 = smov 104   ;;  %s3109_s1 = smov 112  }
  0xc3   : > { %1125 = vmatpush.msra.mxu0 %v1091_v16  ;;  %p2819_p5 = scmp.ne.s32.totalorder %s3228_s22, 1 }
  0xc4   : > { %v946_v41 = vld [vmem:[#allocation2 + $0x20] sm:$0x3] }
  0xc5   : > { %v968_v44 = vsel %vm967_vm3, %v946_v41, 0.0  ;;  %v2929_v48 = vpop.eup %2928  ;;  %1126 = vmatpush.msra.mxu0 %v1090_v17 }
  0xc6   : > { %969 = vadd.xlane.f32.xlu2 %v968_v44  ;;  %v972_v49 = vmul.f32 32.0, %v2929_v48  ;;  %vm976_vm4 = vweird.f32 %v2929_v48  ;;  %s4046_s28 = scalar_lea.vmem %s4045_s27, %s3234_s23  ;;  %s3102_s27 = smov 96  }
  0xc7   : > { %1127 = vmatpush.msra.mxu0 %v1089_v18  ;;  %s4048_s19 = scalar_lea.vmem %s4047_s2, %s3234_s23  ;;  %s3106_s2 = smov 64  }
  0xc8   : > { %965 = vadd.xlane.f32.xlu1 %v964_v45  ;;  %959 = vadd.xlane.f32.xlu0 %v958_v46  ;;  %v973_v50 = vsub.f32 1.0, %v972_v49 }
  0xca   : > { %v974_v51 = vmul.f32 %v2929_v48, %v973_v50 }
  0xcc   : > { %v975_v52 = vadd.f32 %v2929_v48, %v974_v51 }
  0xce   : > { %v3355_v53 = vsel %vm976_vm4, %v2929_v48, %v975_v52  ;;  %v2920_v48 = vld [vmem:[%s4046_s28] ss:$0 sm:$0xff]  ;;  %s3103_s28 = smov 88  }
  0xcf   : > { %v2921_v52 = vld [vmem:[%s4048_s19] ss:$0 sm:$0xff]  ;;  %s3107_s19 = smov 72  }
 0x133   : > { %v963_v54 = vpop.xlane.xlu1 %962  ;;  %v957_v55 = vpop.xlane.xlu0 %956 }
 0x134   : > { %v980_v56 = vmul.f32 %v3355_v53, %v963_v54  ;;  %v978_v57 = vmul.f32 %v3355_v53, %v957_v55 }
 0x136   : > { %v3359_v58 = vsub.f32 %v944_v37, %v980_v56  ;;  %v3361_v59 = vsub.f32 %v942_v38, %v978_v57 }
 0x138   : > { %v990_v60 = vmul.f32 %v3359_v58, %v3359_v58  ;;  %v988_v61 = vmul.f32 %v3361_v59, %v3361_v59 }
 0x139   : > { %v970_v62 = vpop.xlane.xlu2 %969 }
 0x13a   : > { %v999_v63 = vsel %vm954_vm2, %v990_v60, 0.0  ;;  %v993_v0 = vsel %vm954_vm2, %v988_v61, 0.0  ;;  %v982_v5 = vmul.f32 %v3355_v53, %v970_v62 }
 0x13b   : > { %1000 = vadd.xlane.f32.xlu1 %v999_v63  ;;  %v966_v1 = vpop.xlane.xlu1 %965  ;;  %994 = vadd.xlane.f32.xlu2 %v993_v0  ;;  %v960_v2 = vpop.xlane.xlu0 %959 }
 0x13c   : > { %v981_v3 = vmul.f32 %v3355_v53, %v966_v1  ;;  %v979_v4 = vmul.f32 %v3355_v53, %v960_v2  ;;  %v3376_v8 = vsub.f32 %v946_v41, %v982_v5 }
 0x13e   : > { %v3372_v6 = vsub.f32 %v945_v42, %v981_v3  ;;  %v3374_v7 = vsub.f32 %v943_v43, %v979_v4  ;;  %v992_v13 = vmul.f32 %v3376_v8, %v3376_v8 }
 0x140   : > { %v991_v9 = vmul.f32 %v3372_v6, %v3372_v6  ;;  %v989_v10 = vmul.f32 %v3374_v7, %v3374_v7  ;;  %v1005_v14 = vsel %vm967_vm3, %v992_v13, 0.0 }
 0x142   : > { %v1002_v11 = vsel %vm954_vm2, %v991_v9, 0.0  ;;  %v996_v12 = vsel %vm954_vm2, %v989_v10, 0.0 }
 0x143   : > { %1003 = vadd.xlane.f32.xlu2 %v1002_v11  ;;  %997 = vadd.xlane.f32.xlu0 %v996_v12 }
 0x14b   : > { %1006 = vadd.xlane.f32.xlu0 %v1005_v14 }
 0x1ae   : > { %v1001_v19 = vpop.xlane.xlu1 %1000  ;;  %v995_v20 = vpop.xlane.xlu2 %994 }
 0x1af   : > { %v1010_v21 = vmul.f32 %v1001_v19, %v3355_v53  ;;  %v1008_v22 = vmul.f32 %v995_v20, %v3355_v53 }
 0x1b1   : > { %v1015_v23 = vadd.f32 1e-05, %v1010_v21  ;;  %v1013_v24 = vadd.f32 1e-05, %v1008_v22 }
 0x1b3   : > { %2930 = vrsqrt.f32 %v1015_v23  ;;  %vm1024_vm6 = vweird.f32 %v1013_v24  ;;  %vm1044_vm8 = vweird.f32 %v1015_v23 }
 0x1b4   : > { %2932 = vrsqrt.f32 %v1013_v24 }
 0x1b6   : > { %v1004_v25 = vpop.xlane.xlu2 %1003  ;;  %v998_v26 = vpop.xlane.xlu0 %997 }
 0x1b7   : > { %v1011_v27 = vmul.f32 %v1004_v25, %v3355_v53  ;;  %v1009_v28 = vmul.f32 %v998_v26, %v3355_v53 }
 0x1b9   : > { %v2931_v29 = vpop.eup %2930  ;;  %v1016_v30 = vadd.f32 1e-05, %v1011_v27  ;;  %v1014_v31 = vadd.f32 1e-05, %v1009_v28 }
 0x1ba   : > { %v2933_v32 = vpop.eup %2932  ;;  %v1039_v33 = vmul.f32 %v2931_v29, %v1015_v23  ;;  %vm1045_vm9 = vweird.f32 %v2931_v29 }
 0x1bb   : > { %v1019_v34 = vmul.f32 %v2933_v32, %v1013_v24  ;;  %2934 = vrsqrt.f32 %v1016_v30  ;;  %vm1025_vm5 = vweird.f32 %v2933_v32  ;;  %vm1034_vm11 = vweird.f32 %v1014_v31  ;;  %vm1046_vm12 = vmor %vm1044_vm8, %vm1045_vm9 }
 0x1bc   : > { %2936 = vrsqrt.f32 %v1014_v31  ;;  %v1040_v36 = vmul.f32 %v2931_v29, %v1039_v33  ;;  %vm1026_vm7 = vmor %vm1024_vm6, %vm1025_vm5  ;;  %vm1054_vm14 = vweird.f32 %v1016_v30  ;;  %vm1164_vm6 = vcmask 64512  }
 0x1bd   : > { %v1020_v35 = vmul.f32 %v2933_v32, %v1019_v34  ;;  %vm1222_vm8 = vcmask 277504   ;;  %vm1235_vm9 = vcmask 271360  }
 0x1be   : > { %v1007_v37 = vpop.xlane.xlu0 %1006  ;;  %v1041_v44 = vmul.f32 0.5, %v1040_v36 }
 0x1bf   : > { %v1021_v38 = vmul.f32 0.5, %v1020_v35  ;;  %v1012_v39 = vmul.f32 %v1007_v37, %v3355_v53 }
 0x1c0   : > { %v1042_v54 = vsub.f32 1.5, %v1041_v44 }
 0x1c1   : > { %v2935_v40 = vpop.eup %2934  ;;  %v1022_v41 = vsub.f32 1.5, %v1021_v38  ;;  %v1017_v42 = vadd.f32 1e-05, %v1012_v39 }
 0x1c2   : > { %v2937_v43 = vpop.eup %2936  ;;  %v1049_v46 = vmul.f32 %v2935_v40, %v1016_v30  ;;  %v1043_v63 = vmul.f32 %v2931_v29, %v1042_v54  ;;  %vm1055_vm15 = vweird.f32 %v2935_v40 }
 0x1c3   : > { %v1023_v45 = vmul.f32 %v2933_v32, %v1022_v41  ;;  %v1029_v47 = vmul.f32 %v2937_v43, %v1014_v31  ;;  %2938 = vrsqrt.f32 %v1017_v42  ;;  %vm1035_vm10 = vweird.f32 %v2937_v43  ;;  %vm1056_vm0 = vmor %vm1054_vm14, %vm1055_vm15 }
 0x1c4   : > { %v1050_v55 = vmul.f32 %v2935_v40, %v1049_v46  ;;  %vm1036_vm13 = vmor %vm1034_vm11, %vm1035_vm10  ;;  %v1047_v4 = vsel %vm1046_vm12, %v2931_v29, %v1043_v63  ;;  %vm1064_vm1 = vweird.f32 %v1017_v42  ;;  %vm1347_vm10 = vcmask 58368  }
 0x1c5   : > { %v1027_v49 = vsel %vm1026_vm7, %v2933_v32, %v1023_v45  ;;  %v1030_v50 = vmul.f32 %v2937_v43, %v1029_v47  ;;  %v1070_v12 = vmul.f32 %v1047_v4, %v3359_v58  ;;  %vm1308_vm7 = vcmask 1041408  }
 0x1c6   : > { %v1068_v51 = vmul.f32 %v1027_v49, %v3361_v59  ;;  %v1051_v0 = vmul.f32 0.5, %v1050_v55  ;;  %vm1559_vm11 = vcmask 130112   ;;  %vm1776_vm12 = vcmask 195712  }
 0x1c7   : > { %v1031_v56 = vmul.f32 0.5, %v1030_v50  ;;  %v1078_v15 = vmul.f32 %v2920_v48, %v1070_v12  ;;  %vm1564_vm14 = vcmask 123968   ;;  %vm1781_vm15 = vcmask 189568  }
 0x1c8   : > { %v1076_v57 = vmul.f32 %v2920_v48, %v1068_v51  ;;  %v1052_v5 = vsub.f32 1.5, %v1051_v0 }
 0x1c9   : > { %v2939_v60 = vpop.eup %2938  ;;  %v1032_v61 = vsub.f32 1.5, %v1031_v56 }
 0x1ca   : > { %v1084_v62 = vadd.f32 %v2921_v52, %v1076_v57  ;;  %v1059_v1 = vmul.f32 %v2939_v60, %v1017_v42  ;;  %v1053_v13 = vmul.f32 %v2935_v40, %v1052_v5  ;;  %vm1065_vm4 = vweird.f32 %v2939_v60 }
 0x1cb   : > { %v1033_v59 = vmul.f32 %v2937_v43, %v1032_v61  ;;  %vm1066_vm5 = vmor %vm1064_vm1, %vm1065_vm4 }
 0x1cc   : > { %2740 = vmatmul.msk.f32.vlgmr.msra.gmra.mxu0 %vm954_vm2, %v1084_v62  ;;  %v1060_v9 = vmul.f32 %v2939_v60, %v1059_v1  ;;  %v1057_v16 = vsel %vm1056_vm0, %v2935_v40, %v1053_v13  ;;  %vm1998_vm0 = vcmask 255168  }
 0x1cd   : > { %v1037_v2 = vsel %vm1036_vm13, %v2937_v43, %v1033_v59  ;;  %v1071_v18 = vmul.f32 %v1057_v16, %v3372_v6  ;;  %v2922_v6 = vld [vmem:[%s4049_s25] ss:$0 sm:$0xff]  ;;  %s3110_s25 = smov 56   ;;  %vm1993_vm13 = vcmask 261312  }
 0x1ce   : > { %v1069_v3 = vmul.f32 %v1037_v2, %v3374_v7  ;;  %v1061_v14 = vmul.f32 0.5, %v1060_v9  ;;  %v1086_v7 = vadd.f32 %v2921_v52, %v1078_v15 }
 0x1cf   : > { %v1079_v20 = vmul.f32 %v2920_v48, %v1071_v18 }
 0x1d0   : > { %v1077_v10 = vmul.f32 %v2920_v48, %v1069_v3  ;;  %v1062_v17 = vsub.f32 1.5, %v1061_v14 }
 0x1d1   : > { %v1087_v21 = vadd.f32 %v2921_v52, %v1079_v20 }
 0x1d2   : > { %v1085_v11 = vadd.f32 %v2921_v52, %v1077_v10  ;;  %v1063_v19 = vmul.f32 %v2939_v60, %v1062_v17 }
 0x1d4   : > { %2741 = vmatmul.msk.f32.gmra.mxu0 %vm954_vm2, %v1085_v11  ;;  %v1067_v58 = vsel %vm1066_vm5, %v2939_v60, %v1063_v19 }
 0x1d5   : > { %v1072_v22 = vmul.f32 %v1067_v58, %v3376_v8  ;;  %v3497_v58 = vld [vmem:[#allocation4 + $0x8] sm:$0xff] }
 0x1d7   : > { %v1080_v23 = vmul.f32 %v2920_v48, %v1072_v22 }
 0x1d9   : > { %v1088_v24 = vadd.f32 %v2921_v52, %v1080_v23 }
 0x1dc   : > { %2742 = vmatmul.msk.f32.gmra.mxu0 %vm954_vm2, %v1086_v7  ;;  %v3492_v7 = vld [vmem:[#allocation4] sm:$0xff] }
 0x1e4   : > { %2743 = vmatmul.msk.f32.gmra.mxu0 %vm954_vm2, %v1087_v21 }
 0x1ec   : > { %2744 = vmatmul.msk.f32.gmra.mxu0 %vm954_vm2, %v1088_v24  ;;  %v3501_v24 = vld [vmem:[#allocation4 + $0x10] sm:$0xff] }
 0x249   : > { %v1129_v25 = vpop.f32.mrf.mxu0 }
 0x24a   : > { %v1130_v34 = vadd.f32 %v2922_v6, %v1129_v25 }
 0x24c   : > { %v1144_v37 = vmul.f32 0.35355338, %v1130_v34 }
 0x251   : > { %v1132_v26 = vpop.f32.mrf.mxu0 }
 0x252   : > { %v1133_v32 = vadd.f32 %v2922_v6, %v1132_v26 }
 0x254   : > { %v3434_v36 = vpack.i.bf16 %v1130_v34, %v1133_v32  ;;  %v1145_v38 = vmul.f32 0.35355338, %v1133_v32 }
 0x259   : > { %v1135_v27 = vpop.f32.mrf.mxu0 }
 0x25a   : > { %v1136_v28 = vadd.f32 %v2922_v6, %v1135_v27  ;;  %v3505_v27 = vld [vmem:[#allocation4 + $0x18] sm:$0xff] }
 0x25c   : > { %1158 = vrot.lane.b32.xlu0 %v1136_v28, %s3102_s27  ;;  %v3430_v35 = vmul.f32 0.35355338, %v1136_v28 }
 0x261   : > { %v1138_v29 = vpop.f32.mrf.mxu0 }
 0x262   : > { %v1139_v30 = vadd.f32 %v2922_v6, %v1138_v29 }
 0x264   : > { %1160 = vrot.lane.b32.xlu2 %v1139_v30, %s3102_s27  ;;  %1365 = vrot.lane.b32.xlu0 %v1139_v30, %s3103_s28  ;;  %v3422_v8 = vpack.i.bf16 %v1136_v28, %v1139_v30  ;;  %v3438_v39 = vmul.f32 0.35355338, %v1139_v30 }
 0x269   : > { %v1141_v31 = vpop.f32.mrf.mxu0 }
 0x26a   : > { %v3424_v33 = vadd.f32 %v2922_v6, %v1141_v31  ;;  %v3515_v31 = vld [vmem:[#allocation4 + $0x20] sm:$0x3] }
 0x26c   : > { %1361 = vrot.lane.b32.xlu0 %v1133_v32, %s3103_s28  ;;  %1156 = vrot.lane.b32.xlu2 %v1133_v32, %s3102_s27  ;;  %v3445_v40 = vmul.f32 0.35355338, %v3424_v33 }
 0x26d   : > { %1162 = vrot.lane.b32.xlu1 %v3424_v33, %s3102_s27 }
 0x274   : > { %1359 = vrot.lane.b32.xlu0 %v1130_v34, %s3103_s28  ;;  %1363 = vrot.lane.b32.xlu2 %v1136_v28, %s3103_s28 }
 0x275   : > { %1154 = vrot.lane.b32.xlu1 %v1130_v34, %s3102_s27  ;;  %s3111_s27 = smov 48  }
 0x27c   : > { %1582 = vrot.lane.b32.xlu0 %v1139_v30, %s3104_s0  ;;  %1353 = vrot.lane.b32.xlu2 %v3430_v35, %s3105_s29 }
 0x27d   : > { %2881 = vrot.lane.b32.xlu1 %v3422_v8, %s3106_s2 }
 0x284   : > { %1580 = vrot.lane.b32.xlu0 %v1136_v28, %s3104_s0  ;;  %1799 = vrot.lane.b32.xlu2 %v1139_v30, %s3107_s19 }
 0x285   : > { %2886 = vrot.lane.b32.xlu1 %v3434_v36, %s3106_s2 }
 0x28c   : > { %1576 = vrot.lane.b32.xlu0 %v1130_v34, %s3104_s0  ;;  %1797 = vrot.lane.b32.xlu2 %v1136_v28, %s3107_s19 }
 0x28d   : > { %1349 = vrot.lane.b32.xlu1 %v1144_v37, %s3105_s29 }
 0x294   : > { %1783 = vrot.lane.b32.xlu0 %v1144_v37, %s3108_s16  ;;  %1578 = vrot.lane.b32.xlu2 %v1133_v32, %s3104_s0 }
 0x295   : > { %1351 = vrot.lane.b32.xlu1 %v1145_v38, %s3105_s29 }
 0x29c   : > { %1793 = vrot.lane.b32.xlu2 %v1130_v34, %s3107_s19  ;;  %1287 = vrot.lane.b32.xlu0 %v3424_v33, %s3106_s2  ;;  %s3115_s2 = smov 16  }
 0x29d   : > { %1355 = vrot.lane.b32.xlu1 %v3438_v39, %s3105_s29 }
 0x2a4   : > { %1568 = vrot.lane.b32.xlu2 %v1145_v38, %s3109_s1  ;;  %1584 = vrot.lane.b32.xlu0 %v3424_v33, %s3104_s0  ;;  %s3113_s0 = smov 8  }
 0x2a5   : > { %1795 = vrot.lane.b32.xlu1 %v1133_v32, %s3107_s19 }
 0x2ac   : > { %1801 = vrot.lane.b32.xlu2 %v3424_v33, %s3107_s19  ;;  %1357 = vrot.lane.b32.xlu0 %v3445_v40, %s3105_s29  ;;  %s3114_s29 = smov 24  }
 0x2ad   : > { %1566 = vrot.lane.b32.xlu1 %v1144_v37, %s3109_s1 }
 0x2b5   : > { %1785 = vrot.lane.b32.xlu1 %v1145_v38, %s3108_s16 }
 0x2bd   : > { %1367 = vrot.lane.b32.xlu1 %v3424_v33, %s3103_s28  ;;  %s3112_s28 = smov 40  }
 0x2be   : > { %v1161_v45 = vpop.permute.xlu2 %1160 }
 0x2c6   : > { %v1157_v48 = vpop.permute.xlu2 %1156 }
 0x2ce   : > { %v1159_v41 = vpop.permute.xlu0 %1158  ;;  %v1364_v54 = vpop.permute.xlu2 %1363 }
 0x2d6   : > { %v1366_v42 = vpop.permute.xlu0 %1365  ;;  %v1354_v57 = vpop.permute.xlu2 %1353 }
 0x2de   : > { %v1362_v43 = vpop.permute.xlu0 %1361  ;;  %v1800_v62 = vpop.permute.xlu2 %1799 }
 0x2df   : > { %v1163_v44 = vpop.permute.xlu1 %1162 }
 0x2e0   : > { %2745 = vmatpush.xpose.msk.msra.mxu1 %vm1164_vm6, %v1163_v44 }
 0x2e4   : > { %2746 = vmatpush.xpose.msk.msra.mxu1 %vm1164_vm6, %v1161_v45 }
 0x2e6   : > { %v1360_v46 = vpop.permute.xlu0 %1359  ;;  %v1798_v9 = vpop.permute.xlu2 %1797 }
 0x2e7   : > { %v1155_v47 = vpop.permute.xlu1 %1154 }
 0x2e8   : > { %2747 = vmatpush.xpose.msk.msra.mxu1 %vm1164_vm6, %v1159_v41 }
 0x2ec   : > { %2748 = vmatpush.xpose.msk.msra.mxu1 %vm1164_vm6, %v1157_v48 }
 0x2ee   : > { %v1583_v49 = vpop.permute.xlu0 %1582  ;;  %v1579_v11 = vpop.permute.xlu2 %1578 }
 0x2ef   : > { %v2882_v50 = vpop.permute.xlu1 %2881 }
 0x2f0   : > { %2749 = vmatpush.xpose.msk.msra.mxu1 %vm1164_vm6, %v1155_v47  ;;  %v2883_v59 = vunpack.i.l.bf16 %v2882_v50  ;;  %v2884_v1 = vunpack.i.h.bf16 %v2882_v50 }
 0x2f3   : > { %2750 = vmatmul.msk.f32.vlgmr.msra.gmra.mxu1 %vm1164_vm6, %v1144_v37 }
 0x2f6   : > { %v1581_v51 = vpop.permute.xlu0 %1580  ;;  %v1794_v13 = vpop.permute.xlu2 %1793 }
 0x2f7   : > { %v2887_v52 = vpop.permute.xlu1 %2886 }
 0x2f8   : > { %v2888_v2 = vunpack.i.l.bf16 %v2887_v52  ;;  %v2889_v3 = vunpack.i.h.bf16 %v2887_v52 }
 0x2fb   : > { %2751 = vmatmul.msk.f32.gmra.mxu1 %vm1164_vm6, %v1145_v38 }
 0x2fe   : > { %v1577_v55 = vpop.permute.xlu0 %1576  ;;  %v3476_v15 = vpop.permute.xlu2 %1568 }
 0x2ff   : > { %v1350_v56 = vpop.permute.xlu1 %1349 }
 0x303   : > { %2752 = vmatmul.msk.f32.gmra.mxu1 %vm1164_vm6, %v3430_v35 }
 0x306   : > { %v1784_v60 = vpop.permute.xlu0 %1783  ;;  %v1802_v16 = vpop.permute.xlu2 %1801 }
 0x307   : > { %v1352_v61 = vpop.permute.xlu1 %1351 }
 0x30b   : > { %2753 = vmatmul.msk.f32.gmra.mxu1 %vm1164_vm6, %v3438_v39 }
 0x30e   : > { %v1288_v63 = vpop.permute.xlu0 %1287 }
 0x30f   : > { %v1356_v0 = vpop.permute.xlu1 %1355  ;;  %2755 = vmatpush.msk.msra.mxu2 %vm1308_vm7, %v1288_v63 }
 0x311   : > { %1323 = vmatpush.msra.mxu2 %v2883_v59 }
 0x313   : > { %2754 = vmatmul.msk.f32.gmra.mxu1 %vm1164_vm6, %v3445_v40  ;;  %1324 = vmatpush.msra.mxu2 %v2884_v1 }
 0x315   : > { %1325 = vmatpush.msra.mxu2 %v2888_v2 }
 0x316   : > { %v1585_v4 = vpop.permute.xlu0 %1584 }
 0x317   : > { %v1796_v5 = vpop.permute.xlu1 %1795  ;;  %1326 = vmatpush.msra.mxu2 %v2889_v3 }
 0x319   : > { %2777 = vmatpush.xpose.msk.msrb.mxu2 %vm1164_vm6, %v1585_v4 }
 0x31d   : > { %2778 = vmatpush.xpose.msk.msrb.mxu2 %vm1164_vm6, %v1583_v49 }
 0x31e   : > { %v1358_v17 = vpop.permute.xlu0 %1357 }
 0x31f   : > { %v3469_v10 = vpop.permute.xlu1 %1566 }
 0x321   : > { %2779 = vmatpush.xpose.msk.msrb.mxu2 %vm1164_vm6, %v1581_v51 }
 0x325   : > { %2780 = vmatpush.xpose.msk.msrb.mxu2 %vm1164_vm6, %v1579_v11 }
 0x327   : > { %v1786_v12 = vpop.permute.xlu1 %1785 }
 0x329   : > { %2781 = vmatpush.xpose.msk.msrb.mxu2 %vm1164_vm6, %v1577_v55 }
 0x32f   : > { %v1368_v14 = vpop.permute.xlu1 %1367 }
 0x330   : > { %2761 = vmatpush.xpose.msk.msra.mxu3 %vm1164_vm6, %v1368_v14 }
 0x334   : > { %2762 = vmatpush.xpose.msk.msra.mxu3 %vm1164_vm6, %v1366_v42 }
 0x338   : > { %2763 = vmatpush.xpose.msk.msra.mxu3 %vm1164_vm6, %v1364_v54 }
 0x33c   : > { %2764 = vmatpush.xpose.msk.msra.mxu3 %vm1164_vm6, %v1362_v43 }
 0x340   : > { %2765 = vmatpush.xpose.msk.msra.mxu3 %vm1164_vm6, %v1360_v46 }
 0x343   : > { %2766 = vmatmul.msk.f32.vlgmr.msra.gmra.mxu3 %vm1164_vm6, %v1350_v56 }
 0x344   : > { %2793 = vmatpush.xpose.msk.msrb.mxu3 %vm1164_vm6, %v1802_v16 }
 0x348   : > { %2794 = vmatpush.xpose.msk.msrb.mxu3 %vm1164_vm6, %v1800_v62 }
 0x34b   : > { %2767 = vmatmul.msk.f32.gmra.mxu3 %vm1164_vm6, %v1352_v61 }
 0x34c   : > { %2795 = vmatpush.xpose.msk.msrb.mxu3 %vm1164_vm6, %v1798_v9 }
 0x350   : > { %2796 = vmatpush.xpose.msk.msrb.mxu3 %vm1164_vm6, %v1796_v5 }
 0x353   : > { %2768 = vmatmul.msk.f32.gmra.mxu3 %vm1164_vm6, %v1354_v57 }
 0x354   : > { %2797 = vmatpush.xpose.msk.msrb.mxu3 %vm1164_vm6, %v1794_v13 }
 0x35b   : > { %2769 = vmatmul.msk.f32.gmra.mxu3 %vm1164_vm6, %v1356_v0 }
 0x363   : > { %2770 = vmatmul.msk.f32.gmra.mxu3 %vm1164_vm6, %v1358_v17 }
 0x36b   : > { %2798 = vmatmul.msk.f32.vlgmr.msrb.gmra.mxu3 %vm1164_vm6, %v1784_v60 }
 0x370   : > { %v1207_v18 = vpop.f32.mrf.mxu1 }
 0x371   : > { %v1208_v19 = vadd.f32 %v1207_v18, %v3492_v7 }
 0x373   : > { %2799 = vmatmul.msk.f32.gmra.mxu3 %vm1164_vm6, %v1786_v12  ;;  %v1223_v20 = vsel %vm1222_vm8, %v1208_v19, -inf }
 0x374   : > { %1224 = vmax.xlane.f32.xlu0 %v1223_v20 }
 0x378   : > { %v1210_v21 = vpop.f32.mrf.mxu1 }
 0x379   : > { %v1211_v22 = vadd.f32 %v1210_v21, %v3497_v58 }
 0x37b   : > { %v1226_v23 = vsel %vm1222_vm8, %v1211_v22, -inf }
 0x37c   : > { %1227 = vmax.xlane.f32.xlu2 %v1226_v23 }
 0x380   : > { %v1213_v25 = vpop.f32.mrf.mxu1 }
 0x381   : > { %v1214_v26 = vadd.f32 %v1213_v25, %v3501_v24 }
 0x383   : > { %v1229_v6 = vsel %vm1222_vm8, %v1214_v26, -inf }
 0x384   : > { %1230 = vmax.xlane.f32.xlu1 %v1229_v6 }
 0x388   : > { %v1216_v28 = vpop.f32.mrf.mxu1 }
 0x389   : > { %v1217_v29 = vadd.f32 %v1216_v28, %v3505_v27 }
 0x38b   : > { %v1232_v30 = vsel %vm1222_vm8, %v1217_v29, -inf }
 0x38c   : > { %1233 = vmax.xlane.f32.xlu0 %v1232_v30 }
 0x390   : > { %v1219_v32 = vpop.f32.mrf.mxu1 }
 0x391   : > { %v1220_v34 = vadd.f32 %v1219_v32, %v3515_v31 }
 0x393   : > { %v1236_v37 = vsel %vm1235_vm9, %v1220_v34, -inf }
 0x394   : > { %1787 = vrot.lane.b32.xlu2 %v3430_v35, %s3108_s16 }
 0x39d   : > { %1572 = vrot.lane.b32.xlu1 %v3438_v39, %s3109_s1 }
 0x3a0   : > { %1570 = vrot.lane.b32.xlu0 %v3430_v35, %s3109_s1 }
 0x3bd   : > { %1237 = vmax.xlane.f32.xlu2 %v1236_v37 }
 0x3c6   : > { %v1406_v63 = vpop.f32.mrf.mxu3 }
 0x3c7   : > { %v1407_v13 = vadd.f32 %v1406_v63, %v3492_v7 }
 0x3c9   : > { %v1421_v16 = vsel %vm1222_vm8, %v1407_v13, -inf }
 0x3ce   : > { %v1409_v0 = vpop.f32.mrf.mxu3 }
 0x3cf   : > { %v1410_v5 = vadd.f32 %v1409_v0, %v3497_v58 }
 0x3d1   : > { %v1424_v11 = vsel %vm1222_vm8, %v1410_v5, -inf }
 0x3d6   : > { %v1412_v59 = vpop.f32.mrf.mxu3 }
 0x3de   : > { %v1415_v3 = vpop.f32.mrf.mxu3 }
 0x3df   : > { %v3542_v18 = vadd.f32 %v1415_v3, %v3505_v27 }
 0x3e6   : > { %v1418_v14 = vpop.f32.mrf.mxu3 }
 0x3e7   : > { %v1225_v38 = vpop.xlane.xlu0 %1224 }
 0x3e8   : > { %v1239_v41 = vsub.f32 %v1208_v19, %v1225_v38  ;;  %v1430_v19 = vsel %vm1222_vm8, %v3542_v18, -inf }
 0x3ea   : > { %v1244_v42 = vmul.f32 1.442695, %v1239_v41 }
 0x3ec   : > { %2940 = vpow2.f32 %v1244_v42 }
 0x3ee   : > { %v1840_v20 = vpop.f32.mrf.mxu3 }
 0x3ef   : > { %v1228_v43 = vpop.xlane.xlu2 %1227  ;;  %v3547_v21 = vadd.f32 %v1840_v20, %v3492_v7 }
 0x3f0   : > { %v1240_v44 = vsub.f32 %v1211_v22, %v1228_v43 }
 0x3f1   : > { %v1855_v22 = vsel %vm1222_vm8, %v3547_v21, -inf }
 0x3f2   : > { %v2941_v45 = vpop.eup %2940  ;;  %v1246_v46 = vmul.f32 1.442695, %v1240_v44 }
 0x3f3   : > { %v1254_v47 = vsel %vm1222_vm8, %v2941_v45, 0.0 }
 0x3f4   : > { %2942 = vpow2.f32 %v1246_v46  ;;  %1255 = vadd.xlane.f32.xlu2 %v1254_v47 }
 0x3f6   : > { %v1843_v43 = vpop.f32.mrf.mxu3 }
 0x3f7   : > { %v1231_v35 = vpop.xlane.xlu1 %1230  ;;  %v1788_v48 = vpop.permute.xlu2 %1787  ;;  %v3566_v44 = vadd.f32 %v1843_v43, %v3497_v58 }
 0x3f8   : > { %v1241_v49 = vsub.f32 %v1214_v26, %v1231_v35  ;;  %2800 = vmatmul.msk.f32.gmra.mxu3 %vm1164_vm6, %v1788_v48 }
 0x3f9   : > { %v1858_v46 = vsel %vm1222_vm8, %v3566_v44, -inf }
 0x3fa   : > { %v2943_v50 = vpop.eup %2942  ;;  %v1248_v51 = vmul.f32 1.442695, %v1241_v49 }
 0x3fb   : > { %v1257_v52 = vsel %vm1222_vm8, %v2943_v50, 0.0 }
 0x3fc   : > { %2944 = vpow2.f32 %v1248_v51  ;;  %1258 = vadd.xlane.f32.xlu2 %v1257_v52 }
 0x3ff   : > { %v1234_v54 = vpop.xlane.xlu0 %1233 }
 0x400   : > { %v1242_v55 = vsub.f32 %v1217_v29, %v1234_v54 }
 0x402   : > { %v2945_v56 = vpop.eup %2944  ;;  %v1250_v57 = vmul.f32 1.442695, %v1242_v55 }
 0x403   : > { %v1260_v60 = vsel %vm1222_vm8, %v2945_v56, 0.0 }
 0x404   : > { %2946 = vpow2.f32 %v1250_v57  ;;  %1261 = vadd.xlane.f32.xlu0 %v1260_v60 }
 0x40a   : > { %v2947_v61 = vpop.eup %2946 }
 0x40b   : > { %v1263_v62 = vsel %vm1222_vm8, %v2947_v61, 0.0 }
 0x40c   : > { %1264 = vadd.xlane.f32.xlu1 %v1263_v62 }
 0x40f   : > { %v1573_v30 = vpop.permute.xlu1 %1572 }
 0x412   : > { %v3555_v26 = vpop.permute.xlu0 %1570 }
 0x414   : > { %1574 = vrot.lane.b32.xlu2 %v3445_v40, %s3109_s1  ;;  %s4053_s1 = sld [smem:[#allocation16_spill]] (!%p2819_p5) }
 0x418   : > { %1789 = vrot.lane.b32.xlu0 %v3438_v39, %s3108_s16  ;;  %v3536_v39 = vadd.f32 %v1418_v14, %v3515_v31 }
 0x41a   : > { %v1433_v17 = vsel %vm1235_vm9, %v3536_v39, -inf }
 0x430   : > { %v1238_v1 = vpop.xlane.xlu2 %1237 }
 0x431   : > { %v1243_v2 = vsub.f32 %v1220_v34, %v1238_v1 }
 0x433   : > { %v1252_v4 = vmul.f32 1.442695, %v1243_v2 }
 0x435   : > { %2948 = vpow2.f32 %v1252_v4 }
 0x43b   : > { %v3529_v9 = vpop.eup %2948 }
 0x43c   : > { %v1266_v12 = vsel %vm1235_vm9, %v3529_v9, 0.0 }
 0x43d   : > { %1425 = vmax.xlane.f32.xlu2 %v1424_v11  ;;  %1267 = vadd.xlane.f32.xlu1 %v1266_v12 }
 0x442   : > { %1422 = vmax.xlane.f32.xlu0 %v1421_v16 }
 0x445   : > { %1434 = vmax.xlane.f32.xlu2 %v1433_v17 }
 0x44a   : > { %1431 = vmax.xlane.f32.xlu0 %v1430_v19 }
 0x452   : > { %1856 = vmax.xlane.f32.xlu0 %v1855_v22 }
 0x456   : > { %1791 = vrot.lane.b32.xlu1 %v3445_v40, %s3108_s16  ;;  %v3560_v40 = vadd.f32 %v1412_v59, %v3501_v24  ;;  %s4050_s16 = scalar_lea.vmem %s4007_s8, %s3234_s23 }
 0x458   : > { %v1427_v41 = vsel %vm1222_vm8, %v3560_v40, -inf }
 0x45d   : > { %1484 = vrot.lane.b32.xlu2 %v3424_v33, %s3110_s25 }
 0x467   : > { %v1256_v23 = vpop.xlane.xlu2 %1255 }
 0x468   : > { %2950 = vrcp.f32 %v1256_v23 }
 0x46e   : > { %v2951_v25 = vpop.eup %2950 }
 0x46f   : > { %v1259_v6 = vpop.xlane.xlu2 %1258  ;;  %v1274_v28 = vmul.f32 %v2951_v25, %v2941_v45 }
 0x470   : > { %2952 = vrcp.f32 %v1259_v6 }
 0x471   : > { %2756 = vmatmul.msk.f32.vlgmr.msra.gmra.mxu2 %vm1222_vm8, %v1274_v28 }
 0x476   : > { %v2953_v29 = vpop.eup %2952 }
 0x477   : > { %v1262_v32 = vpop.xlane.xlu0 %1261  ;;  %v1275_v34 = vmul.f32 %v2953_v29, %v2943_v50  ;;  %v1575_v48 = vpop.permute.xlu2 %1574 }
 0x478   : > { %2954 = vrcp.f32 %v1262_v32 }
 0x479   : > { %2757 = vmatmul.msk.f32.gmra.mxu2 %vm1222_vm8, %v1275_v34 }
 0x47e   : > { %v2955_v37 = vpop.eup %2954 }
 0x47f   : > { %v1265_v38 = vpop.xlane.xlu1 %1264  ;;  %v1276_v42 = vmul.f32 %v2955_v37, %v2945_v56 }
 0x480   : > { %2956 = vrcp.f32 %v1265_v38  ;;  %1428 = vmax.xlane.f32.xlu1 %v1427_v41 }
 0x481   : > { %2758 = vmatmul.msk.f32.gmra.mxu2 %vm1222_vm8, %v1276_v42 }
 0x486   : > { %v2957_v45 = vpop.eup %2956 }
 0x487   : > { %v1277_v47 = vmul.f32 %v2957_v45, %v2947_v61 }
 0x488   : > { %1859 = vmax.xlane.f32.xlu1 %v1858_v46 }
 0x489   : > { %2759 = vmatmul.msk.f32.gmra.mxu2 %vm1222_vm8, %v1277_v47 }
 0x48a   : > { %v1790_v35 = vpop.permute.xlu0 %1789 }
 0x48b   : > { %2801 = vmatmul.msk.f32.gmra.mxu3 %vm1164_vm6, %v1790_v35 }
 0x4a1   : > { %2891 = vrot.lane.b32.xlu1 %v3422_v8, %s3110_s25 }
 0x4b0   : > { %v1426_v49 = vpop.xlane.xlu2 %1425  ;;  %v1268_v50 = vpop.xlane.xlu1 %1267 }
 0x4b1   : > { %v1437_v51 = vsub.f32 %v1410_v5, %v1426_v49  ;;  %2958 = vrcp.f32 %v1268_v50  ;;  %v1846_v5 = vpop.f32.mrf.mxu3 }
 0x4b3   : > { %v1443_v52 = vmul.f32 1.442695, %v1437_v51 }
 0x4b5   : > { %2960 = vpow2.f32 %v1443_v52  ;;  %v1423_v54 = vpop.xlane.xlu0 %1422 }
 0x4b6   : > { %v1436_v55 = vsub.f32 %v1407_v13, %v1423_v54 }
 0x4b7   : > { %v2959_v56 = vpop.eup %2958 }
 0x4b8   : > { %v1441_v57 = vmul.f32 1.442695, %v1436_v55  ;;  %v3574_v60 = vpop.xlane.xlu2 %1434  ;;  %v1278_v61 = vmul.f32 %v2959_v56, %v3529_v9  ;;  %v3591_v9 = vadd.f32 %v1846_v5, %v3501_v24 }
 0x4ba   : > { %2962 = vpow2.f32 %v1441_v57  ;;  %2760 = vmatmul.msk.f32.gmra.mxu2 %vm1222_vm8, %v1278_v61  ;;  %v1861_v13 = vsel %vm1222_vm8, %v3591_v9, -inf }
 0x4bb   : > { %v3578_v62 = vpop.eup %2960 }
 0x4bc   : > { %v1454_v63 = vsel %vm1222_vm8, %v3578_v62, 0.0 }
 0x4bd   : > { %1455 = vadd.xlane.f32.xlu2 %v1454_v63  ;;  %v1432_v0 = vpop.xlane.xlu0 %1431 }
 0x4be   : > { %v1439_v59 = vsub.f32 %v3542_v18, %v1432_v0 }
 0x4c0   : > { %v3583_v1 = vpop.eup %2962  ;;  %v1447_v2 = vmul.f32 1.442695, %v1439_v59  ;;  %v1485_v3 = vpop.permute.xlu2 %1484 }
 0x4c1   : > { %2771 = vmatpush.msk.msrb.mxu0 %vm1308_vm7, %v1485_v3  ;;  %v1451_v4 = vsel %vm1222_vm8, %v3583_v1, 0.0 }
 0x4c2   : > { %2964 = vpow2.f32 %v1447_v2  ;;  %2782 = vmatmul.msk.f32.vlgmr.msrb.gmra.mxu2 %vm1164_vm6, %v3469_v10  ;;  %1452 = vadd.xlane.f32.xlu0 %v1451_v4 }
 0x4c5   : > { %v1857_v34 = vpop.xlane.xlu0 %1856 }
 0x4c8   : > { %v3593_v11 = vpop.eup %2964  ;;  %v1792_v12 = vpop.permute.xlu1 %1791 }
 0x4c9   : > { %2802 = vmatmul.msk.f32.gmra.mxu3 %vm1164_vm6, %v1792_v12  ;;  %v1460_v14 = vsel %vm1222_vm8, %v3593_v11, 0.0 }
 0x4ca   : > { %2783 = vmatmul.msk.f32.gmra.mxu2 %vm1164_vm6, %v3476_v15  ;;  %1862 = vmax.xlane.f32.xlu0 %v1861_v13 }
 0x4cb   : > { %1461 = vadd.xlane.f32.xlu1 %v1460_v14 }
 0x4d2   : > { %2784 = vmatmul.msk.f32.gmra.mxu2 %vm1164_vm6, %v3555_v26 }
 0x4da   : > { %2785 = vmatmul.msk.f32.gmra.mxu2 %vm1164_vm6, %v1573_v30 }
 0x4de   : > { %2896 = vrot.lane.b32.xlu0 %v3434_v36, %s3110_s25 }
 0x4e2   : > { %2786 = vmatmul.msk.f32.gmra.mxu2 %vm1164_vm6, %v1575_v48 }
 0x4e4   : > { %1701 = vrot.lane.b32.xlu1 %v3424_v33, %s3111_s27 }
 0x4f3   : > { %v1429_v10 = vpop.xlane.xlu1 %1428 }
 0x4f4   : > { %v1438_v16 = vsub.f32 %v3560_v40, %v1429_v10  ;;  %v1328_v15 = vpop.f32.mrf.mxu2 }
 0x4f5   : > { %1343 = vst.msk [vmem:[#allocation3] sm:$0xff] %vm1164_vm6, %v1328_v15 }
 0x4f6   : > { %v1445_v17 = vmul.f32 1.442695, %v1438_v16 }
 0x4f8   : > { %2966 = vpow2.f32 %v1445_v17 }
 0x4fb   : > { %v3618_v23 = vpop.xlane.xlu1 %1859 }
 0x4fc   : > { %v1331_v18 = vpop.f32.mrf.mxu2 }
 0x4fd   : > { %1344 = vst.msk [vmem:[#allocation3 + $0x8] sm:$0xff] %vm1164_vm6, %v1331_v18 }
 0x4fe   : > { %v3613_v19 = vpop.eup %2966 }
 0x4ff   : > { %v1457_v20 = vsel %vm1222_vm8, %v3613_v19, 0.0 }
 0x500   : > { %1458 = vadd.xlane.f32.xlu2 %v1457_v20 }
 0x504   : > { %v1334_v22 = vpop.f32.mrf.mxu2 }
 0x505   : > { %1345 = vst.msk [vmem:[#allocation3 + $0x10] sm:$0xff] %vm1164_vm6, %v1334_v22 }
 0x50c   : > { %v1337_v25 = vpop.f32.mrf.mxu2 }
 0x50d   : > { %1346 = vst.msk [vmem:[#allocation3 + $0x18] sm:$0xff] %vm1164_vm6, %v1337_v25 }
 0x50e   : > { %v1849_v26 = vpop.f32.mrf.mxu3 }
 0x50f   : > { %v3622_v6 = vadd.f32 %v1849_v26, %v3505_v27 }
 0x511   : > { %v1864_v28 = vsel %vm1222_vm8, %v3622_v6, -inf }
 0x512   : > { %1865 = vmax.xlane.f32.xlu0 %v1864_v28 }
 0x513   : > { %v2892_v29 = vpop.permute.xlu1 %2891 }
 0x514   : > { %v2893_v30 = vunpack.i.l.bf16 %v2892_v29  ;;  %v2894_v32 = vunpack.i.h.bf16 %v2892_v29 }
 0x516   : > { %1519 = vmatpush.msrb.mxu0 %v2893_v30 }
 0x518   : > { %1520 = vmatpush.msrb.mxu0 %v2894_v32 }
 0x526   : > { %1918 = vrot.lane.b32.xlu0 %v3424_v33, %s3112_s28 }
 0x530   : > { %v1456_v48 = vpop.xlane.xlu2 %1455 }
 0x535   : > { %v1453_v37 = vpop.xlane.xlu0 %1452 }
 0x536   : > { %2968 = vrcp.f32 %v1453_v37 }
 0x537   : > { %2970 = vrcp.f32 %v1456_v48 }
 0x53c   : > { %v2969_v49 = vpop.eup %2968 }
 0x53d   : > { %v1340_v40 = vpop.f32.mrf.mxu2  ;;  %v3631_v42 = vpop.xlane.xlu0 %1862  ;;  %v1471_v52 = vmul.f32 %v2969_v49, %v3583_v1 }
 0x53e   : > { %1348 = vst.msk [vmem:[#allocation3 + $0x20] sm:$0x3] %vm1347_vm10, %v1340_v40  ;;  %v1462_v47 = vpop.xlane.xlu1 %1461  ;;  %v2971_v61 = vpop.eup %2970 }
 0x53f   : > { %v1472_v63 = vmul.f32 %v2971_v61, %v3578_v62 }
 0x545   : > { %v1623_v38 = vpop.f32.mrf.mxu2 }
 0x546   : > { %v3629_v41 = vadd.f32 %v1623_v38, %v3492_v7 }
 0x548   : > { %v1638_v43 = vsel %vm1222_vm8, %v3629_v41, -inf }
 0x549   : > { %1639 = vmax.xlane.f32.xlu1 %v1638_v43 }
 0x54c   : > { %v1852_v45 = vpop.f32.mrf.mxu3 }
 0x54d   : > { %v3636_v46 = vadd.f32 %v1852_v45, %v3515_v31  ;;  %v1626_v33 = vpop.f32.mrf.mxu2 }
 0x54e   : > { %v3685_v17 = vadd.f32 %v1626_v33, %v3497_v58 }
 0x54f   : > { %v1867_v35 = vsel %vm1235_vm9, %v3636_v46, -inf }
 0x550   : > { %1868 = vmax.xlane.f32.xlu2 %v1867_v35  ;;  %v2897_v7 = vpop.permute.xlu0 %2896 }
 0x551   : > { %v2898_v50 = vunpack.i.l.bf16 %v2897_v7  ;;  %v2899_v51 = vunpack.i.h.bf16 %v2897_v7 }
 0x553   : > { %1521 = vmatpush.msrb.mxu0 %v2898_v50 }
 0x555   : > { %1522 = vmatpush.msrb.mxu0 %v2899_v51  ;;  %v1629_v54 = vpop.f32.mrf.mxu2 }
 0x556   : > { %v3642_v55 = vadd.f32 %v1629_v54, %v3501_v24  ;;  %v1702_v56 = vpop.permute.xlu1 %1701  ;;  %2772 = vmatmul.msk.f32.vlgmr.msrb.gmra.mxu0 %vm1222_vm8, %v1471_v52 }
 0x557   : > { %2787 = vmatpush.msk.msrb.mxu1 %vm1308_vm7, %v1702_v56 }
 0x558   : > { %v1644_v57 = vsel %vm1222_vm8, %v3642_v55, -inf }
 0x559   : > { %1645 = vmax.xlane.f32.xlu0 %v1644_v57 }
 0x55d   : > { %v1632_v0 = vpop.f32.mrf.mxu2 }
 0x55e   : > { %v3650_v59 = vadd.f32 %v1632_v0, %v3505_v27  ;;  %2773 = vmatmul.msk.f32.gmra.mxu0 %vm1222_vm8, %v1472_v63 }
 0x560   : > { %v1647_v24 = vsel %vm1222_vm8, %v3650_v59, -inf }
 0x561   : > { %1648 = vmax.xlane.f32.xlu1 %v1647_v24 }
 0x565   : > { %v1635_v1 = vpop.f32.mrf.mxu2 }
 0x566   : > { %v3656_v2 = vadd.f32 %v1635_v1, %v3515_v31  ;;  %v1440_v31 = vsub.f32 %v3536_v39, %v3574_v60 }
 0x568   : > { %2901 = vrot.lane.b32.xlu2 %v3422_v8, %s3111_s27  ;;  %v1650_v62 = vsel %vm1235_vm9, %v3656_v2, -inf  ;;  %v1449_v12 = vmul.f32 1.442695, %v1440_v31 }
 0x569   : > { %1651 = vmax.xlane.f32.xlu1 %v1650_v62 }
 0x56d   : > { %2906 = vrot.lane.b32.xlu0 %v3422_v8, %s3112_s28  ;;  %v1870_v8 = vsub.f32 %v3547_v21, %v1857_v34  ;;  %v1871_v21 = vsub.f32 %v3566_v44, %v3618_v23 }
 0x56f   : > { %v1875_v14 = vmul.f32 1.442695, %v1870_v8  ;;  %v1877_v18 = vmul.f32 1.442695, %v1871_v21 }
 0x573   : > { %v1459_v27 = vpop.xlane.xlu2 %1458 }
 0x574   : > { %2972 = vrcp.f32 %v1459_v27 }
 0x575   : > { %2974 = vrcp.f32 %v1462_v47 }
 0x576   : > { %2976 = vpow2.f32 %v1449_v12 }
 0x577   : > { %2978 = vpow2.f32 %v1875_v14 }
 0x578   : > { %2980 = vpow2.f32 %v1877_v18 }
 0x57a   : > { %v2973_v3 = vpop.eup %2972 }
 0x57b   : > { %v1473_v4 = vmul.f32 %v2973_v3, %v3613_v19  ;;  %v2975_v5 = vpop.eup %2974  ;;  %v1641_v19 = vsel %vm1222_vm8, %v3685_v17, -inf }
 0x57c   : > { %v1474_v13 = vmul.f32 %v2975_v5, %v3593_v11  ;;  %v3673_v10 = vpop.eup %2976 }
 0x57d   : > { %2774 = vmatmul.msk.f32.gmra.mxu0 %vm1222_vm8, %v1473_v4  ;;  %v1463_v39 = vsel %vm1235_vm9, %v3673_v10, 0.0  ;;  %v3677_v60 = vpop.eup %2978  ;;  %v1872_v4 = vsub.f32 %v3591_v9, %v3631_v42 }
 0x57e   : > { %v1885_v11 = vsel %vm1222_vm8, %v3677_v60, 0.0  ;;  %v3689_v20 = vpop.eup %2980 }
 0x57f   : > { %v1888_v22 = vsel %vm1222_vm8, %v3689_v20, 0.0  ;;  %v1879_v5 = vmul.f32 1.442695, %v1872_v4 }
 0x582   : > { %2911 = vrot.lane.b32.xlu1 %v3434_v36, %s3111_s27 }
 0x585   : > { %2775 = vmatmul.msk.f32.gmra.mxu0 %vm1222_vm8, %v1474_v13  ;;  %v1866_v16 = vpop.xlane.xlu0 %1865 }
 0x586   : > { %v1873_v45 = vsub.f32 %v3622_v6, %v1866_v16 }
 0x588   : > { %v1881_v47 = vmul.f32 1.442695, %v1873_v45 }
 0x591   : > { %1464 = vadd.xlane.f32.xlu2 %v1463_v39 }
 0x598   : > { %v1919_v15 = vpop.permute.xlu0 %1918 }
 0x599   : > { %1886 = vadd.xlane.f32.xlu2 %v1885_v11  ;;  %2803 = vmatpush.msk.msra.mxu0 %vm1308_vm7, %v1919_v15 }
 0x5a1   : > { %1642 = vmax.xlane.f32.xlu2 %v1641_v19 }
 0x5ac   : > { %1889 = vadd.xlane.f32.xlu1 %v1888_v22 }
 0x5b9   : > { %2916 = vrot.lane.b32.xlu2 %v3434_v36, %s3112_s28 }
 0x5bc   : > { %v1640_v25 = vpop.xlane.xlu1 %1639 }
 0x5bd   : > { %v1653_v44 = vsub.f32 %v3629_v41, %v1640_v25 }
 0x5bf   : > { %v1658_v58 = vmul.f32 1.442695, %v1653_v44 }
 0x5c1   : > { %2982 = vpow2.f32 %v1658_v58 }
 0x5c3   : > { %v1869_v23 = vpop.xlane.xlu2 %1868 }
 0x5c4   : > { %v1874_v41 = vsub.f32 %v3636_v46, %v1869_v23 }
 0x5c6   : > { %v1883_v33 = vmul.f32 1.442695, %v1874_v41 }
 0x5c7   : > { %v3696_v26 = vpop.eup %2982 }
 0x5c8   : > { %v1668_v28 = vsel %vm1222_vm8, %v3696_v26, 0.0 }
 0x5c9   : > { %1669 = vadd.xlane.f32.xlu0 %v1668_v28 }
 0x5cb   : > { %v2902_v29 = vpop.permute.xlu2 %2901 }
 0x5cc   : > { %v2903_v30 = vunpack.i.l.bf16 %v2902_v29  ;;  %v1646_v32 = vpop.xlane.xlu0 %1645  ;;  %v2904_v34 = vunpack.i.h.bf16 %v2902_v29 }
 0x5cd   : > { %v1655_v40 = vsub.f32 %v3642_v55, %v1646_v32 }
 0x5ce   : > { %1736 = vmatpush.msrb.mxu1 %v2903_v30 }
 0x5cf   : > { %v1662_v36 = vmul.f32 1.442695, %v1655_v40 }
 0x5d0   : > { %1737 = vmatpush.msrb.mxu1 %v2904_v34 }
 0x5d1   : > { %2984 = vpow2.f32 %v1662_v36 }
 0x5d3   : > { %v1524_v0 = vpop.f32.mrf.mxu0 }
 0x5d4   : > { %v1649_v37 = vpop.xlane.xlu1 %1648 }
 0x5d5   : > { %v1656_v38 = vsub.f32 %v3650_v59, %v1649_v37 }
 0x5d7   : > { %v1664_v43 = vmul.f32 1.442695, %v1656_v38  ;;  %v3704_v35 = vpop.eup %2984 }
 0x5d8   : > { %v1674_v46 = vsel %vm1222_vm8, %v3704_v35, 0.0 }
 0x5d9   : > { %2986 = vpow2.f32 %v1664_v43 }
 0x5da   : > { %2988 = vpow2.f32 %v1883_v33 }
 0x5db   : > { %2990 = vpow2.f32 %v1881_v47  ;;  %v1527_v23 = vpop.f32.mrf.mxu0 }
 0x5dc   : > { %v1652_v56 = vpop.xlane.xlu1 %1651 }
 0x5dd   : > { %v1657_v16 = vsub.f32 %v3656_v2, %v1652_v56 }
 0x5df   : > { %v3706_v48 = vpop.eup %2986  ;;  %v2907_v7 = vpop.permute.xlu0 %2906  ;;  %v1666_v9 = vmul.f32 1.442695, %v1657_v16 }
 0x5e0   : > { %v2908_v49 = vunpack.i.l.bf16 %v2907_v7  ;;  %v1677_v50 = vsel %vm1222_vm8, %v3706_v48, 0.0  ;;  %v2909_v6 = vunpack.i.h.bf16 %v2907_v7  ;;  %v3712_v51 = vpop.eup %2988 }
 0x5e1   : > { %1678 = vadd.xlane.f32.xlu1 %v1677_v50  ;;  %v3714_v52 = vpop.eup %2990  ;;  %v1897_v54 = vsel %vm1235_vm9, %v3712_v51, 0.0 }
 0x5e2   : > { %1675 = vadd.xlane.f32.xlu2 %v1674_v46  ;;  %1953 = vmatpush.msra.mxu0 %v2908_v49  ;;  %v1894_v55 = vsel %vm1222_vm8, %v3714_v52, 0.0 }
 0x5e4   : > { %1954 = vmatpush.msra.mxu0 %v2909_v6 }
 0x5e9   : > { %1898 = vadd.xlane.f32.xlu1 %v1897_v54 }
 0x5ea   : > { %1895 = vadd.xlane.f32.xlu2 %v1894_v55 }
 0x5f4   : > { %v2912_v57 = vpop.permute.xlu1 %2911 }
 0x5f5   : > { %v2913_v61 = vunpack.i.l.bf16 %v2912_v57  ;;  %v2914_v63 = vunpack.i.h.bf16 %v2912_v57  ;;  %v2007_v57 = vld [vmem:[%s3257_s17 + $0x10] sm:$0xff] }
 0x5f7   : > { %1738 = vmatpush.msrb.mxu1 %v2913_v61 }
 0x5f9   : > { %1739 = vmatpush.msrb.mxu1 %v2914_v63  ;;  %v2005_v63 = vld [vmem:[%s3257_s17] sm:$0xff] }
 0x5fa   : > { %v1530_v28 = vpop.f32.mrf.mxu0 }
 0x602   : > { %1544 = vrot.lane.b32.xlu2 %v1524_v0, %s3113_s0  ;;  %v1533_v29 = vpop.f32.mrf.mxu0 }
 0x604   : > { %v1465_v59 = vpop.xlane.xlu2 %1464 }
 0x605   : > { %2992 = vrcp.f32 %v1465_v59 }
 0x60b   : > { %v2993_v24 = vpop.eup %2992 }
 0x60c   : > { %v1887_v1 = vpop.xlane.xlu2 %1886  ;;  %v1475_v62 = vmul.f32 %v2993_v24, %v3673_v10 }
 0x60d   : > { %2994 = vrcp.f32 %v1887_v1 }
 0x60e   : > { %2776 = vmatmul.msk.f32.gmra.mxu0 %vm1222_vm8, %v1475_v62 }
 0x613   : > { %v2995_v13 = vpop.eup %2994 }
 0x614   : > { %v1643_v27 = vpop.xlane.xlu2 %1642  ;;  %v1905_v15 = vmul.f32 %v2995_v13, %v3677_v60 }
 0x615   : > { %v1654_v3 = vsub.f32 %v3685_v17, %v1643_v27 }
 0x617   : > { %v1660_v31 = vmul.f32 1.442695, %v1654_v3 }
 0x619   : > { %2996 = vpow2.f32 %v1660_v31 }
 0x61a   : > { %2998 = vpow2.f32 %v1879_v5 }
 0x61c   : > { %v2917_v12 = vpop.permute.xlu2 %2916 }
 0x61d   : > { %v2918_v8 = vunpack.i.l.bf16 %v2917_v12  ;;  %v2919_v10 = vunpack.i.h.bf16 %v2917_v12 }
 0x61f   : > { %v2997_v14 = vpop.eup %2996  ;;  %v1890_v39 = vpop.xlane.xlu1 %1889  ;;  %1955 = vmatpush.msra.mxu0 %v2918_v8 }
 0x620   : > { %3000 = vrcp.f32 %v1890_v39  ;;  %v1671_v11 = vsel %vm1222_vm8, %v2997_v14, 0.0  ;;  %v2999_v42 = vpop.eup %2998 }
 0x621   : > { %1672 = vadd.xlane.f32.xlu0 %v1671_v11  ;;  %1956 = vmatpush.msra.mxu0 %v2919_v10  ;;  %3002 = vpow2.f32 %v1666_v9  ;;  %v1891_v2 = vsel %vm1222_vm8, %v2999_v42, 0.0 }
 0x622   : > { %2804 = vmatmul.msk.f32.vlgmr.msra.gmra.mxu0 %vm1222_vm8, %v1905_v15 }
 0x626   : > { %v3001_v21 = vpop.eup %3000 }
 0x627   : > { %v1906_v17 = vmul.f32 %v3001_v21, %v3689_v20  ;;  %v3003_v18 = vpop.eup %3002 }
 0x628   : > { %v1680_v60 = vsel %vm1235_vm9, %v3003_v18, 0.0 }
 0x629   : > { %1892 = vadd.xlane.f32.xlu0 %v1891_v2 }
 0x62a   : > { %2805 = vmatmul.msk.f32.gmra.mxu0 %vm1222_vm8, %v1906_v17 }
 0x631   : > { %1681 = vadd.xlane.f32.xlu0 %v1680_v60  ;;  %v2923_v60 = vld [vmem:[%s4050_s16] ss:$0 sm:$0xff] }
 0x63c   : > { %v1670_v19 = vpop.xlane.xlu0 %1669 }
 0x63d   : > { %3004 = vrcp.f32 %v1670_v19 }
 0x643   : > { %v3005_v22 = vpop.eup %3004 }
 0x644   : > { %v1688_v25 = vmul.f32 %v3005_v22, %v3696_v26  ;;  %v3040_v22 = vld [vmem:[#allocation2] sm:$0xff] }
 0x646   : > { %2788 = vmatmul.msk.f32.vlgmr.msrb.gmra.mxu1 %vm1222_vm8, %v1688_v25 }
 0x654   : > { %v1679_v37 = vpop.xlane.xlu1 %1678 }
 0x655   : > { %v1676_v44 = vpop.xlane.xlu2 %1675 }
 0x65c   : > { %v1899_v33 = vpop.xlane.xlu1 %1898 }
 0x65d   : > { %v1896_v58 = vpop.xlane.xlu2 %1895 }
 0x665   : > { %v1545_v20 = vpop.permute.xlu2 %1544 }
 0x666   : > { %1560 = vst.msk [vmem:[#allocation3] sm:$0xff] %vm1559_vm11, %v1545_v20 }
 0x68b   : > { %v1536_v32 = vpop.f32.mrf.mxu0 }
 0x694   : > { %v1673_v30 = vpop.xlane.xlu0 %1672 }
 0x695   : > { %3006 = vrcp.f32 %v1673_v30 }
 0x696   : > { %3008 = vrcp.f32 %v1676_v44 }
 0x69b   : > { %v3007_v34 = vpop.eup %3006 }
 0x69c   : > { %v1893_v40 = vpop.xlane.xlu0 %1892  ;;  %v1689_v36 = vmul.f32 %v3007_v34, %v2997_v14  ;;  %v3009_v38 = vpop.eup %3008  ;;  %v3042_v34 = vld [vmem:[#allocation2 + $0x10] sm:$0xff] }
 0x69d   : > { %3010 = vrcp.f32 %v1893_v40  ;;  %v1690_v43 = vmul.f32 %v3009_v38, %v3704_v35  ;;  %v3043_v38 = vld [vmem:[#allocation2 + $0x18] sm:$0xff] }
 0x69e   : > { %2789 = vmatmul.msk.f32.gmra.mxu1 %vm1222_vm8, %v1689_v36  ;;  %3012 = vrcp.f32 %v1679_v37 }
 0x69f   : > { %v1958_v26 = vpop.f32.mrf.mxu0  ;;  %3014 = vrcp.f32 %v1896_v58 }
 0x6a0   : > { %1978 = vrot.lane.b32.xlu1 %v1958_v26, %s3114_s29  ;;  %3016 = vrcp.f32 %v1899_v33 }
 0x6a3   : > { %v3011_v41 = vpop.eup %3010 }
 0x6a4   : > { %v1907_v45 = vmul.f32 %v3011_v41, %v2999_v42  ;;  %v3013_v7 = vpop.eup %3012  ;;  %v1682_v49 = vpop.xlane.xlu0 %1681 }
 0x6a5   : > { %v3015_v50 = vpop.eup %3014  ;;  %3018 = vrcp.f32 %v1682_v49  ;;  %v1691_v46 = vmul.f32 %v3013_v7, %v3706_v48 }
 0x6a6   : > { %2790 = vmatmul.msk.f32.gmra.mxu1 %vm1222_vm8, %v1690_v43  ;;  %2806 = vmatmul.msk.f32.gmra.mxu0 %vm1222_vm8, %v1907_v45  ;;  %v1908_v6 = vmul.f32 %v3015_v50, %v3714_v52  ;;  %v3017_v35 = vpop.eup %3016  ;;  %v2008_v52 = vld [vmem:[%s3257_s17 + $0x18] sm:$0xff] }
 0x6a7   : > { %v1961_v47 = vpop.f32.mrf.mxu0  ;;  %v1909_v56 = vmul.f32 %v3017_v35, %v3712_v51  ;;  %2036 = vmatpush.msra.mxu2 %v2008_v52  ;;  %v2006_v51 = vld [vmem:[%s3257_s17 + $0x8] sm:$0xff] }
 0x6a8   : > { %1980 = vrot.lane.b32.xlu1 %v1961_v47, %s3114_s29  ;;  %v3044_v47 = vld [vmem:[#allocation2 + $0x20] sm:$0x3] }
 0x6a9   : > { %2037 = vmatpush.msra.mxu2 %v2007_v57 }
 0x6ab   : > { %v3019_v54 = vpop.eup %3018  ;;  %2038 = vmatpush.msra.mxu2 %v2006_v51 }
 0x6ac   : > { %v1692_v55 = vmul.f32 %v3019_v54, %v3003_v18 }
 0x6ad   : > { %2039 = vmatpush.msra.mxu2 %v2005_v63 }
 0x6ae   : > { %2791 = vmatmul.msk.f32.gmra.mxu1 %vm1222_vm8, %v1691_v46  ;;  %2807 = vmatmul.msk.f32.gmra.mxu0 %vm1222_vm8, %v1908_v6 }
 0x6b6   : > { %2792 = vmatmul.msk.f32.gmra.mxu1 %vm1222_vm8, %v1692_v55  ;;  %2808 = vmatmul.msk.f32.gmra.mxu0 %vm1222_vm8, %v1909_v56 }
 0x6c3   : > { %v1741_v48 = vpop.f32.mrf.mxu1 }
 0x6c4   : > { %1761 = vrot.lane.b32.xlu0 %v1741_v48, %s3115_s2 }
 0x6cc   : > { %1546 = vrot.lane.b32.xlu0 %v1527_v23, %s3113_s0  ;;  %v3041_v23 = vld [vmem:[#allocation2 + $0x8] sm:$0xff] }
 0x6d4   : > { %1548 = vrot.lane.b32.xlu0 %v1530_v28, %s3113_s0 }
 0x6dc   : > { %1550 = vrot.lane.b32.xlu0 %v1533_v29, %s3113_s0 }
 0x6e4   : > { %1552 = vrot.lane.b32.xlu0 %v1536_v32, %s3113_s0 }
 0x712   : > { %v1979_v4 = vpop.permute.xlu1 %1978 }
 0x71a   : > { %v1981_v16 = vpop.permute.xlu1 %1980 }
 0x71b   : > { %v1744_v61 = vpop.f32.mrf.mxu1 }
 0x71c   : > { %1763 = vrot.lane.b32.xlu2 %v1744_v61, %s3115_s2 }
 0x723   : > { %v1747_v0 = vpop.f32.mrf.mxu1  ;;  %v1964_v59 = vpop.f32.mrf.mxu0 }
 0x724   : > { %1765 = vrot.lane.b32.xlu2 %v1747_v0, %s3115_s2  ;;  %1982 = vrot.lane.b32.xlu1 %v1964_v59, %s3114_s29 }
 0x72b   : > { %v1750_v24 = vpop.f32.mrf.mxu1  ;;  %v1967_v1 = vpop.f32.mrf.mxu0 }
 0x72c   : > { %1767 = vrot.lane.b32.xlu2 %v1750_v24, %s3115_s2  ;;  %1984 = vrot.lane.b32.xlu1 %v1967_v1, %s3114_s29 }
 0x733   : > { %v1753_v62 = vpop.f32.mrf.mxu1  ;;  %v1970_v27 = vpop.f32.mrf.mxu0 }
 0x734   : > { %1769 = vrot.lane.b32.xlu2 %v1753_v62, %s3115_s2  ;;  %1986 = vrot.lane.b32.xlu1 %v1970_v27, %s3114_s29 }
 0x736   : > { %v1762_v3 = vpop.permute.xlu0 %1761 }
 0x737   : > { %1777 = vst.msk [vmem:[#allocation3] sm:$0xff] %vm1776_vm12, %v1762_v3 }
 0x738   : > { %1994 = vst.msk [vmem:[#allocation3] sm:$0xff] %vm1993_vm13, %v1979_v4 }
 0x73e   : > { %v1547_v31 = vpop.permute.xlu0 %1546 }
 0x73f   : > { %1561 = vst.msk [vmem:[#allocation3 + $0x8] sm:$0xff] %vm1559_vm11, %v1547_v31  ;;  %v2000_v5 = vld [vmem:[#allocation3] sm:$0xff] }
 0x740   : > { %2809 = vmatmul.msk.f32.vlgmr.msra.gmra.mxu2 %vm954_vm2, %v2000_v5 }
 0x746   : > { %v1549_v12 = vpop.permute.xlu0 %1548 }
 0x747   : > { %1562 = vst.msk [vmem:[#allocation3 + $0x10] sm:$0xff] %vm1559_vm11, %v1549_v12  ;;  %v2201_v12 = vld [vmem:[%s3274_s5 + $0x18] sm:$0xff] }
 0x748   : > { %2233 = vmatpush.msra.mxu1 %v2201_v12 }
 0x74e   : > { %v1551_v13 = vpop.permute.xlu0 %1550 }
 0x74f   : > { %1563 = vst.msk [vmem:[#allocation3 + $0x18] sm:$0xff] %vm1559_vm11, %v1551_v13 }
 0x756   : > { %v1553_v8 = vpop.permute.xlu0 %1552 }
 0x757   : > { %1565 = vst.msk [vmem:[#allocation3 + $0x20] sm:$0x3] %vm1564_vm14, %v1553_v8  ;;  %v2200_v8 = vld [vmem:[%s3274_s5 + $0x10] sm:$0xff] }
 0x758   : > { %2234 = vmatpush.msra.mxu1 %v2200_v8 }
 0x776   : > { %v1764_v14 = vpop.permute.xlu2 %1763 }
 0x777   : > { %1778 = vst.msk [vmem:[#allocation3 + $0x8] sm:$0xff] %vm1776_vm12, %v1764_v14 }
 0x778   : > { %1995 = vst.msk [vmem:[#allocation3 + $0x8] sm:$0xff] %vm1993_vm13, %v1981_v16  ;;  %v2199_v16 = vld [vmem:[%s3274_s5 + $0x8] sm:$0xff] }
 0x779   : > { %2235 = vmatpush.msra.mxu1 %v2199_v16 }
 0x77e   : > { %v1766_v10 = vpop.permute.xlu2 %1765 }
 0x77f   : > { %1779 = vst.msk [vmem:[#allocation3 + $0x10] sm:$0xff] %vm1776_vm12, %v1766_v10  ;;  %v2001_v39 = vld [vmem:[#allocation3 + $0x8] sm:$0xff]  ;;  %v2198_v10 = vld [vmem:[%s3274_s5] sm:$0xff] }
 0x780   : > { %2810 = vmatmul.msk.f32.gmra.mxu2 %vm954_vm2, %v2001_v39  ;;  %2236 = vmatpush.msra.mxu1 %v2198_v10 }
 0x786   : > { %v1768_v15 = vpop.permute.xlu2 %1767 }
 0x787   : > { %1780 = vst.msk [vmem:[#allocation3 + $0x18] sm:$0xff] %vm1776_vm12, %v1768_v15 }
 0x78e   : > { %v1770_v11 = vpop.permute.xlu2 %1769 }
 0x78f   : > { %1782 = vst.msk [vmem:[#allocation3 + $0x20] sm:$0x3] %vm1781_vm15, %v1770_v11 }
 0x796   : > { %v1983_v9 = vpop.permute.xlu1 %1982 }
 0x797   : > { %1996 = vst.msk [vmem:[#allocation3 + $0x10] sm:$0xff] %vm1993_vm13, %v1983_v9 }
 0x79e   : > { %v1985_v42 = vpop.permute.xlu1 %1984  ;;  %v2002_v21 = vld [vmem:[#allocation3 + $0x10] sm:$0xff] }
 0x79f   : > { %1997 = vst.msk [vmem:[#allocation3 + $0x18] sm:$0xff] %vm1993_vm13, %v1985_v42  ;;  %2811 = vmatmul.msk.f32.gmra.mxu2 %vm954_vm2, %v2002_v21 }
 0x7a6   : > { %v1987_v17 = vpop.permute.xlu1 %1986  ;;  %v2003_v2 = vld [vmem:[#allocation3 + $0x18] sm:$0xff] }
 0x7a7   : > { %1999 = vst.msk [vmem:[#allocation3 + $0x20] sm:$0x3] %vm1998_vm0, %v1987_v17  ;;  %2812 = vmatmul.msk.f32.gmra.mxu2 %vm954_vm2, %v2003_v2 }
 0x7ae   : > { %v2004_v18 = vld [vmem:[#allocation3 + $0x20] sm:$0x3] }
 0x7af   : > { %2813 = vmatmul.msk.f32.gmra.mxu2 %vm954_vm2, %v2004_v18 }
 0x7c3   : > { %v2041_v19 = vpop.f32.mrf.mxu2 }
 0x7c4   : > { %v2056_v25 = vadd.f32 %v3040_v22, %v2041_v19  ;;  %v3843_v19 = vld [vmem:[%s768_s4] ss:$0 sm:$0xff]  ;;  %s4054_s4 = sld [smem:[#allocation17_spill]] (!%p2819_p5) }
 0x7c6   : > { %v3782_v44 = vadd.f32 %v2923_v60, %v2056_v25 }
 0x7c8   : > { %v2072_v58 = vsel %vm954_vm2, %v3782_v44, 0.0 }
 0x7c9   : > { %2073 = vadd.xlane.f32.xlu0 %v2072_v58  ;;  %v3850_v58 = vld [vmem:[%s771_s21] ss:$0 sm:$0xff] }
 0x803   : > { %v2044_v20 = vpop.f32.mrf.mxu2 }
 0x804   : > { %v2057_v28 = vadd.f32 %v3041_v23, %v2044_v20 }
 0x806   : > { %v3786_v29 = vadd.f32 %v2923_v60, %v2057_v28 }
 0x808   : > { %v2075_v30 = vsel %vm954_vm2, %v3786_v29, 0.0 }
 0x809   : > { %2076 = vadd.xlane.f32.xlu2 %v2075_v30 }
 0x822   : > { %v2047_v32 = vpop.f32.mrf.mxu2 }
 0x823   : > { %v2058_v40 = vadd.f32 %v3042_v34, %v2047_v32 }
 0x825   : > { %v3790_v36 = vadd.f32 %v2923_v60, %v2058_v40 }
 0x827   : > { %v2078_v37 = vsel %vm954_vm2, %v3790_v36, 0.0 }
 0x828   : > { %2079 = vadd.xlane.f32.xlu1 %v2078_v37 }
 0x82a   : > { %v2050_v26 = vpop.f32.mrf.mxu2 }
 0x82b   : > { %v2059_v41 = vadd.f32 %v3043_v38, %v2050_v26 }
 0x82d   : > { %v3794_v43 = vadd.f32 %v2923_v60, %v2059_v41 }
 0x82f   : > { %v2081_v45 = vsel %vm954_vm2, %v3794_v43, 0.0 }
 0x830   : > { %2082 = vadd.xlane.f32.xlu0 %v2081_v45 }
 0x832   : > { %v2053_v33 = vpop.f32.mrf.mxu2 }
 0x833   : > { %v2060_v7 = vadd.f32 %v3044_v47, %v2053_v33 }
 0x835   : > { %v3798_v49 = vadd.f32 %v2923_v60, %v2060_v7 }
 0x837   : > { %v2084_v50 = vsel %vm967_vm3, %v3798_v49, 0.0 }
 0x838   : > { %2085 = vadd.xlane.f32.xlu2 %v2084_v50 }
 0x83c   : > { %v2074_v46 = vpop.xlane.xlu0 %2073 }
 0x83d   : > { %v2087_v6 = vmul.f32 %v2074_v46, %v3355_v53 }
 0x83f   : > { %v2092_v35 = vsub.f32 %v3782_v44, %v2087_v6 }
 0x841   : > { %v2097_v54 = vmul.f32 %v2092_v35, %v2092_v35 }
 0x843   : > { %v2102_v55 = vsel %vm954_vm2, %v2097_v54, 0.0 }
 0x844   : > { %2103 = vadd.xlane.f32.xlu1 %v2102_v55 }
 0x87c   : > { %v2077_v56 = vpop.xlane.xlu2 %2076 }
 0x87d   : > { %v2088_v48 = vmul.f32 %v2077_v56, %v3355_v53 }
 0x87f   : > { %v3807_v52 = vsub.f32 %v3786_v29, %v2088_v48 }
 0x881   : > { %v2098_v57 = vmul.f32 %v3807_v52, %v3807_v52 }
 0x883   : > { %v2105_v51 = vsel %vm954_vm2, %v2098_v57, 0.0  ;;  %v2312_v57 = vld [vmem:[%s3284_s26 + $0x70] sm:$0xff] }
 0x884   : > { %2106 = vadd.xlane.f32.xlu0 %v2105_v51 }
 0x89b   : > { %v2080_v61 = vpop.xlane.xlu1 %2079 }
 0x89c   : > { %v2089_v63 = vmul.f32 %v2080_v61, %v3355_v53  ;;  %v2311_v61 = vld [vmem:[%s3284_s26 + $0x68] sm:$0xff] }
 0x89e   : > { %v3814_v0 = vsub.f32 %v3790_v36, %v2089_v63 }
 0x8a0   : > { %v2099_v59 = vmul.f32 %v3814_v0, %v3814_v0 }
 0x8a2   : > { %v2108_v24 = vsel %vm954_vm2, %v2099_v59, 0.0 }
 0x8a3   : > { %v2083_v1 = vpop.xlane.xlu0 %2082  ;;  %2109 = vadd.xlane.f32.xlu2 %v2108_v24 }
 0x8a4   : > { %v2090_v62 = vmul.f32 %v2083_v1, %v3355_v53 }
 0x8a6   : > { %v3821_v27 = vsub.f32 %v3794_v43, %v2090_v62 }
 0x8a8   : > { %v2100_v3 = vmul.f32 %v3821_v27, %v3821_v27 }
 0x8aa   : > { %v2111_v4 = vsel %vm954_vm2, %v2100_v3, 0.0 }
 0x8ab   : > { %2112 = vadd.xlane.f32.xlu1 %v2111_v4  ;;  %v2086_v31 = vpop.xlane.xlu2 %2085 }
 0x8ac   : > { %v2091_v5 = vmul.f32 %v2086_v31, %v3355_v53 }
 0x8ae   : > { %v3829_v13 = vsub.f32 %v3798_v49, %v2091_v5 }
 0x8b0   : > { %v2101_v14 = vmul.f32 %v3829_v13, %v3829_v13 }
 0x8b2   : > { %v2114_v39 = vsel %vm967_vm3, %v2101_v14, 0.0 }
 0x8b3   : > { %2115 = vadd.xlane.f32.xlu0 %v2114_v39 }
 0x8b7   : > { %v2104_v15 = vpop.xlane.xlu1 %2103 }
 0x8b8   : > { %v2117_v11 = vmul.f32 %v2104_v15, %v3355_v53 }
 0x8ba   : > { %v2122_v9 = vadd.f32 1e-05, %v2117_v11  ;;  %v2310_v11 = vld [vmem:[%s3284_s26 + $0x60] sm:$0xff] }
 0x8bc   : > { %3020 = vrsqrt.f32 %v2122_v9  ;;  %vm2133_vm4 = vweird.f32 %v2122_v9 }
 0x8c2   : > { %v3021_v42 = vpop.eup %3020 }
 0x8c3   : > { %v2128_v21 = vmul.f32 %v3021_v42, %v2122_v9  ;;  %vm2134_vm1 = vweird.f32 %v3021_v42 }
 0x8c4   : > { %vm2135_vm5 = vmor %vm2133_vm4, %vm2134_vm1 }
 0x8c5   : > { %v2129_v17 = vmul.f32 %v3021_v42, %v2128_v21 }
 0x8c7   : > { %v2130_v2 = vmul.f32 0.5, %v2129_v17 }
 0x8c9   : > { %v2131_v18 = vsub.f32 1.5, %v2130_v2 }
 0x8cb   : > { %v2132_v60 = vmul.f32 %v3021_v42, %v2131_v18  ;;  %v2308_v18 = vld [vmem:[%s3284_s26 + $0x50] sm:$0xff] }
 0x8cd   : > { %v2136_v22 = vsel %vm2135_vm5, %v3021_v42, %v2132_v60 }
 0x8ce   : > { %v2177_v25 = vmul.f32 %v2136_v22, %v2092_v35 }
 0x8d0   : > { %v2185_v20 = vmul.f32 %v3843_v19, %v2177_v25  ;;  %v2307_v25 = vld [vmem:[%s3284_s26 + $0x48] sm:$0xff] }
 0x8d2   : > { %v2193_v23 = vadd.f32 %v3850_v58, %v2185_v20 }
 0x8d4   : > { %2814 = vmatmul.msk.f32.vlgmr.msra.gmra.mxu1 %vm954_vm2, %v2193_v23 }
 0x8f7   : > { %v2107_v28 = vpop.xlane.xlu0 %2106 }
 0x8f8   : > { %v2118_v30 = vmul.f32 %v2107_v28, %v3355_v53  ;;  %v2306_v28 = vld [vmem:[%s3284_s26 + $0x40] sm:$0xff] }
 0x8fa   : > { %v2123_v32 = vadd.f32 1e-05, %v2118_v30 }
 0x8fc   : > { %3022 = vrsqrt.f32 %v2123_v32  ;;  %vm2143_vm9 = vweird.f32 %v2123_v32 }
 0x902   : > { %v3023_v34 = vpop.eup %3022 }
 0x903   : > { %v2138_v40 = vmul.f32 %v3023_v34, %v2123_v32  ;;  %vm2144_vm6 = vweird.f32 %v3023_v34 }
 0x904   : > { %vm2145_vm10 = vmor %vm2143_vm9, %vm2144_vm6 }
 0x905   : > { %v2139_v37 = vmul.f32 %v3023_v34, %v2138_v40  ;;  %v2304_v40 = vld [vmem:[%s3284_s26 + $0x30] sm:$0xff] }
 0x907   : > { %v2140_v26 = vmul.f32 0.5, %v2139_v37  ;;  %v2303_v37 = vld [vmem:[%s3284_s26 + $0x28] sm:$0xff] }
 0x909   : > { %v2141_v38 = vsub.f32 1.5, %v2140_v26 }
 0x90b   : > { %v2142_v41 = vmul.f32 %v3023_v34, %v2141_v38  ;;  %v2302_v38 = vld [vmem:[%s3284_s26 + $0x20] sm:$0xff] }
 0x90d   : > { %v2146_v45 = vsel %vm2145_vm10, %v3023_v34, %v2142_v41 }
 0x90e   : > { %v2178_v33 = vmul.f32 %v2146_v45, %v3807_v52  ;;  %v2313_v52 = vld [vmem:[%s3284_s26 + $0x78] sm:$0xff] }
 0x90f   : > { %2318 = vmatpush.msra.mxu3 %v2313_v52  ;;  %v2301_v45 = vld [vmem:[%s3284_s26 + $0x18] sm:$0xff] }
 0x910   : > { %v2186_v47 = vmul.f32 %v3843_v19, %v2178_v33  ;;  %v2300_v33 = vld [vmem:[%s3284_s26 + $0x10] sm:$0xff] }
 0x911   : > { %2319 = vmatpush.msra.mxu3 %v2312_v57 }
 0x912   : > { %v2194_v7 = vadd.f32 %v3850_v58, %v2186_v47  ;;  %v2299_v47 = vld [vmem:[%s3284_s26 + $0x8] sm:$0xff] }
 0x913   : > { %2320 = vmatpush.msra.mxu3 %v2311_v61 }
 0x914   : > { %2815 = vmatmul.msk.f32.gmra.mxu1 %vm954_vm2, %v2194_v7  ;;  %v2298_v7 = vld [vmem:[%s3284_s26] sm:$0xff] }
 0x915   : > { %2321 = vmatpush.msra.mxu3 %v2310_v11 }
 0x916   : > { %v2110_v50 = vpop.xlane.xlu2 %2109 }
 0x917   : > { %v2119_v46 = vmul.f32 %v2110_v50, %v3355_v53 }
 0x919   : > { %v2124_v6 = vadd.f32 1e-05, %v2119_v46 }
 0x91b   : > { %3024 = vrsqrt.f32 %v2124_v6  ;;  %vm2153_vm12 = vweird.f32 %v2124_v6 }
 0x91e   : > { %v2113_v35 = vpop.xlane.xlu1 %2112 }
 0x91f   : > { %v2120_v54 = vmul.f32 %v2113_v35, %v3355_v53 }
 0x921   : > { %v3025_v55 = vpop.eup %3024  ;;  %v2125_v56 = vadd.f32 1e-05, %v2120_v54 }
 0x922   : > { %v2148_v48 = vmul.f32 %v3025_v55, %v2124_v6  ;;  %vm2154_vm11 = vweird.f32 %v3025_v55 }
 0x923   : > { %3026 = vrsqrt.f32 %v2125_v56  ;;  %vm2155_vm13 = vmor %vm2153_vm12, %vm2154_vm11  ;;  %vm2163_vm15 = vweird.f32 %v2125_v56 }
 0x924   : > { %v2149_v51 = vmul.f32 %v3025_v55, %v2148_v48 }
 0x926   : > { %v2150_v63 = vmul.f32 0.5, %v2149_v51  ;;  %v2116_v59 = vpop.xlane.xlu0 %2115 }
 0x927   : > { %v2121_v24 = vmul.f32 %v2116_v59, %v3355_v53 }
 0x928   : > { %v2151_v1 = vsub.f32 1.5, %v2150_v63 }
 0x929   : > { %v3027_v62 = vpop.eup %3026  ;;  %v2126_v3 = vadd.f32 1e-05, %v2121_v24 }
 0x92a   : > { %v2152_v4 = vmul.f32 %v3025_v55, %v2151_v1  ;;  %v2158_v31 = vmul.f32 %v3027_v62, %v2125_v56  ;;  %vm2164_vm14 = vweird.f32 %v3027_v62 }
 0x92b   : > { %3028 = vrsqrt.f32 %v2126_v3  ;;  %vm2165_vm0 = vmor %vm2163_vm15, %vm2164_vm14  ;;  %vm2173_vm4 = vweird.f32 %v2126_v3 }
 0x92c   : > { %v2156_v5 = vsel %vm2155_vm13, %v3025_v55, %v2152_v4  ;;  %v2159_v12 = vmul.f32 %v3027_v62, %v2158_v31 }
 0x92d   : > { %v2179_v8 = vmul.f32 %v2156_v5, %v3814_v0  ;;  %v2309_v0 = vld [vmem:[%s3284_s26 + $0x58] sm:$0xff] }
 0x92e   : > { %v2160_v14 = vmul.f32 0.5, %v2159_v12  ;;  %2322 = vmatpush.msra.mxu3 %v2309_v0 }
 0x92f   : > { %v2187_v16 = vmul.f32 %v3843_v19, %v2179_v8 }
 0x930   : > { %v2161_v10 = vsub.f32 1.5, %v2160_v14  ;;  %2323 = vmatpush.msra.mxu3 %v2308_v18 }
 0x931   : > { %v3029_v39 = vpop.eup %3028  ;;  %v2195_v15 = vadd.f32 %v3850_v58, %v2187_v16 }
 0x932   : > { %v2162_v9 = vmul.f32 %v3027_v62, %v2161_v10  ;;  %v2168_v42 = vmul.f32 %v3029_v39, %v2126_v3  ;;  %vm2174_vm1 = vweird.f32 %v3029_v39  ;;  %2324 = vmatpush.msra.mxu3 %v2307_v25 }
 0x933   : > { %2816 = vmatmul.msk.f32.gmra.mxu1 %vm954_vm2, %v2195_v15  ;;  %vm2175_vm5 = vmor %vm2173_vm4, %vm2174_vm1 }
 0x934   : > { %v2166_v21 = vsel %vm2165_vm0, %v3027_v62, %v2162_v9  ;;  %v2169_v17 = vmul.f32 %v3029_v39, %v2168_v42  ;;  %2325 = vmatpush.msra.mxu3 %v2306_v28 }
 0x935   : > { %v2180_v2 = vmul.f32 %v2166_v21, %v3821_v27  ;;  %v2305_v27 = vld [vmem:[%s3284_s26 + $0x38] sm:$0xff] }
 0x936   : > { %v2170_v60 = vmul.f32 0.5, %v2169_v17  ;;  %2326 = vmatpush.msra.mxu3 %v2305_v27 }
 0x937   : > { %v2188_v22 = vmul.f32 %v3843_v19, %v2180_v2 }
 0x938   : > { %v2171_v20 = vsub.f32 1.5, %v2170_v60  ;;  %2327 = vmatpush.msra.mxu3 %v2304_v40 }
 0x939   : > { %v2196_v23 = vadd.f32 %v3850_v58, %v2188_v22 }
 0x93a   : > { %v2172_v30 = vmul.f32 %v3029_v39, %v2171_v20  ;;  %2328 = vmatpush.msra.mxu3 %v2303_v37 }
 0x93b   : > { %2817 = vmatmul.msk.f32.gmra.mxu1 %vm954_vm2, %v2196_v23 }
 0x93c   : > { %v2176_v32 = vsel %vm2175_vm5, %v3029_v39, %v2172_v30  ;;  %2329 = vmatpush.msra.mxu3 %v2302_v38 }
 0x93d   : > { %v2181_v34 = vmul.f32 %v2176_v32, %v3829_v13  ;;  %v2926_v13 = vld [vmem:[%s779_s7] ss:$0 sm:$0xff] }
 0x93e   : > { %2330 = vmatpush.msra.mxu3 %v2301_v45 }
 0x93f   : > { %v2189_v26 = vmul.f32 %v3843_v19, %v2181_v34 }
 0x940   : > { %2331 = vmatpush.msra.mxu3 %v2300_v33 }
 0x941   : > { %v2197_v41 = vadd.f32 %v3850_v58, %v2189_v26 }
 0x942   : > { %2332 = vmatpush.msra.mxu3 %v2299_v47  ;;  %v2927_v47 = vld [vmem:[%s787_s30] ss:$0 sm:$0xff]  ;;  %s4055_s30 = sld [smem:[#allocation18_spill]] (!%p2819_p5) }
 0x943   : > { %2818 = vmatmul.msk.f32.gmra.mxu1 %vm954_vm2, %v2197_v41 }
 0x944   : > { %2333 = vmatpush.msra.mxu3 %v2298_v7 }
 0x951   : > { %v2238_v19 = vpop.f32.mrf.mxu1 }
 0x952   : > { %v2239_v50 = vadd.f32 %v2926_v13, %v2238_v19 }
 0x954   : > { %v2253_v46 = vmul.f32 %v2239_v50, %v2239_v50 }
 0x956   : > { %v2258_v58 = vmul.f32 %v2253_v46, %v2239_v50 }
 0x958   : > { %v2263_v6 = vmul.f32 0.044715, %v2258_v58 }
 0x95a   : > { %v2268_v35 = vadd.f32 %v2263_v6, %v2239_v50 }
 0x95c   : > { %v2273_v54 = vmul.f32 0.7978846, %v2268_v35 }
 0x95e   : > { %3030 = vtanh.f32 %v2273_v54 }
 0x964   : > { %v3031_v55 = vpop.eup %3030 }
 0x965   : > { %v2283_v56 = vadd.f32 1.0, %v3031_v55 }
 0x967   : > { %v2288_v48 = vmul.f32 0.5, %v2283_v56 }
 0x969   : > { %v2293_v52 = vmul.f32 %v2288_v48, %v2239_v50 }
 0x96b   : > { %2334 = vmatmul.f32.vlgmr.msra.gmra.mxu3 %v2293_v52 }
 0x991   : > { %v2241_v57 = vpop.f32.mrf.mxu1 }
 0x992   : > { %v2242_v51 = vadd.f32 %v2926_v13, %v2241_v57 }
 0x994   : > { %v2254_v61 = vmul.f32 %v2242_v51, %v2242_v51 }
 0x996   : > { %v2259_v63 = vmul.f32 %v2254_v61, %v2242_v51 }
 0x998   : > { %v2264_v59 = vmul.f32 0.044715, %v2259_v63 }
 0x99a   : > { %v2269_v24 = vadd.f32 %v2264_v59, %v2242_v51 }
 0x99c   : > { %v2274_v1 = vmul.f32 0.7978846, %v2269_v24 }
 0x99e   : > { %3032 = vtanh.f32 %v2274_v1 }
 0x9a4   : > { %v3033_v62 = vpop.eup %3032 }
 0x9a5   : > { %v2284_v3 = vadd.f32 1.0, %v3033_v62 }
 0x9a7   : > { %v2289_v4 = vmul.f32 0.5, %v2284_v3 }
 0x9a9   : > { %v2294_v31 = vmul.f32 %v2289_v4, %v2242_v51 }
 0x9ab   : > { %2337 = vmatmul.f32.gmra.mxu3 %v2294_v31 }
 0x9b0   : > { %v2244_v5 = vpop.f32.mrf.mxu1 }
 0x9b1   : > { %v2245_v12 = vadd.f32 %v2926_v13, %v2244_v5 }
 0x9b3   : > { %v2255_v8 = vmul.f32 %v2245_v12, %v2245_v12 }
 0x9b5   : > { %v2260_v14 = vmul.f32 %v2255_v8, %v2245_v12 }
 0x9b7   : > { %v2265_v16 = vmul.f32 0.044715, %v2260_v14 }
 0x9b8   : > { %v2247_v10 = vpop.f32.mrf.mxu1 }
 0x9b9   : > { %v2248_v39 = vadd.f32 %v2926_v13, %v2247_v10  ;;  %v2270_v15 = vadd.f32 %v2265_v16, %v2245_v12 }
 0x9bb   : > { %v2256_v11 = vmul.f32 %v2248_v39, %v2248_v39  ;;  %v2275_v9 = vmul.f32 0.7978846, %v2270_v15 }
 0x9bd   : > { %v2261_v42 = vmul.f32 %v2256_v11, %v2248_v39  ;;  %3034 = vtanh.f32 %v2275_v9 }
 0x9bf   : > { %v2266_v0 = vmul.f32 0.044715, %v2261_v42 }
 0x9c0   : > { %v2250_v21 = vpop.f32.mrf.mxu1 }
 0x9c1   : > { %v2251_v17 = vadd.f32 %v2926_v13, %v2250_v21  ;;  %v2271_v2 = vadd.f32 %v2266_v0, %v2248_v39 }
 0x9c3   : > { %v3035_v18 = vpop.eup %3034  ;;  %v2257_v60 = vmul.f32 %v2251_v17, %v2251_v17  ;;  %v2276_v22 = vmul.f32 0.7978846, %v2271_v2 }
 0x9c4   : > { %v2285_v25 = vadd.f32 1.0, %v3035_v18 }
 0x9c5   : > { %v2262_v20 = vmul.f32 %v2257_v60, %v2251_v17  ;;  %3036 = vtanh.f32 %v2276_v22 }
 0x9c6   : > { %v2290_v23 = vmul.f32 0.5, %v2285_v25 }
 0x9c7   : > { %v2267_v28 = vmul.f32 0.044715, %v2262_v20 }
 0x9c8   : > { %v2295_v30 = vmul.f32 %v2290_v23, %v2245_v12 }
 0x9c9   : > { %v2272_v27 = vadd.f32 %v2267_v28, %v2251_v17 }
 0x9ca   : > { %2340 = vmatmul.f32.gmra.mxu3 %v2295_v30 }
 0x9cb   : > { %v3037_v32 = vpop.eup %3036  ;;  %v2277_v34 = vmul.f32 0.7978846, %v2272_v27 }
 0x9cc   : > { %v2286_v40 = vadd.f32 1.0, %v3037_v32 }
 0x9cd   : > { %3038 = vtanh.f32 %v2277_v34 }
 0x9ce   : > { %v2291_v37 = vmul.f32 0.5, %v2286_v40 }
 0x9d0   : > { %v2296_v26 = vmul.f32 %v2291_v37, %v2248_v39 }
 0x9d2   : > { %2343 = vmatmul.f32.gmra.mxu3 %v2296_v26 }
 0x9d3   : > { %v3039_v38 = vpop.eup %3038 }
 0x9d4   : > { %v2287_v41 = vadd.f32 1.0, %v3039_v38 }
 0x9d6   : > { %v2292_v45 = vmul.f32 0.5, %v2287_v41 }
 0x9d8   : > { %v2297_v33 = vmul.f32 %v2292_v45, %v2251_v17 }
 0x9da   : > { %2346 = vmatmul.f32.gmra.mxu3 %v2297_v33 }
 0x9ee   : > { %v2335_v7 = vpop.f32.mrf.mxu3 }
 0x9ef   : > { %v2336_v13 = vadd.f32 %v2927_v47, %v2335_v7 }
 0x9f1   : > { %v2350_v19 = vadd.f32 %v2336_v13, %v3782_v44 }
 0x9f3   : > { %2355 = vst.msk [vmem:[#allocation2] sm:$0xff] %vm954_vm2, %v2350_v19 }
 0xa2e   : > { %v2338_v50 = vpop.f32.mrf.mxu3 }
 0xa2f   : > { %v2339_v46 = vadd.f32 %v2927_v47, %v2338_v50 }
 0xa31   : > { %v2351_v58 = vadd.f32 %v2339_v46, %v3786_v29 }
 0xa33   : > { %2356 = vst.msk [vmem:[#allocation2 + $0x8] sm:$0xff] %vm954_vm2, %v2351_v58 }
 0xa4d   : > { %v2341_v6 = vpop.f32.mrf.mxu3 }
 0xa4e   : > { %v2342_v35 = vadd.f32 %v2927_v47, %v2341_v6 }
 0xa50   : > { %v2352_v54 = vadd.f32 %v2342_v35, %v3790_v36 }
 0xa52   : > { %2357 = vst.msk [vmem:[#allocation2 + $0x10] sm:$0xff] %vm954_vm2, %v2352_v54 }
 0xa55   : > { %v2344_v55 = vpop.f32.mrf.mxu3 }
 0xa56   : > { %v2345_v56 = vadd.f32 %v2927_v47, %v2344_v55 }
 0xa58   : > { %v2353_v48 = vadd.f32 %v2345_v56, %v3794_v43 }
 0xa5a   : > { %2358 = vst.msk [vmem:[#allocation2 + $0x18] sm:$0xff] %vm954_vm2, %v2353_v48 }
 0xa5d   : > { %v2347_v44 = vpop.f32.mrf.mxu3 }
 0xa5e   : > { %v2348_v52 = vadd.f32 %v2927_v47, %v2347_v44  ;;  %2363 = sbr.rel (%p2819_p5) target bundleno = 3338 (0xd0a), region = 108 }
 0xa60   : > { %v2354_v57 = vadd.f32 %v2348_v52, %v3798_v49 }
 0xa62   : > { %2359 = vst.msk [vmem:[#allocation2 + $0x20] sm:$0x3] %vm967_vm3, %v2354_v57 }
 0xa63   : > { %v2378_v29 = vsel %vm967_vm3, %v2354_v57, 0.0  ;;  %v2372_v36 = vsel %vm954_vm2, %v2352_v54, 0.0  ;;  %v2366_v51 = vsel %vm954_vm2, %v2350_v19, 0.0  ;;  %v2375_v43 = vsel %vm954_vm2, %v2353_v48, 0.0  ;;  %v2522_v47 = vld [vmem:[%s4017_s18 + $0x18] sm:$0xff]  ;;  %v2521_v7 = vld [vmem:[%s4017_s18 + $0x10] sm:$0xff] }
 0xa64   : > { %2379 = vadd.xlane.f32.xlu0 %v2378_v29  ;;  %2373 = vadd.xlane.f32.xlu1 %v2372_v36  ;;  %v2369_v61 = vsel %vm954_vm2, %v2351_v58, 0.0  ;;  %v2520_v46 = vld [vmem:[%s4017_s18 + $0x8] sm:$0xff] }
 0xa65   : > { %2367 = vadd.xlane.f32.xlu2 %v2366_v51  ;;  %2542 = vmatpush.msra.mxu1 %v2522_v47 }
 0xa67   : > { %2543 = vmatpush.msra.mxu1 %v2521_v7 }
 0xa69   : > { %2544 = vmatpush.msra.mxu1 %v2520_v46 }
 0xa6c   : > { %2376 = vadd.xlane.f32.xlu0 %v2375_v43  ;;  %2370 = vadd.xlane.f32.xlu1 %v2369_v61 }
 0xad7   : > { %v2380_v49 = vpop.xlane.xlu0 %2379  ;;  %v2374_v63 = vpop.xlane.xlu1 %2373 }
 0xad8   : > { %v2385_v59 = vmul.f32 %v2380_v49, %v3355_v53  ;;  %v2383_v24 = vmul.f32 %v2374_v63, %v3355_v53  ;;  %v2368_v31 = vpop.xlane.xlu2 %2367 }
 0xad9   : > { %v2381_v39 = vmul.f32 %v2368_v31, %v3355_v53 }
 0xada   : > { %v3919_v1 = vsub.f32 %v2354_v57, %v2385_v59  ;;  %v3921_v62 = vsub.f32 %v2352_v54, %v2383_v24  ;;  %v3046_v24 = vld [vmem:[%s4053_s1] ss:$0 sm:$0xff] }
 0xadb   : > { %v3940_v0 = vsub.f32 %v2350_v19, %v2381_v39 }
 0xadc   : > { %v2393_v3 = vmul.f32 %v3921_v62, %v3921_v62  ;;  %v2395_v4 = vmul.f32 %v3919_v1, %v3919_v1 }
 0xadd   : > { %v2391_v2 = vmul.f32 %v3940_v0, %v3940_v0 }
 0xade   : > { %v2402_v5 = vsel %vm954_vm2, %v2393_v3, 0.0  ;;  %v2408_v12 = vsel %vm967_vm3, %v2395_v4, 0.0 }
 0xadf   : > { %v2377_v8 = vpop.xlane.xlu0 %2376  ;;  %2403 = vadd.xlane.f32.xlu1 %v2402_v5  ;;  %v2371_v14 = vpop.xlane.xlu1 %2370  ;;  %2409 = vadd.xlane.f32.xlu2 %v2408_v12  ;;  %v2396_v18 = vsel %vm954_vm2, %v2391_v2, 0.0 }
 0xae0   : > { %v2384_v16 = vmul.f32 %v2377_v8, %v3355_v53  ;;  %v2382_v10 = vmul.f32 %v2371_v14, %v3355_v53 }
 0xae2   : > { %v3932_v15 = vsub.f32 %v2353_v48, %v2384_v16  ;;  %v3934_v11 = vsub.f32 %v2351_v58, %v2382_v10 }
 0xae4   : > { %v2394_v9 = vmul.f32 %v3932_v15, %v3932_v15  ;;  %v2392_v42 = vmul.f32 %v3934_v11, %v3934_v11 }
 0xae6   : > { %v2405_v21 = vsel %vm954_vm2, %v2394_v9, 0.0  ;;  %v2399_v17 = vsel %vm954_vm2, %v2392_v42, 0.0 }
 0xae7   : > { %2406 = vadd.xlane.f32.xlu0 %v2405_v21  ;;  %2400 = vadd.xlane.f32.xlu2 %v2399_v17 }
 0xaef   : > { %2397 = vadd.xlane.f32.xlu0 %v2396_v18 }
 0xb52   : > { %v2404_v60 = vpop.xlane.xlu1 %2403  ;;  %v2410_v22 = vpop.xlane.xlu2 %2409 }
 0xb53   : > { %v2413_v25 = vmul.f32 %v2404_v60, %v3355_v53  ;;  %v2415_v20 = vmul.f32 %v2410_v22, %v3355_v53 }
 0xb55   : > { %v2418_v23 = vadd.f32 1e-05, %v2413_v25  ;;  %v2420_v28 = vadd.f32 1e-05, %v2415_v20 }
 0xb57   : > { %3048 = vrsqrt.f32 %v2418_v23  ;;  %vm2447_vm9 = vweird.f32 %v2418_v23  ;;  %vm2467_vm10 = vweird.f32 %v2420_v28 }
 0xb58   : > { %3050 = vrsqrt.f32 %v2420_v28 }
 0xb5a   : > { %v2407_v30 = vpop.xlane.xlu0 %2406  ;;  %v2401_v27 = vpop.xlane.xlu2 %2400 }
 0xb5b   : > { %v2414_v32 = vmul.f32 %v2407_v30, %v3355_v53  ;;  %v2412_v34 = vmul.f32 %v2401_v27, %v3355_v53 }
 0xb5d   : > { %v3049_v40 = vpop.eup %3048  ;;  %v2419_v37 = vadd.f32 1e-05, %v2414_v32  ;;  %v2417_v26 = vadd.f32 1e-05, %v2412_v34  ;;  %v2519_v34 = vld [vmem:[%s4017_s18] sm:$0xff] }
 0xb5e   : > { %v3051_v38 = vpop.eup %3050  ;;  %v2442_v41 = vmul.f32 %v3049_v40, %v2418_v23  ;;  %vm2448_vm11 = vweird.f32 %v3049_v40  ;;  %2545 = vmatpush.msra.mxu1 %v2519_v34 }
 0xb5f   : > { %v2462_v45 = vmul.f32 %v3051_v38, %v2420_v28  ;;  %3052 = vrsqrt.f32 %v2419_v37  ;;  %vm2468_vm6 = vweird.f32 %v3051_v38  ;;  %vm3964_vm13 = vmor %vm2447_vm9, %vm2448_vm11  ;;  %vm2437_vm15 = vweird.f32 %v2417_v26 }
 0xb60   : > { %v2443_v33 = vmul.f32 %v3049_v40, %v2442_v41  ;;  %3054 = vrsqrt.f32 %v2417_v26  ;;  %vm2469_vm12 = vmor %vm2467_vm10, %vm2468_vm6  ;;  %vm2457_vm1 = vweird.f32 %v2419_v37 }
 0xb61   : > { %v2463_v13 = vmul.f32 %v3051_v38, %v2462_v45 }
 0xb62   : > { %v2444_v19 = vmul.f32 0.5, %v2443_v33  ;;  %v2398_v50 = vpop.xlane.xlu0 %2397 }
 0xb63   : > { %v2464_v58 = vmul.f32 0.5, %v2463_v13  ;;  %v2411_v6 = vmul.f32 %v2398_v50, %v3355_v53  ;;  %v3045_v53 = vld [vmem:[%s4014_s15] ss:$0 sm:$0xff] }
 0xb64   : > { %v2445_v35 = vsub.f32 1.5, %v2444_v19 }
 0xb65   : > { %v3053_v54 = vpop.eup %3052  ;;  %v2465_v55 = vsub.f32 1.5, %v2464_v58  ;;  %v2416_v56 = vadd.f32 1e-05, %v2411_v6 }
 0xb66   : > { %v3055_v48 = vpop.eup %3054  ;;  %v2452_v44 = vmul.f32 %v3053_v54, %v2419_v37  ;;  %v2446_v57 = vmul.f32 %v3049_v40, %v2445_v35  ;;  %vm2458_vm14 = vweird.f32 %v3053_v54 }
 0xb67   : > { %v2432_v52 = vmul.f32 %v3055_v48, %v2417_v26  ;;  %3056 = vrsqrt.f32 %v2416_v56  ;;  %v2466_v36 = vmul.f32 %v3051_v38, %v2465_v55  ;;  %vm2438_vm0 = vweird.f32 %v3055_v48  ;;  %vm2459_vm4 = vmor %vm2457_vm1, %vm2458_vm14 }
 0xb68   : > { %v2453_v29 = vmul.f32 %v3053_v54, %v2452_v44  ;;  %v2450_v4 = vsel %vm3964_vm13, %v3049_v40, %v2446_v57  ;;  %vm2439_vm5 = vmor %vm2437_vm15, %vm2438_vm0  ;;  %vm2427_vm9 = vweird.f32 %v2416_v56 }
 0xb69   : > { %v2433_v51 = vmul.f32 %v3055_v48, %v2432_v52  ;;  %v2470_v61 = vsel %vm2469_vm12, %v3051_v38, %v2466_v36  ;;  %v2473_v10 = vmul.f32 %v2450_v4, %v3921_v62 }
 0xb6a   : > { %v2454_v43 = vmul.f32 0.5, %v2453_v29  ;;  %v2475_v59 = vmul.f32 %v2470_v61, %v3919_v1 }
 0xb6b   : > { %v2434_v63 = vmul.f32 0.5, %v2433_v51  ;;  %v2481_v60 = vmul.f32 %v3045_v53, %v2473_v10 }
 0xb6c   : > { %v2455_v3 = vsub.f32 1.5, %v2454_v43  ;;  %v2483_v12 = vmul.f32 %v3045_v53, %v2475_v59 }
 0xb6d   : > { %v3057_v31 = vpop.eup %3056  ;;  %v2435_v5 = vsub.f32 1.5, %v2434_v63  ;;  %v2489_v62 = vadd.f32 %v3046_v24, %v2481_v60 }
 0xb6e   : > { %v2456_v8 = vmul.f32 %v3053_v54, %v2455_v3  ;;  %v2422_v14 = vmul.f32 %v3057_v31, %v2416_v56  ;;  %v2491_v1 = vadd.f32 %v3046_v24, %v2483_v12  ;;  %vm2428_vm6 = vweird.f32 %v3057_v31 }
 0xb6f   : > { %v2436_v16 = vmul.f32 %v3055_v48, %v2435_v5  ;;  %vm2429_vm10 = vmor %vm2427_vm9, %vm2428_vm6 }
 0xb70   : > { %v2423_v39 = vmul.f32 %v3057_v31, %v2422_v14  ;;  %v2460_v9 = vsel %vm2459_vm4, %v3053_v54, %v2456_v8  ;;  %2820 = vmatpush.msk.msra.mxu0 %vm1308_vm7, %v2491_v1 }
 0xb71   : > { %v2474_v42 = vmul.f32 %v2460_v9, %v3932_v15  ;;  %v2440_v21 = vsel %vm2439_vm5, %v3055_v48, %v2436_v16 }
 0xb72   : > { %v2424_v17 = vmul.f32 0.5, %v2423_v39  ;;  %v2472_v2 = vmul.f32 %v2440_v21, %v3934_v11  ;;  %v2492_v11 = vld [vmem:[%s4054_s4] sm:$0x3] }
 0xb73   : > { %v2482_v18 = vmul.f32 %v3045_v53, %v2474_v42 }
 0xb74   : > { %v2425_v22 = vsub.f32 1.5, %v2424_v17  ;;  %v2480_v20 = vmul.f32 %v3045_v53, %v2472_v2 }
 0xb75   : > { %v2490_v25 = vadd.f32 %v3046_v24, %v2482_v18 }
 0xb76   : > { %v2426_v23 = vmul.f32 %v3057_v31, %v2425_v22  ;;  %v2488_v30 = vadd.f32 %v3046_v24, %v2480_v20 }
 0xb77   : > { %2511 = vmatpush.msra.mxu0 %v2490_v25 }
 0xb78   : > { %v2430_v28 = vsel %vm2429_vm10, %v3057_v31, %v2426_v23 }
 0xb79   : > { %2512 = vmatpush.msra.mxu0 %v2489_v62  ;;  %v2471_v15 = vmul.f32 %v2430_v28, %v3940_v0  ;;  %v3047_v0 = vld [vmem:[%s4055_s30] ss:$0 sm:$0xff] }
 0xb7b   : > { %2513 = vmatpush.msra.mxu0 %v2488_v30  ;;  %v2479_v27 = vmul.f32 %v3045_v53, %v2471_v15 }
 0xb7d   : > { %v2487_v32 = vadd.f32 %v3046_v24, %v2479_v27 }
 0xb7f   : > { %2514 = vmatpush.msra.mxu0 %v2487_v32 }
 0xb80   : > { %2821 = vmatmul.msk.f32.vlgmr.msra.gmra.mxu0 %vm1222_vm8, %v2492_v11 }
 0xbfd   : > { %v2516_v40 = vpop.f32.mrf.mxu0 }
 0xbfe   : > { %2822 = vmatmul.msk.f32.vlgmr.msra.gmra.mxu1 %vm954_vm2, %v2516_v40 }
 0xc7b   : > { %v2547_v37 = vpop.f32.mrf.mxu1 }
 0xc7c   : > { %v2548_v26 = vadd.f32 %v3047_v0, %v2547_v37 }
 0xc7e   : > { %v2550_v38 = vmul.f32 %v2548_v26, %v2548_v26 }
 0xc80   : > { %v2551_v41 = vsel %vm967_vm3, %v2550_v38, 0.0 }
 0xc81   : > { %2552 = vadd.xlane.f32.xlu1 %v2551_v41 }
 0xcf4   : > { %v2553_v45 = vpop.xlane.xlu1 %2552 }
 0xcf5   : > { %3058 = vrsqrt.f32 %v2553_v45  ;;  %vm2560_vm2 = vweird.f32 %v2553_v45 }
 0xcfb   : > { %v3059_v33 = vpop.eup %3058 }
 0xcfc   : > { %v2555_v47 = vmul.f32 %v3059_v33, %v2553_v45  ;;  %vm2561_vm7 = vweird.f32 %v3059_v33 }
 0xcfd   : > { %vm2562_vm8 = vmor %vm2560_vm2, %vm2561_vm7 }
 0xcfe   : > { %v2556_v7 = vmul.f32 %v3059_v33, %v2555_v47 }
 0xd00   : > { %v2557_v13 = vmul.f32 0.5, %v2556_v7 }
 0xd02   : > { %v2558_v19 = vsub.f32 1.5, %v2557_v13 }
 0xd04   : > { %v2559_v50 = vmul.f32 %v3059_v33, %v2558_v19 }
 0xd06   : > { %v2563_v46 = vsel %vm2562_vm8, %v3059_v33, %v2559_v50 }
 0xd07   : > { %v2564_v58 = vmul.f32 %v2563_v46, %v2548_v26 }
 0xd09   : > { %2565 = vst.msk [vmem:[#allocation5] sm:$0x3] %vm967_vm3, %v2564_v58 }
 0xd0a PF: > { %p2853_p6 = scmp.eq.s32.totalorder %s3228_s22, 1  ;;  %s3116_s28 = smov [#allocation5]  }
 0xd0b   : > { %s2572_s0 = sshll.u32 %s3116_s28, 4  ;;  %s4056_s17 = sld [smem:[#allocation19_spill]]  ;;  %s2573_s0 = int_to_ptr.vmem [resolvable:$true] %s2572_s0 }
 0xd11   : > { %s2574_s19 = sshll.u32 %s4056_s17, 4  ;;  %s2575_s19 = int_to_ptr.hbm [resolvable:$true] %s2574_s19 }
 0xd12   : > { %2850 = dma.vmem_to_hbm [thread:$0]  (%p2853_p6), %s2573_s0, 32, %s2575_s19, [#allocation6]  }
 0xd13   : > { %3093 = dma.done.wait (%p2853_p6), [#allocation6], 32  }
 0xd14   : > { %3095 = vsyncadd (%p2853_p6), [#allocation6], 4294967264 }
 0xd15 PF: > { %s4057_s16 = sld [smem:[#allocation8_spill]] }
 0xd1b   : > { %s31_s1 = sadd.s32 1, %s4057_s16  }
 0xd1c   : > { %p28_p7 = scmp.ge.s32.totalorder %s31_s1, 4  }
 0xd1e   :  { %30 = sbr.rel (!%p28_p7) target bundleno = 13 (0xd), region = 168 }
 0xd23   :  { %2588 = vsyncpa [#allocation6], 1 }
 0xd24   :  { %2590 = vsyncpa [#allocation6 + $0x1], 1 }

</bundles_post_ra>
